<compile_context>
chip_gen: v7x
topology: tpu7x:2x2x1
jax: 0.10.0
libtpu: 0.0.40
codegen_flags: <defaults>
</compile_context>

<pallas_src>
import functools

import jax
import jax.numpy as jnp
from jax.experimental import pallas as pl
from jax.experimental.pallas import tpu as pltpu


def _round_up(x, m):
    return ((x + m - 1) // m) * m


def _ceil_div(a, b):
    return -(-a // b)


# Safe on all generations: v7x has 64 MiB physical VMEM (keep <= ~48 MB);
# v5e/v6e (128 MiB) could go higher but the tiles here never need it.
_VMEM_LIMIT = 48 * 1024 * 1024


# ---------------- Pallas kernels ----------------

def _abs_sq_sums_kernel(x_ref, g_ref, abs_ref, sq_ref):
    # x_ref, g_ref: (RT, 128) tile of the flattened operands.
    # abs_ref, sq_ref: (1, 8, 128) vector partials, one per "half" (leading
    # parallel axis); resident across the inner ("arbitrary") grid axis.
    j = pl.program_id(1)

    @pl.when(j == 0)
    def _():
        abs_ref[...] = jnp.zeros_like(abs_ref)
        sq_ref[...] = jnp.zeros_like(sq_ref)

    d = x_ref[...] - g_ref[...]
    rt, lanes = d.shape
    # (rt,128) -> (rt//8, 8, 128) is the native sublane tiling split; the
    # axis-0 sum is pure VPU vreg adds (no XLU), fully hidden under the DMA.
    abs_part = jnp.sum(jnp.abs(d).reshape(rt // 8, 8, lanes), axis=0)
    sq_part = jnp.sum((d * d).reshape(rt // 8, 8, lanes), axis=0)
    abs_ref[...] += abs_part.reshape(1, 8, lanes)
    sq_ref[...] += sq_part.reshape(1, 8, lanes)


def _conv_pair_kernel(px_ref, pg_ref, w_ref, b_ref, ox_ref, og_ref):
    # px_ref/pg_ref: (MT, Kp) bf16 im2col rows for x and gt (weights shared).
    # w_ref: (Kp, Cp) bf16, b_ref: (1, Cp) f32, outputs: (MT, Cp) bf16.
    w = w_ref[...]
    b = b_ref[...]
    ax = jnp.dot(px_ref[...], w, preferred_element_type=jnp.float32)
    ag = jnp.dot(pg_ref[...], w, preferred_element_type=jnp.float32)
    ox_ref[...] = jnp.maximum(ax + b, 0.0).astype(ox_ref.dtype)
    og_ref[...] = jnp.maximum(ag + b, 0.0).astype(og_ref.dtype)


def _conv_pool_sqsum_kernel(px_ref, pg_ref, w_ref, b_ref, sq_ref):
    # Fused conv2 + ReLU + 2x2 maxpool + sum((fx - fg)^2).
    # px_ref/pg_ref: (4, MTq, Kp) bf16 -- leading axis = 2x2 pool window phase,
    #   rows indexed by pooled output pixel (n, h/2, w/2).
    # w_ref: (Kp, Cp) bf16, b_ref: (1, Cp) f32.
    # sq_ref: (1, 8, Cp) f32 vector partial per half, resident across axis 1.
    j = pl.program_id(1)

    @pl.when(j == 0)
    def _():
        sq_ref[...] = jnp.zeros_like(sq_ref)

    w = w_ref[...]
    b = b_ref[...]

    def pooled_feat(p_ref):
        # max over the 4 window phases commutes with (+bias) and ReLU.
        m = jnp.dot(p_ref[0], w, preferred_element_type=jnp.float32)
        for e in range(1, 4):
            m = jnp.maximum(m, jnp.dot(p_ref[e], w,
                                       preferred_element_type=jnp.float32))
        return jnp.maximum(m + b, 0.0)

    d = pooled_feat(px_ref) - pooled_feat(pg_ref)
    d2 = d * d
    mt, cp = d2.shape
    part = jnp.sum(d2.reshape(mt // 8, 8, cp), axis=0)   # VPU adds only
    sq_ref[...] += part.reshape(1, 8, cp)


# ---------------- Pallas wrappers ----------------

def loss_sums(x, gt):
    """Returns (sum|x-gt|, sum (x-gt)^2) over all elements (tiled Pallas reduction)."""
    xf = x.reshape(-1).astype(jnp.float32)
    gf = gt.reshape(-1).astype(jnp.float32)
    n = xf.shape[0]

    halves = 2                                   # v7x: one half per TensorCore
    R = _ceil_div(n, 128)                        # rows of 128 lanes
    RT = min(2048, _round_up(max(1, _ceil_div(R, halves)), 8))
    steps = _ceil_div(R, halves * RT)
    Rp = halves * RT * steps
    pad = Rp * 128 - n
    if pad:                                      # zero padding contributes 0 to both sums
        xf = jnp.pad(xf, (0, pad))
        gf = jnp.pad(gf, (0, pad))
    x2 = xf.reshape(Rp, 128)
    g2 = gf.reshape(Rp, 128)

    abs_p, sq_p = pl.pallas_call(
        _abs_sq_sums_kernel,
        out_shape=(jax.ShapeDtypeStruct((halves, 8, 128), jnp.float32),
                   jax.ShapeDtypeStruct((halves, 8, 128), jnp.float32)),
        grid=(halves, steps),
        in_specs=[
            pl.BlockSpec((RT, 128), lambda i, j: (i * steps + j, 0)),
            pl.BlockSpec((RT, 128), lambda i, j: (i * steps + j, 0)),
        ],
        out_specs=(pl.BlockSpec((1, 8, 128), lambda i, j: (i, 0, 0)),
                   pl.BlockSpec((1, 8, 128), lambda i, j: (i, 0, 0))),
        compiler_params=pltpu.CompilerParams(
            dimension_semantics=("parallel", "arbitrary"),
            vmem_limit_bytes=_VMEM_LIMIT),
    )(x2, g2)
    return jnp.sum(abs_p), jnp.sum(sq_p)


def _im2col(x_nhwc):
    # (N,H,W,C) -> (N*H*W, 9*C); tap order (dy, dx, c) matches w_hwio.reshape(9C, Cout).
    N, H, W, C = x_nhwc.shape
    xp = jnp.pad(x_nhwc, ((0, 0), (1, 1), (1, 1), (0, 0)))
    cols = [xp[:, dy:dy + H, dx:dx + W, :] for dy in range(3) for dx in range(3)]
    return jnp.concatenate(cols, axis=-1).reshape(N * H * W, 9 * C)


def _im2col_pool_blocks(x_nhwc):
    # (N,H,W,C) -> (4, N*(H//2)*(W//2), 9*C); leading axis = 2x2 pooling window
    # phase, rows indexed by pooled output pixel (n, h/2, w/2).
    N, H, W, C = x_nhwc.shape
    assert H % 2 == 0 and W % 2 == 0, "maxpool fusion assumes even spatial dims"
    xp = jnp.pad(x_nhwc, ((0, 0), (1, 1), (1, 1), (0, 0)))
    full = jnp.concatenate(
        [xp[:, dy:dy + H, dx:dx + W, :] for dy in range(3) for dx in range(3)],
        axis=-1)                                            # (N, H, W, 9C)
    Mq = N * (H // 2) * (W // 2)
    blocks = [full[:, py::2, qx::2, :].reshape(Mq, 9 * C)
              for py in range(2) for qx in range(2)]
    return jnp.stack(blocks, axis=0)


def conv1_relu_pair(x_nhwc, g_nhwc, w_hwio, b):
    """3x3 same conv + ReLU on x and gt in one pallas_call (shared weights), bf16 out."""
    N, H, W, Cin = x_nhwc.shape
    Cout = w_hwio.shape[-1]
    K = 9 * Cin
    Kp = _round_up(K, 32)           # bf16 sublane multiple; 128 would be 4x wasted DMA
    Cp = _round_up(Cout, 128)       # lane-dense (unmasked) output stores
    M = N * H * W

    MT = min(512, _round_up(M, 8))
    if _round_up(M, MT) // MT < 2 and MT > 8:
        MT = max(8, _round_up(MT // 2, 8))     # expose >= 2 parallel steps (v7x megacore)
    Mp = _round_up(M, MT)

    px = jnp.pad(_im2col(x_nhwc), ((0, Mp - M), (0, Kp - K))).astype(jnp.bfloat16)
    pg = jnp.pad(_im2col(g_nhwc), ((0, Mp - M), (0, Kp - K))).astype(jnp.bfloat16)
    wmat = jnp.pad(w_hwio.reshape(K, Cout),
                   ((0, Kp - K), (0, Cp - Cout))).astype(jnp.bfloat16)
    bias = jnp.pad(b, (0, Cp - Cout)).astype(jnp.float32).reshape(1, Cp)

    hx, hg = pl.pallas_call(
        _conv_pair_kernel,
        out_shape=(jax.ShapeDtypeStruct((Mp, Cp), jnp.bfloat16),
                   jax.ShapeDtypeStruct((Mp, Cp), jnp.bfloat16)),
        grid=(Mp // MT,),
        in_specs=[
            pl.BlockSpec((MT, Kp), lambda i: (i, 0)),
            pl.BlockSpec((MT, Kp), lambda i: (i, 0)),
            pl.BlockSpec((Kp, Cp), lambda i: (0, 0)),
            pl.BlockSpec((1, Cp), lambda i: (0, 0)),
        ],
        out_specs=(pl.BlockSpec((MT, Cp), lambda i: (i, 0)),
                   pl.BlockSpec((MT, Cp), lambda i: (i, 0))),
        compiler_params=pltpu.CompilerParams(
            dimension_semantics=("parallel",),
            vmem_limit_bytes=_VMEM_LIMIT),
    )(px, pg, wmat, bias)

    # Padded M rows (= ReLU(bias)) and padded Cout columns are sliced off here.
    hx = hx[:M, :Cout].reshape(N, H, W, Cout)
    hg = hg[:M, :Cout].reshape(N, H, W, Cout)
    return hx, hg


def conv2_pool_sqsum_pair(x_nhwc, g_nhwc, w_hwio, b):
    """Fused conv2 + ReLU + 2x2 maxpool + sum((feat_x - feat_gt)^2) in one kernel."""
    N, H, W, Cin = x_nhwc.shape
    Cout = w_hwio.shape[-1]
    K = 9 * Cin
    Kp = _round_up(K, 128)
    Cp = _round_up(Cout, 128)
    Mq = N * (H // 2) * (W // 2)

    halves = 2                                   # v7x: one half per TensorCore
    MTq = min(512, _round_up(max(1, _ceil_div(Mq, halves)), 8))
    steps = _ceil_div(Mq, halves * MTq)
    Mqp = halves * MTq * steps

    # Padded rows/columns are identical zeros for x and gt -> pooled-feature
    # diff is exactly 0 there, so they contribute nothing to the fused sum.
    px = jnp.pad(_im2col_pool_blocks(x_nhwc),
                 ((0, 0), (0, Mqp - Mq), (0, Kp - K))).astype(jnp.bfloat16)
    pg = jnp.pad(_im2col_pool_blocks(g_nhwc),
                 ((0, 0), (0, Mqp - Mq), (0, Kp - K))).astype(jnp.bfloat16)
    wmat = jnp.pad(w_hwio.reshape(K, Cout),
                   ((0, Kp - K), (0, Cp - Cout))).astype(jnp.bfloat16)
    bias = jnp.pad(b, (0, Cp - Cout)).astype(jnp.float32).reshape(1, Cp)

    partials = pl.pallas_call(
        _conv_pool_sqsum_kernel,
        out_shape=jax.ShapeDtypeStruct((halves, 8, Cp), jnp.float32),
        grid=(halves, steps),
        in_specs=[
            pl.BlockSpec((4, MTq, Kp), lambda i, j: (0, i * steps + j, 0)),
            pl.BlockSpec((4, MTq, Kp), lambda i, j: (0, i * steps + j, 0)),
            pl.BlockSpec((Kp, Cp), lambda i, j: (0, 0)),
            pl.BlockSpec((1, Cp), lambda i, j: (0, 0)),
        ],
        out_specs=pl.BlockSpec((1, 8, Cp), lambda i, j: (i, 0, 0)),
        compiler_params=pltpu.CompilerParams(
            dimension_semantics=("parallel", "arbitrary"),
            vmem_limit_bytes=_VMEM_LIMIT),
    )(px, pg, wmat, bias)

    return jnp.sum(partials)


# ---------------- "VGG" feature extractor (features[:5]) ----------------

def init_vgg_params(key):
    # TODO(synk): pretrained torchvision VGG16 weights replaced with deterministic
    #             random init (no checkpoint loading allowed here).
    k1, k2, k3, k4 = jax.random.split(key, 4)
    return {
        "w1": jax.random.normal(k1, (3, 3, 3, 64), jnp.float32) * 0.08,   # HWIO
        "b1": jax.random.normal(k2, (64,), jnp.float32) * 0.01,
        "w2": jax.random.normal(k3, (3, 3, 64, 64), jnp.float32) * 0.03,  # HWIO
        "b2": jax.random.normal(k4, (64,), jnp.float32) * 0.01,
    }


_IMAGENET_MEAN = jnp.array([0.485, 0.456, 0.406], jnp.float32)
_IMAGENET_STD = jnp.array([0.229, 0.224, 0.225], jnp.float32)


def nearest_resize_nchw(x, size):
    # matches F.interpolate(mode='nearest'): idx = floor(out_i * in / out)
    N, C, H, W = x.shape
    rows = (jnp.arange(size) * H) // size
    cols = (jnp.arange(size) * W) // size
    return x[:, :, rows[:, None], cols[None, :]]


def vgg_loss(x, gt, params, image_size):
    def prep(t):  # t: NCHW in [-1, 1]
        t = t * 0.5 + 0.5
        t = (t - _IMAGENET_MEAN[None, :, None, None]) / _IMAGENET_STD[None, :, None, None]
        if t.shape[2] != image_size or t.shape[3] != image_size:
            t = nearest_resize_nchw(t, image_size)   # identity skipped otherwise
        return jnp.transpose(t, (0, 2, 3, 1))        # NCHW -> NHWC

    xh, gh = prep(x), prep(gt)
    N, H, W, _ = xh.shape

    # VGG16 features[:5]: Conv(3->64)+ReLU, Conv(64->64)+ReLU, MaxPool 2x2.
    hx, hg = conv1_relu_pair(xh, gh, params["w1"], params["b1"])
    sq = conv2_pool_sqsum_pair(hx, hg, params["w2"], params["b2"])

    feat_numel = N * (H // 2) * (W // 2) * params["w2"].shape[-1]
    return (sq / feat_numel) * 0.001  # MSE (vgg_loss_type='L2') * 0.001


# ---------------- CombinationLoss forward ----------------

@functools.partial(jax.jit,
                   static_argnames=("l1_lambda", "l2_lambda", "vgg_lambda", "image_size"))
def combination_loss(x, gt, params, l1_lambda, l2_lambda, vgg_lambda, image_size):
    abs_s, sq_s = loss_sums(x, gt)
    n = x.size
    l1 = abs_s / n      # nn.L1Loss()
    l2 = sq_s / n       # nn.MSELoss()
    vgg = vgg_loss(x, gt, params, image_size)
    return l1_lambda * l1 + l2_lambda * l2 + vgg_lambda * vgg


if __name__ == "__main__":
    key = jax.random.PRNGKey(0)
    kx, kg, kp = jax.random.split(key, 3)

    N, C, H, W = 2, 3, 16, 16
    x = jax.random.uniform(kx, (N, C, H, W), jnp.float32, minval=-1.0, maxval=1.0)
    gt = jax.random.uniform(kg, (N, C, H, W), jnp.float32, minval=-1.0, maxval=1.0)
    params = init_vgg_params(kp)

    loss = combination_loss(x, gt, params,
                            l1_lambda=1.0, l2_lambda=10.0, vgg_lambda=1.0,
                            image_size=16)
    jax.block_until_ready(loss)
    print("KERNEL_OK")
</pallas_src>

<mosaic_0001>
module attributes {stable_mosaic.version = 11 : i64} {
  func.func @_conv_pair_kernel(%arg0: i32, %arg1: memref<256x32xbf16, #tpu.memory_space<vmem>>, %arg2: memref<256x32xbf16, #tpu.memory_space<vmem>>, %arg3: memref<32x128xbf16, #tpu.memory_space<vmem>>, %arg4: memref<1x128xf32, #tpu.memory_space<vmem>>, %arg5: memref<256x128xbf16, #tpu.memory_space<vmem>>, %arg6: memref<256x128xbf16, #tpu.memory_space<vmem>>) attributes {dimension_semantics = [#tpu.dimension_semantics<parallel>], iteration_bounds = array<i64: 2>, scalar_prefetch = 0 : i64, scratch_operands = 0 : i64, tpu.core_type = #tpu.core_type<tc>, window_params = [{transform_indices = @transform_0, window_bounds = array<i64: 256, 32>}, {transform_indices = @transform_1, window_bounds = array<i64: 256, 32>}, {pipeline_mode = #tpu.pipeline_mode<synchronous>, transform_indices = @transform_2, window_bounds = array<i64: 32, 128>}, {pipeline_mode = #tpu.pipeline_mode<synchronous>, transform_indices = @transform_3, window_bounds = array<i64: 1, 128>}, {transform_indices = @transform_4, window_bounds = array<i64: 256, 128>}, {transform_indices = @transform_5, window_bounds = array<i64: 256, 128>}]} {
    %c0 = arith.constant 0 : index
    %c0_0 = arith.constant 0 : index
    %0 = vector.load %arg3[%c0, %c0_0] : memref<32x128xbf16, #tpu.memory_space<vmem>>, vector<32x128xbf16>
    %c0_1 = arith.constant 0 : index
    %c0_2 = arith.constant 0 : index
    %1 = vector.load %arg4[%c0_1, %c0_2] : memref<1x128xf32, #tpu.memory_space<vmem>>, vector<1x128xf32>
    %c0_3 = arith.constant 0 : index
    %c0_4 = arith.constant 0 : index
    %2 = vector.load %arg1[%c0_3, %c0_4] : memref<256x32xbf16, #tpu.memory_space<vmem>>, vector<256x32xbf16>
    %cst = arith.constant dense<0.000000e+00> : vector<256x128xf32>
    %3 = tpu.matmul %2, %0, %cst {dimension_numbers = #tpu.dot_dimension_numbers<[1], [0], [0], [1], [0, 0, 1, 1], [], []>} : vector<256x32xbf16>, vector<32x128xbf16>, vector<256x128xf32> -> vector<256x128xf32>
    %c0_5 = arith.constant 0 : index
    %c0_6 = arith.constant 0 : index
    %4 = vector.load %arg2[%c0_5, %c0_6] : memref<256x32xbf16, #tpu.memory_space<vmem>>, vector<256x32xbf16>
    %cst_7 = arith.constant dense<0.000000e+00> : vector<256x128xf32>
    %5 = tpu.matmul %4, %0, %cst_7 {dimension_numbers = #tpu.dot_dimension_numbers<[1], [0], [0], [1], [0, 0, 1, 1], [], []>} : vector<256x32xbf16>, vector<32x128xbf16>, vector<256x128xf32> -> vector<256x128xf32>
    %6 = vector.broadcast %1 : vector<1x128xf32> to vector<256x128xf32>
    %7 = arith.addf %3, %6 : vector<256x128xf32>
    %cst_8 = arith.constant 0.000000e+00 : f32
    %8 = vector.broadcast %cst_8 : f32 to vector<256x128xf32>
    %9 = arith.maximumf %7, %8 : vector<256x128xf32>
    %10 = arith.truncf %9 : vector<256x128xf32> to vector<256x128xbf16>
    %c0_9 = arith.constant 0 : index
    %c0_10 = arith.constant 0 : index
    %11 = vector.load %arg5[%c0_9, %c0_10] : memref<256x128xbf16, #tpu.memory_space<vmem>>, vector<256x128xbf16>
    tpu.vector_store %arg5[%c0_9, %c0_10], %10 {strides = array<i32>} : memref<256x128xbf16, #tpu.memory_space<vmem>>, vector<256x128xbf16>,
    %12 = vector.broadcast %1 : vector<1x128xf32> to vector<256x128xf32>
    %13 = arith.addf %5, %12 : vector<256x128xf32>
    %cst_11 = arith.constant 0.000000e+00 : f32
    %14 = vector.broadcast %cst_11 : f32 to vector<256x128xf32>
    %15 = arith.maximumf %13, %14 : vector<256x128xf32>
    %16 = arith.truncf %15 : vector<256x128xf32> to vector<256x128xbf16>
    %c0_12 = arith.constant 0 : index
    %c0_13 = arith.constant 0 : index
    %17 = vector.load %arg6[%c0_12, %c0_13] : memref<256x128xbf16, #tpu.memory_space<vmem>>, vector<256x128xbf16>
    tpu.vector_store %arg6[%c0_12, %c0_13], %16 {strides = array<i32>} : memref<256x128xbf16, #tpu.memory_space<vmem>>, vector<256x128xbf16>,
    return
  }
  func.func @transform_0(%arg0: i32) -> (i32, i32) {
    %c0_i32 = arith.constant 0 : i32
    %c0_i32_0 = arith.constant 0 : i32
    return %arg0, %c0_i32 : i32, i32
  }
  func.func @transform_1(%arg0: i32) -> (i32, i32) {
    %c0_i32 = arith.constant 0 : i32
    %c0_i32_0 = arith.constant 0 : i32
    return %arg0, %c0_i32 : i32, i32
  }
  func.func @transform_2(%arg0: i32) -> (i32, i32) {
    %c0_i32 = arith.constant 0 : i32
    %c0_i32_0 = arith.constant 0 : i32
    %c0_i32_1 = arith.constant 0 : i32
    return %c0_i32, %c0_i32_0 : i32, i32
  }
  func.func @transform_3(%arg0: i32) -> (i32, i32) {
    %c0_i32 = arith.constant 0 : i32
    %c0_i32_0 = arith.constant 0 : i32
    %c0_i32_1 = arith.constant 0 : i32
    return %c0_i32, %c0_i32_0 : i32, i32
  }
  func.func @transform_4(%arg0: i32) -> (i32, i32) {
    %c0_i32 = arith.constant 0 : i32
    %c0_i32_0 = arith.constant 0 : i32
    return %arg0, %c0_i32 : i32, i32
  }
  func.func @transform_5(%arg0: i32) -> (i32, i32) {
    %c0_i32 = arith.constant 0 : i32
    %c0_i32_0 = arith.constant 0 : i32
    return %arg0, %c0_i32 : i32, i32
  }
}

module attributes {stable_mosaic.version = 11 : i64} {
  func.func @_conv_pool_sqsum_kernel(%arg0: i32, %arg1: i32, %arg2: memref<4x64x640xbf16, #tpu.memory_space<vmem>>, %arg3: memref<4x64x640xbf16, #tpu.memory_space<vmem>>, %arg4: memref<640x128xbf16, #tpu.memory_space<vmem>>, %arg5: memref<1x128xf32, #tpu.memory_space<vmem>>, %arg6: memref<1x8x128xf32, #tpu.memory_space<vmem>>) attributes {dimension_semantics = [#tpu.dimension_semantics<parallel>, #tpu.dimension_semantics<arbitrary>], iteration_bounds = array<i64: 2, 1>, scalar_prefetch = 0 : i64, scratch_operands = 0 : i64, tpu.core_type = #tpu.core_type<tc>, window_params = [{transform_indices = @transform_0, window_bounds = array<i64: 4, 64, 640>}, {transform_indices = @transform_1, window_bounds = array<i64: 4, 64, 640>}, {pipeline_mode = #tpu.pipeline_mode<synchronous>, transform_indices = @transform_2, window_bounds = array<i64: 640, 128>}, {pipeline_mode = #tpu.pipeline_mode<synchronous>, transform_indices = @transform_3, window_bounds = array<i64: 1, 128>}, {transform_indices = @transform_4, window_bounds = array<i64: 1, 8, 128>}]} {
    %c0_i32 = arith.constant 0 : i32
    %0 = arith.cmpi eq, %arg1, %c0_i32 : i32
    %1 = arith.extui %0 : i1 to i32
    %c0_i32_0 = arith.constant 0 : i32
    %2 = arith.cmpi ne, %1, %c0_i32_0 : i32
    scf.if %2 {
      %cst_41 = arith.constant 0.000000e+00 : f32
      %51 = vector.broadcast %cst_41 : f32 to vector<1x8x128xf32>
      %c0_42 = arith.constant 0 : index
      %c0_43 = arith.constant 0 : index
      %c0_44 = arith.constant 0 : index
      %52 = vector.load %arg6[%c0_42, %c0_43, %c0_44] : memref<1x8x128xf32, #tpu.memory_space<vmem>>, vector<1x8x128xf32>
      tpu.vector_store %arg6[%c0_42, %c0_43, %c0_44], %51 {strides = array<i32>} : memref<1x8x128xf32, #tpu.memory_space<vmem>>, vector<1x8x128xf32>,
    } else {
    }
    %c0 = arith.constant 0 : index
    %c0_1 = arith.constant 0 : index
    %3 = vector.load %arg4[%c0, %c0_1] : memref<640x128xbf16, #tpu.memory_space<vmem>>, vector<640x128xbf16>
    %c0_2 = arith.constant 0 : index
    %c0_3 = arith.constant 0 : index
    %4 = vector.load %arg5[%c0_2, %c0_3] : memref<1x128xf32, #tpu.memory_space<vmem>>, vector<1x128xf32>
    %c0_4 = arith.constant 0 : index
    %c0_5 = arith.constant 0 : index
    %c0_6 = arith.constant 0 : index
    %5 = vector.load %arg2[%c0_4, %c0_5, %c0_6] : memref<4x64x640xbf16, #tpu.memory_space<vmem>>, vector<1x64x640xbf16>
    %6 = vector.shape_cast %5 : vector<1x64x640xbf16> to vector<64x640xbf16>
    %cst = arith.constant dense<0.000000e+00> : vector<64x128xf32>
    %7 = tpu.matmul %6, %3, %cst {dimension_numbers = #tpu.dot_dimension_numbers<[1], [0], [0], [1], [0, 0, 1, 1], [], []>} : vector<64x640xbf16>, vector<640x128xbf16>, vector<64x128xf32> -> vector<64x128xf32>
    %c1 = arith.constant 1 : index
    %c0_7 = arith.constant 0 : index
    %c0_8 = arith.constant 0 : index
    %8 = vector.load %arg2[%c1, %c0_7, %c0_8] : memref<4x64x640xbf16, #tpu.memory_space<vmem>>, vector<1x64x640xbf16>
    %9 = vector.shape_cast %8 : vector<1x64x640xbf16> to vector<64x640xbf16>
    %cst_9 = arith.constant dense<0.000000e+00> : vector<64x128xf32>
    %10 = tpu.matmul %9, %3, %cst_9 {dimension_numbers = #tpu.dot_dimension_numbers<[1], [0], [0], [1], [0, 0, 1, 1], [], []>} : vector<64x640xbf16>, vector<640x128xbf16>, vector<64x128xf32> -> vector<64x128xf32>
    %11 = arith.maximumf %7, %10 : vector<64x128xf32>
    %c2 = arith.constant 2 : index
    %c0_10 = arith.constant 0 : index
    %c0_11 = arith.constant 0 : index
    %12 = vector.load %arg2[%c2, %c0_10, %c0_11] : memref<4x64x640xbf16, #tpu.memory_space<vmem>>, vector<1x64x640xbf16>
    %13 = vector.shape_cast %12 : vector<1x64x640xbf16> to vector<64x640xbf16>
    %cst_12 = arith.constant dense<0.000000e+00> : vector<64x128xf32>
    %14 = tpu.matmul %13, %3, %cst_12 {dimension_numbers = #tpu.dot_dimension_numbers<[1], [0], [0], [1], [0, 0, 1, 1], [], []>} : vector<64x640xbf16>, vector<640x128xbf16>, vector<64x128xf32> -> vector<64x128xf32>
    %15 = arith.maximumf %11, %14 : vector<64x128xf32>
    %c3 = arith.constant 3 : index
    %c0_13 = arith.constant 0 : index
    %c0_14 = arith.constant 0 : index
    %16 = vector.load %arg2[%c3, %c0_13, %c0_14] : memref<4x64x640xbf16, #tpu.memory_space<vmem>>, vector<1x64x640xbf16>
    %17 = vector.shape_cast %16 : vector<1x64x640xbf16> to vector<64x640xbf16>
    %cst_15 = arith.constant dense<0.000000e+00> : vector<64x128xf32>
    %18 = tpu.matmul %17, %3, %cst_15 {dimension_numbers = #tpu.dot_dimension_numbers<[1], [0], [0], [1], [0, 0, 1, 1], [], []>} : vector<64x640xbf16>, vector<640x128xbf16>, vector<64x128xf32> -> vector<64x128xf32>
    %19 = arith.maximumf %15, %18 : vector<64x128xf32>
    %20 = vector.broadcast %4 : vector<1x128xf32> to vector<64x128xf32>
    %21 = arith.addf %19, %20 : vector<64x128xf32>
    %cst_16 = arith.constant 0.000000e+00 : f32
    %22 = vector.broadcast %cst_16 : f32 to vector<64x128xf32>
    %23 = arith.maximumf %21, %22 : vector<64x128xf32>
    %c0_17 = arith.constant 0 : index
    %c0_18 = arith.constant 0 : index
    %c0_19 = arith.constant 0 : index
    %24 = vector.load %arg3[%c0_17, %c0_18, %c0_19] : memref<4x64x640xbf16, #tpu.memory_space<vmem>>, vector<1x64x640xbf16>
    %25 = vector.shape_cast %24 : vector<1x64x640xbf16> to vector<64x640xbf16>
    %cst_20 = arith.constant dense<0.000000e+00> : vector<64x128xf32>
    %26 = tpu.matmul %25, %3, %cst_20 {dimension_numbers = #tpu.dot_dimension_numbers<[1], [0], [0], [1], [0, 0, 1, 1], [], []>} : vector<64x640xbf16>, vector<640x128xbf16>, vector<64x128xf32> -> vector<64x128xf32>
    %c1_21 = arith.constant 1 : index
    %c0_22 = arith.constant 0 : index
    %c0_23 = arith.constant 0 : index
    %27 = vector.load %arg3[%c1_21, %c0_22, %c0_23] : memref<4x64x640xbf16, #tpu.memory_space<vmem>>, vector<1x64x640xbf16>
    %28 = vector.shape_cast %27 : vector<1x64x640xbf16> to vector<64x640xbf16>
    %cst_24 = arith.constant dense<0.000000e+00> : vector<64x128xf32>
    %29 = tpu.matmul %28, %3, %cst_24 {dimension_numbers = #tpu.dot_dimension_numbers<[1], [0], [0], [1], [0, 0, 1, 1], [], []>} : vector<64x640xbf16>, vector<640x128xbf16>, vector<64x128xf32> -> vector<64x128xf32>
    %30 = arith.maximumf %26, %29 : vector<64x128xf32>
    %c2_25 = arith.constant 2 : index
    %c0_26 = arith.constant 0 : index
    %c0_27 = arith.constant 0 : index
    %31 = vector.load %arg3[%c2_25, %c0_26, %c0_27] : memref<4x64x640xbf16, #tpu.memory_space<vmem>>, vector<1x64x640xbf16>
    %32 = vector.shape_cast %31 : vector<1x64x640xbf16> to vector<64x640xbf16>
    %cst_28 = arith.constant dense<0.000000e+00> : vector<64x128xf32>
    %33 = tpu.matmul %32, %3, %cst_28 {dimension_numbers = #tpu.dot_dimension_numbers<[1], [0], [0], [1], [0, 0, 1, 1], [], []>} : vector<64x640xbf16>, vector<640x128xbf16>, vector<64x128xf32> -> vector<64x128xf32>
    %34 = arith.maximumf %30, %33 : vector<64x128xf32>
    %c3_29 = arith.constant 3 : index
    %c0_30 = arith.constant 0 : index
    %c0_31 = arith.constant 0 : index
    %35 = vector.load %arg3[%c3_29, %c0_30, %c0_31] : memref<4x64x640xbf16, #tpu.memory_space<vmem>>, vector<1x64x640xbf16>
    %36 = vector.shape_cast %35 : vector<1x64x640xbf16> to vector<64x640xbf16>
    %cst_32 = arith.constant dense<0.000000e+00> : vector<64x128xf32>
    %37 = tpu.matmul %36, %3, %cst_32 {dimension_numbers = #tpu.dot_dimension_numbers<[1], [0], [0], [1], [0, 0, 1, 1], [], []>} : vector<64x640xbf16>, vector<640x128xbf16>, vector<64x128xf32> -> vector<64x128xf32>
    %38 = arith.maximumf %34, %37 : vector<64x128xf32>
    %39 = vector.broadcast %4 : vector<1x128xf32> to vector<64x128xf32>
    %40 = arith.addf %38, %39 : vector<64x128xf32>
    %cst_33 = arith.constant 0.000000e+00 : f32
    %41 = vector.broadcast %cst_33 : f32 to vector<64x128xf32>
    %42 = arith.maximumf %40, %41 : vector<64x128xf32>
    %43 = arith.subf %23, %42 : vector<64x128xf32>
    %44 = arith.mulf %43, %43 : vector<64x128xf32>
    %45 = vector.shape_cast %44 : vector<64x128xf32> to vector<8x8x128xf32>
    %cst_34 = arith.constant dense<0.000000e+00> : vector<8x128xf32>
    %46 = vector.multi_reduction <add>, %45, %cst_34 [0] : vector<8x8x128xf32> to vector<8x128xf32>
    %c0_35 = arith.constant 0 : index
    %c0_36 = arith.constant 0 : index
    %c0_37 = arith.constant 0 : index
    %47 = vector.load %arg6[%c0_35, %c0_36, %c0_37] : memref<1x8x128xf32, #tpu.memory_space<vmem>>, vector<1x8x128xf32>
    %48 = vector.shape_cast %46 : vector<8x128xf32> to vector<1x8x128xf32>
    %49 = arith.addf %47, %48 : vector<1x8x128xf32>
    %c0_38 = arith.constant 0 : index
    %c0_39 = arith.constant 0 : index
    %c0_40 = arith.constant 0 : index
    %50 = vector.load %arg6[%c0_38, %c0_39, %c0_40] : memref<1x8x128xf32, #tpu.memory_space<vmem>>, vector<1x8x128xf32>
    tpu.vector_store %arg6[%c0_38, %c0_39, %c0_40], %49 {strides = array<i32>} : memref<1x8x128xf32, #tpu.memory_space<vmem>>, vector<1x8x128xf32>,
    return
  }
  func.func @transform_0(%arg0: i32, %arg1: i32) -> (i32, i32, i32) {
    %c1_i32 = arith.constant 1 : i32
    %0 = arith.muli %arg0, %c1_i32 : i32
    %1 = arith.addi %0, %arg1 : i32
    %c0_i32 = arith.constant 0 : i32
    %c0_i32_0 = arith.constant 0 : i32
    %c0_i32_1 = arith.constant 0 : i32
    return %c0_i32, %1, %c0_i32_0 : i32, i32, i32
  }
  func.func @transform_1(%arg0: i32, %arg1: i32) -> (i32, i32, i32) {
    %c1_i32 = arith.constant 1 : i32
    %0 = arith.muli %arg0, %c1_i32 : i32
    %1 = arith.addi %0, %arg1 : i32
    %c0_i32 = arith.constant 0 : i32
    %c0_i32_0 = arith.constant 0 : i32
    %c0_i32_1 = arith.constant 0 : i32
    return %c0_i32, %1, %c0_i32_0 : i32, i32, i32
  }
  func.func @transform_2(%arg0: i32, %arg1: i32) -> (i32, i32) {
    %c0_i32 = arith.constant 0 : i32
    %c0_i32_0 = arith.constant 0 : i32
    %c0_i32_1 = arith.constant 0 : i32
    return %c0_i32, %c0_i32_0 : i32, i32
  }
  func.func @transform_3(%arg0: i32, %arg1: i32) -> (i32, i32) {
    %c0_i32 = arith.constant 0 : i32
    %c0_i32_0 = arith.constant 0 : i32
    %c0_i32_1 = arith.constant 0 : i32
    return %c0_i32, %c0_i32_0 : i32, i32
  }
  func.func @transform_4(%arg0: i32, %arg1: i32) -> (i32, i32, i32) {
    %c0_i32 = arith.constant 0 : i32
    %c0_i32_0 = arith.constant 0 : i32
    %c0_i32_1 = arith.constant 0 : i32
    return %arg0, %c0_i32, %c0_i32_0 : i32, i32, i32
  }
}

module attributes {stable_mosaic.version = 11 : i64} {
  func.func @_abs_sq_sums_kernel(%arg0: i32, %arg1: i32, %arg2: memref<8x128xf32, #tpu.memory_space<vmem>>, %arg3: memref<8x128xf32, #tpu.memory_space<vmem>>, %arg4: memref<1x8x128xf32, #tpu.memory_space<vmem>>, %arg5: memref<1x8x128xf32, #tpu.memory_space<vmem>>) attributes {dimension_semantics = [#tpu.dimension_semantics<parallel>, #tpu.dimension_semantics<arbitrary>], iteration_bounds = array<i64: 2, 1>, scalar_prefetch = 0 : i64, scratch_operands = 0 : i64, tpu.core_type = #tpu.core_type<tc>, window_params = [{transform_indices = @transform_0, window_bounds = array<i64: 8, 128>}, {transform_indices = @transform_1, window_bounds = array<i64: 8, 128>}, {transform_indices = @transform_2, window_bounds = array<i64: 1, 8, 128>}, {transform_indices = @transform_3, window_bounds = array<i64: 1, 8, 128>}]} {
    %c0_i32 = arith.constant 0 : i32
    %0 = arith.cmpi eq, %arg1, %c0_i32 : i32
    %1 = arith.extui %0 : i1 to i32
    %c0_i32_0 = arith.constant 0 : i32
    %2 = arith.cmpi ne, %1, %c0_i32_0 : i32
    scf.if %2 {
      %cst_17 = arith.constant 0.000000e+00 : f32
      %20 = vector.broadcast %cst_17 : f32 to vector<1x8x128xf32>
      %c0_18 = arith.constant 0 : index
      %c0_19 = arith.constant 0 : index
      %c0_20 = arith.constant 0 : index
      %21 = vector.load %arg4[%c0_18, %c0_19, %c0_20] : memref<1x8x128xf32, #tpu.memory_space<vmem>>, vector<1x8x128xf32>
      tpu.vector_store %arg4[%c0_18, %c0_19, %c0_20], %20 {strides = array<i32>} : memref<1x8x128xf32, #tpu.memory_space<vmem>>, vector<1x8x128xf32>,
      %cst_21 = arith.constant 0.000000e+00 : f32
      %22 = vector.broadcast %cst_21 : f32 to vector<1x8x128xf32>
      %c0_22 = arith.constant 0 : index
      %c0_23 = arith.constant 0 : index
      %c0_24 = arith.constant 0 : index
      %23 = vector.load %arg5[%c0_22, %c0_23, %c0_24] : memref<1x8x128xf32, #tpu.memory_space<vmem>>, vector<1x8x128xf32>
      tpu.vector_store %arg5[%c0_22, %c0_23, %c0_24], %22 {strides = array<i32>} : memref<1x8x128xf32, #tpu.memory_space<vmem>>, vector<1x8x128xf32>,
    } else {
    }
    %c0 = arith.constant 0 : index
    %c0_1 = arith.constant 0 : index
    %3 = vector.load %arg2[%c0, %c0_1] : memref<8x128xf32, #tpu.memory_space<vmem>>, vector<8x128xf32>
    %c0_2 = arith.constant 0 : index
    %c0_3 = arith.constant 0 : index
    %4 = vector.load %arg3[%c0_2, %c0_3] : memref<8x128xf32, #tpu.memory_space<vmem>>, vector<8x128xf32>
    %5 = arith.subf %3, %4 : vector<8x128xf32>
    %6 = math.absf %5 : vector<8x128xf32>
    %7 = vector.shape_cast %6 : vector<8x128xf32> to vector<1x8x128xf32>
    %cst = arith.constant dense<0.000000e+00> : vector<8x128xf32>
    %8 = vector.multi_reduction <add>, %7, %cst [0] : vector<1x8x128xf32> to vector<8x128xf32>
    %9 = arith.mulf %5, %5 : vector<8x128xf32>
    %10 = vector.shape_cast %9 : vector<8x128xf32> to vector<1x8x128xf32>
    %cst_4 = arith.constant dense<0.000000e+00> : vector<8x128xf32>
    %11 = vector.multi_reduction <add>, %10, %cst_4 [0] : vector<1x8x128xf32> to vector<8x128xf32>
    %c0_5 = arith.constant 0 : index
    %c0_6 = arith.constant 0 : index
    %c0_7 = arith.constant 0 : index
    %12 = vector.load %arg4[%c0_5, %c0_6, %c0_7] : memref<1x8x128xf32, #tpu.memory_space<vmem>>, vector<1x8x128xf32>
    %13 = vector.shape_cast %8 : vector<8x128xf32> to vector<1x8x128xf32>
    %14 = arith.addf %12, %13 : vector<1x8x128xf32>
    %c0_8 = arith.constant 0 : index
    %c0_9 = arith.constant 0 : index
    %c0_10 = arith.constant 0 : index
    %15 = vector.load %arg4[%c0_8, %c0_9, %c0_10] : memref<1x8x128xf32, #tpu.memory_space<vmem>>, vector<1x8x128xf32>
    tpu.vector_store %arg4[%c0_8, %c0_9, %c0_10], %14 {strides = array<i32>} : memref<1x8x128xf32, #tpu.memory_space<vmem>>, vector<1x8x128xf32>,
    %c0_11 = arith.constant 0 : index
    %c0_12 = arith.constant 0 : index
    %c0_13 = arith.constant 0 : index
    %16 = vector.load %arg5[%c0_11, %c0_12, %c0_13] : memref<1x8x128xf32, #tpu.memory_space<vmem>>, vector<1x8x128xf32>
    %17 = vector.shape_cast %11 : vector<8x128xf32> to vector<1x8x128xf32>
    %18 = arith.addf %16, %17 : vector<1x8x128xf32>
    %c0_14 = arith.constant 0 : index
    %c0_15 = arith.constant 0 : index
    %c0_16 = arith.constant 0 : index
    %19 = vector.load %arg5[%c0_14, %c0_15, %c0_16] : memref<1x8x128xf32, #tpu.memory_space<vmem>>, vector<1x8x128xf32>
    tpu.vector_store %arg5[%c0_14, %c0_15, %c0_16], %18 {strides = array<i32>} : memref<1x8x128xf32, #tpu.memory_space<vmem>>, vector<1x8x128xf32>,
    return
  }
  func.func @transform_0(%arg0: i32, %arg1: i32) -> (i32, i32) {
    %c1_i32 = arith.constant 1 : i32
    %0 = arith.muli %arg0, %c1_i32 : i32
    %1 = arith.addi %0, %arg1 : i32
    %c0_i32 = arith.constant 0 : i32
    %c0_i32_0 = arith.constant 0 : i32
    return %1, %c0_i32 : i32, i32
  }
  func.func @transform_1(%arg0: i32, %arg1: i32) -> (i32, i32) {
    %c1_i32 = arith.constant 1 : i32
    %0 = arith.muli %arg0, %c1_i32 : i32
    %1 = arith.addi %0, %arg1 : i32
    %c0_i32 = arith.constant 0 : i32
    %c0_i32_0 = arith.constant 0 : i32
    return %1, %c0_i32 : i32, i32
  }
  func.func @transform_2(%arg0: i32, %arg1: i32) -> (i32, i32, i32) {
    %c0_i32 = arith.constant 0 : i32
    %c0_i32_0 = arith.constant 0 : i32
    %c0_i32_1 = arith.constant 0 : i32
    return %arg0, %c0_i32, %c0_i32_0 : i32, i32, i32
  }
  func.func @transform_3(%arg0: i32, %arg1: i32) -> (i32, i32, i32) {
    %c0_i32 = arith.constant 0 : i32
    %c0_i32_0 = arith.constant 0 : i32
    %c0_i32_1 = arith.constant 0 : i32
    return %arg0, %c0_i32, %c0_i32_0 : i32, i32, i32
  }
}

</mosaic_0001>

<bundles_post_ra>
// kernel: combination_loss.4
= control target key start
LH: loop header
LB: loop body
LE: loop exit
PB: predicated region body
PF: predicated region fallthrough
CT: control target
= control target key end

     0   :  { %s2005_s18 = smov 0   ;;  %s2213_s0 = inlined_call_operand.vmem [shape: bf16[512,32], index: 0, kind: input, shape index: {}]   ;;  %s2214_s1 = inlined_call_operand.vmem [shape: bf16[512,32], index: 1, kind: input, shape index: {}]   ;;  %s2215_s2 = inlined_call_operand.vmem [shape: bf16[32,128], index: 2, kind: input, shape index: {}]   ;;  %s2216_s3 = inlined_call_operand.vmem [shape: f32[1,128], index: 3, kind: input, shape index: {}]   ;;  %s2217_s4 = inlined_call_operand.vmem [shape: bf16[512,128], index: 4, kind: output, shape index: {0}]   ;;  %s2218_s5 = inlined_call_operand.vmem [shape: bf16[512,128], index: 5, kind: output, shape index: {1}]  }
   0x1 LB: > { %s1417_s19 = sadd.s32 4294967295, %s1973_s18   ;;  %p1421_p0 = scmp.ge.s32.totalorder %s1973_s18, 1  ;;  %s1973_s18 = sphi %s2005_s18, %s16_s18  }
   0x2   : > { %p202_p1 = scmp.lt.s32.totalorder %s1973_s18, 3 }
   0x4   : > { %p203_p2 = pnand %p1421_p0, %p202_p1 }
   0x5   : > { %v1933_v0 = vld [vmem:[%s2215_s2] sm:$0xff] (!%p203_p2)   ;;  %s1422_s22 = sshll.u32 (!%p203_p2), %s1417_s19, 5  ;;  %v1934_v1 = vld [vmem:[%s2215_s2 + $0x8] sm:$0xff] (!%p203_p2)   ;;  %vm432_vm0 = vcmask (!%p203_p2), 261120  }
   0x6   : > { %206 = sbr.rel (%p203_p2) target bundleno = 297 (0x129), region = 36  ;;  %p241_p3 = scmp.lt.s32.totalorder (!%p203_p2), %s1422_s22, 63  ;;  %1853 = vmatprep.subr.bf16.mxu0 (!%p203_p2), %v1933_v0  ;;  %1889 = vmatprep.subr.bf16.mxu1 (!%p203_p2), %v1933_v0  ;;  %v2100_v34 = vld [vmem:[%s2216_s3] ss:$0 sm:$0xff] (!%p203_p2) }
   0x7   : > { %1854 = vmatpush3.bf16.msra.mxu0 (!%p203_p2), %v1933_v0  ;;  %1890 = vmatpush3.bf16.msra.mxu1 (!%p203_p2), %v1933_v0 }
   0x8   : > { %1855 = vmatprep.subr.bf16.mxu0 (!%p203_p2), %v1934_v1  ;;  %1891 = vmatprep.subr.bf16.mxu1 (!%p203_p2), %v1934_v1 }
   0xb   : > { %1856 = vmatpush3.bf16.msra.mxu0 (!%p203_p2), %v1934_v1  ;;  %1892 = vmatpush3.bf16.msra.mxu1 (!%p203_p2), %v1934_v1 }
   0xd   : > { %s2220_s22 = smov (!%p241_p3, %s1422_s22), 63 }
   0xe   : > { %s2019_s25 = sshll.u32 %s2220_s22, 2 }
   0xf   : > { %s2025_s28 = scalar_lea.vmem %s2213_s0, %s2019_s25  ;;  %s2031_s6 = scalar_lea.vmem %s2214_s1, %s2019_s25 }
  0x10   : > { %v1935_v2 = vld [vmem:[%s2025_s28] sm:$0xff]   ;;  %v1937_v4 = vld [vmem:[%s2025_s28 + $0x8] sm:$0xff]   ;;  %v1939_v6 = vld [vmem:[%s2025_s28 + $0x10] sm:$0xff]   ;;  %s2114_s11 = scalar_lea.vmem %s2217_s4, %s2019_s25  ;;  %s2120_s14 = scalar_lea.vmem %s2218_s5, %s2019_s25 }
  0x11   : > { %v1936_v3 = vld [vmem:[%s2031_s6] sm:$0xff]   ;;  %1857 = vmatprep.mubr.msk.bf16.mxu0 %vm432_vm0, %v1935_v2  ;;  %v1938_v5 = vld [vmem:[%s2031_s6 + $0x8] sm:$0xff]   ;;  %v1940_v7 = vld [vmem:[%s2031_s6 + $0x10] sm:$0xff]  }
  0x12   : > { %1893 = vmatprep.mubr.msk.bf16.mxu1 %vm432_vm0, %v1936_v3  ;;  %1858 = vmatmul.mubr.msk.bf16.vlgmr.msra.gmra.mrb[0].mxu0 %vm432_vm0, %v1937_v4  ;;  %v1941_v8 = vld [vmem:[%s2025_s28 + $0x18] sm:$0xff]   ;;  %v1943_v10 = vld [vmem:[%s2025_s28 + $0x20] sm:$0xff]   ;;  %v1945_v12 = vld [vmem:[%s2025_s28 + $0x28] sm:$0xff]  }
  0x13   : > { %1894 = vmatmul.mubr.msk.bf16.vlgmr.msra.gmra.mrb[0].mxu1 %vm432_vm0, %v1938_v5  ;;  %1861 = vmatprep.mubr.msk.bf16.mxu0 %vm432_vm0, %v1939_v6  ;;  %v1942_v9 = vld [vmem:[%s2031_s6 + $0x18] sm:$0xff]   ;;  %v1944_v11 = vld [vmem:[%s2031_s6 + $0x20] sm:$0xff]   ;;  %v1946_v13 = vld [vmem:[%s2031_s6 + $0x28] sm:$0xff]  }
  0x14   : > { %1897 = vmatprep.mubr.msk.bf16.mxu1 %vm432_vm0, %v1940_v7  ;;  %v1947_v14 = vld [vmem:[%s2025_s28 + $0x30] sm:$0xff]   ;;  %v1949_v16 = vld [vmem:[%s2025_s28 + $0x38] sm:$0xff]   ;;  %v1951_v18 = vld [vmem:[%s2025_s28 + $0x40] sm:$0xff]  }
  0x15   : > { %v1948_v15 = vld [vmem:[%s2031_s6 + $0x30] sm:$0xff]   ;;  %v1950_v17 = vld [vmem:[%s2031_s6 + $0x38] sm:$0xff]   ;;  %v1952_v19 = vld [vmem:[%s2031_s6 + $0x40] sm:$0xff]  }
  0x16   : > { %v1953_v20 = vld [vmem:[%s2025_s28 + $0x48] sm:$0xff]   ;;  %v1955_v22 = vld [vmem:[%s2025_s28 + $0x50] sm:$0xff]   ;;  %v1957_v24 = vld [vmem:[%s2025_s28 + $0x58] sm:$0xff]  }
  0x17   : > { %v1954_v21 = vld [vmem:[%s2031_s6 + $0x48] sm:$0xff]   ;;  %v1956_v23 = vld [vmem:[%s2031_s6 + $0x50] sm:$0xff]   ;;  %v1958_v25 = vld [vmem:[%s2031_s6 + $0x58] sm:$0xff]  }
  0x18   : > { %v1959_v26 = vld [vmem:[%s2025_s28 + $0x60] sm:$0xff]   ;;  %v1961_v28 = vld [vmem:[%s2025_s28 + $0x68] sm:$0xff]   ;;  %v1963_v30 = vld [vmem:[%s2025_s28 + $0x70] sm:$0xff]  }
  0x19   : > { %v1960_v27 = vld [vmem:[%s2031_s6 + $0x60] sm:$0xff]   ;;  %v1962_v29 = vld [vmem:[%s2031_s6 + $0x68] sm:$0xff]   ;;  %v1964_v31 = vld [vmem:[%s2031_s6 + $0x70] sm:$0xff]  }
  0x1a   : > { %1862 = vmatmul.mubr.msk.bf16.gmra.mrb[4].mxu0 %vm432_vm0, %v1941_v8  ;;  %v1965_v32 = vld [vmem:[%s2025_s28 + $0x78] sm:$0xff]  }
  0x1b   : > { %1898 = vmatmul.mubr.msk.bf16.gmra.mrb[4].mxu1 %vm432_vm0, %v1942_v9  ;;  %1865 = vmatprep.mubr.msk.bf16.mxu0 %vm432_vm0, %v1943_v10  ;;  %v1966_v33 = vld [vmem:[%s2031_s6 + $0x78] sm:$0xff]  }
  0x1c   : > { %1901 = vmatprep.mubr.msk.bf16.mxu1 %vm432_vm0, %v1944_v11 }
  0x22   : > { %1866 = vmatmul.mubr.msk.bf16.gmra.mrb[8].mxu0 %vm432_vm0, %v1945_v12 }
  0x23   : > { %1902 = vmatmul.mubr.msk.bf16.gmra.mrb[8].mxu1 %vm432_vm0, %v1946_v13  ;;  %1869 = vmatprep.mubr.msk.bf16.mxu0 %vm432_vm0, %v1947_v14 }
  0x24   : > { %1905 = vmatprep.mubr.msk.bf16.mxu1 %vm432_vm0, %v1948_v15 }
  0x2a   : > { %1870 = vmatmul.mubr.msk.bf16.gmra.mrb[12].mxu0 %vm432_vm0, %v1949_v16 }
  0x2b   : > { %1906 = vmatmul.mubr.msk.bf16.gmra.mrb[12].mxu1 %vm432_vm0, %v1950_v17  ;;  %1873 = vmatprep.mubr.msk.bf16.mxu0 %vm432_vm0, %v1951_v18 }
  0x2c   : > { %1909 = vmatprep.mubr.msk.bf16.mxu1 %vm432_vm0, %v1952_v19 }
  0x32   : > { %1874 = vmatmul.mubr.msk.bf16.gmra.mrb[16].mxu0 %vm432_vm0, %v1953_v20 }
  0x33   : > { %1910 = vmatmul.mubr.msk.bf16.gmra.mrb[16].mxu1 %vm432_vm0, %v1954_v21  ;;  %1877 = vmatprep.mubr.msk.bf16.mxu0 %vm432_vm0, %v1955_v22 }
  0x34   : > { %1913 = vmatprep.mubr.msk.bf16.mxu1 %vm432_vm0, %v1956_v23 }
  0x3a   : > { %1878 = vmatmul.mubr.msk.bf16.gmra.mrb[20].mxu0 %vm432_vm0, %v1957_v24 }
  0x3b   : > { %1914 = vmatmul.mubr.msk.bf16.gmra.mrb[20].mxu1 %vm432_vm0, %v1958_v25  ;;  %1881 = vmatprep.mubr.msk.bf16.mxu0 %vm432_vm0, %v1959_v26 }
  0x3c   : > { %1917 = vmatprep.mubr.msk.bf16.mxu1 %vm432_vm0, %v1960_v27 }
  0x42   : > { %1882 = vmatmul.mubr.msk.bf16.gmra.mrb[24].mxu0 %vm432_vm0, %v1961_v28 }
  0x43   : > { %1918 = vmatmul.mubr.msk.bf16.gmra.mrb[24].mxu1 %vm432_vm0, %v1962_v29  ;;  %1885 = vmatprep.mubr.msk.bf16.mxu0 %vm432_vm0, %v1963_v30 }
  0x44   : > { %1921 = vmatprep.mubr.msk.bf16.mxu1 %vm432_vm0, %v1964_v31 }
  0x4a   : > { %1886 = vmatmul.mubr.msk.bf16.gmra.mrb[28].mxu0 %vm432_vm0, %v1965_v32 }
  0x4b   : > { %1922 = vmatmul.mubr.msk.bf16.gmra.mrb[28].mxu1 %vm432_vm0, %v1966_v33 }
  0xe5   : > { %v1859_v35 = vpop.f32.mrb[0].mxu0 }
  0xe6   : > { %v524_v36 = vadd.f32 %v1859_v35, %v2100_v34  ;;  %v1895_v37 = vpop.f32.mrb[0].mxu1  ;;  %v515_v38 = vpop.f32.mrb[1].mxu0 }
  0xe7   : > { %v1005_v39 = vadd.f32 %v1895_v37, %v2100_v34  ;;  %v516_v40 = vadd.f32 %v2100_v34, %v515_v38  ;;  %v996_v41 = vpop.f32.mrb[1].mxu1  ;;  %v1860_v42 = vpop.f32.mrb[2].mxu0 }
  0xe8   : > { %v997_v43 = vadd.f32 %v2100_v34, %v996_v41  ;;  %v527_v44 = vadd.f32 %v1860_v42, %v2100_v34  ;;  %v1896_v45 = vpop.f32.mrb[2].mxu1  ;;  %v518_v46 = vpop.f32.mrb[3].mxu0  ;;  %v644_v50 = vmax.f32 %v524_v36, 0.0 }
  0xe9   : > { %v1008_v47 = vadd.f32 %v1896_v45, %v2100_v34  ;;  %v519_v48 = vadd.f32 %v2100_v34, %v518_v46  ;;  %v999_v49 = vpop.f32.mrb[3].mxu1  ;;  %v1125_v53 = vmax.f32 %v1005_v39, 0.0  ;;  %v642_v54 = vmax.f32 %v516_v40, 0.0 }
  0xea   : > { %v645_v51 = vmax.f32 %v527_v44, 0.0  ;;  %v1000_v52 = vadd.f32 %v2100_v34, %v999_v49  ;;  %v1123_v57 = vmax.f32 %v997_v43, 0.0 }
  0xeb   : > { %v1126_v55 = vmax.f32 %v1008_v47, 0.0  ;;  %v643_v56 = vmax.f32 %v519_v48, 0.0 }
  0xec   : > { %v1635_v58 = vpack.c.bf16 %v645_v51, %v644_v50  ;;  %v1124_v59 = vmax.f32 %v1000_v52, 0.0 }
  0xed   : > { %v1715_v60 = vpack.c.bf16 %v1126_v55, %v1125_v53  ;;  %v1630_v61 = vpack.c.bf16 %v643_v56, %v642_v54  ;;  %v1863_v62 = vpop.f32.mrb[4].mxu0 }
  0xee   : > { %1787 = vst [vmem:[%s2114_s11 + $0x8] sm:$0xff] %v1635_v58   ;;  %v1710_v63 = vpack.c.bf16 %v1124_v59, %v1123_v57  ;;  %v540_v0 = vadd.f32 %v1863_v62, %v2100_v34  ;;  %v1899_v1 = vpop.f32.mrb[4].mxu1  ;;  %v531_v2 = vpop.f32.mrb[5].mxu0 }
  0xef   : > { %1802 = vst [vmem:[%s2120_s14 + $0x8] sm:$0xff] %v1715_v60   ;;  %1631 = vst [vmem:[%s2114_s11] sm:$0xff] %v1630_v61   ;;  %v1021_v3 = vadd.f32 %v1899_v1, %v2100_v34  ;;  %v532_v4 = vadd.f32 %v2100_v34, %v531_v2  ;;  %v1012_v5 = vpop.f32.mrb[5].mxu1  ;;  %v1864_v6 = vpop.f32.mrb[6].mxu0 }
  0xf0   : > { %1711 = vst [vmem:[%s2120_s14] sm:$0xff] %v1710_v63   ;;  %v1013_v7 = vadd.f32 %v2100_v34, %v1012_v5  ;;  %v543_v8 = vadd.f32 %v1864_v6, %v2100_v34  ;;  %v1900_v9 = vpop.f32.mrb[6].mxu1  ;;  %v534_v10 = vpop.f32.mrb[7].mxu0  ;;  %v648_v14 = vmax.f32 %v540_v0, 0.0 }
  0xf1   : > { %v1024_v11 = vadd.f32 %v1900_v9, %v2100_v34  ;;  %v535_v12 = vadd.f32 %v2100_v34, %v534_v10  ;;  %v1015_v13 = vpop.f32.mrb[7].mxu1  ;;  %v1129_v17 = vmax.f32 %v1021_v3, 0.0  ;;  %v646_v18 = vmax.f32 %v532_v4, 0.0 }
  0xf2   : > { %v649_v15 = vmax.f32 %v543_v8, 0.0  ;;  %v1016_v16 = vadd.f32 %v2100_v34, %v1015_v13  ;;  %v1127_v21 = vmax.f32 %v1013_v7, 0.0 }
  0xf3   : > { %v1130_v19 = vmax.f32 %v1024_v11, 0.0  ;;  %v647_v20 = vmax.f32 %v535_v12, 0.0 }
  0xf4   : > { %v1645_v22 = vpack.c.bf16 %v649_v15, %v648_v14  ;;  %v1128_v23 = vmax.f32 %v1016_v16, 0.0 }
  0xf5   : > { %v1725_v24 = vpack.c.bf16 %v1130_v19, %v1129_v17  ;;  %v1640_v25 = vpack.c.bf16 %v647_v20, %v646_v18  ;;  %v1867_v26 = vpop.f32.mrb[8].mxu0 }
  0xf6   : > { %1789 = vst [vmem:[%s2114_s11 + $0x18] sm:$0xff] %v1645_v22   ;;  %v1720_v27 = vpack.c.bf16 %v1128_v23, %v1127_v21  ;;  %v556_v28 = vadd.f32 %v1867_v26, %v2100_v34  ;;  %v1903_v29 = vpop.f32.mrb[8].mxu1  ;;  %v547_v30 = vpop.f32.mrb[9].mxu0 }
  0xf7   : > { %1804 = vst [vmem:[%s2120_s14 + $0x18] sm:$0xff] %v1725_v24   ;;  %1788 = vst [vmem:[%s2114_s11 + $0x10] sm:$0xff] %v1640_v25   ;;  %v1037_v31 = vadd.f32 %v1903_v29, %v2100_v34  ;;  %v548_v32 = vadd.f32 %v2100_v34, %v547_v30  ;;  %v1028_v33 = vpop.f32.mrb[9].mxu1  ;;  %v1868_v35 = vpop.f32.mrb[10].mxu0 }
  0xf8   : > { %1803 = vst [vmem:[%s2120_s14 + $0x10] sm:$0xff] %v1720_v27   ;;  %v1029_v36 = vadd.f32 %v2100_v34, %v1028_v33  ;;  %v559_v37 = vadd.f32 %v1868_v35, %v2100_v34  ;;  %v1904_v38 = vpop.f32.mrb[10].mxu1  ;;  %v550_v39 = vpop.f32.mrb[11].mxu0  ;;  %v652_v43 = vmax.f32 %v556_v28, 0.0 }
  0xf9   : > { %v1040_v40 = vadd.f32 %v1904_v38, %v2100_v34  ;;  %v551_v41 = vadd.f32 %v2100_v34, %v550_v39  ;;  %v1031_v42 = vpop.f32.mrb[11].mxu1  ;;  %v1133_v46 = vmax.f32 %v1037_v31, 0.0  ;;  %v650_v47 = vmax.f32 %v548_v32, 0.0 }
  0xfa   : > { %v653_v44 = vmax.f32 %v559_v37, 0.0  ;;  %v1032_v45 = vadd.f32 %v2100_v34, %v1031_v42  ;;  %v1131_v50 = vmax.f32 %v1029_v36, 0.0 }
  0xfb   : > { %v1134_v48 = vmax.f32 %v1040_v40, 0.0  ;;  %v651_v49 = vmax.f32 %v551_v41, 0.0 }
  0xfc   : > { %v1655_v51 = vpack.c.bf16 %v653_v44, %v652_v43  ;;  %v1132_v52 = vmax.f32 %v1032_v45, 0.0 }
  0xfd   : > { %v1735_v53 = vpack.c.bf16 %v1134_v48, %v1133_v46  ;;  %v1650_v54 = vpack.c.bf16 %v651_v49, %v650_v47  ;;  %v1871_v55 = vpop.f32.mrb[12].mxu0 }
  0xfe   : > { %1791 = vst [vmem:[%s2114_s11 + $0x28] sm:$0xff] %v1655_v51   ;;  %v1730_v56 = vpack.c.bf16 %v1132_v52, %v1131_v50  ;;  %v572_v57 = vadd.f32 %v1871_v55, %v2100_v34  ;;  %v1907_v58 = vpop.f32.mrb[12].mxu1  ;;  %v563_v59 = vpop.f32.mrb[13].mxu0 }
  0xff   : > { %1806 = vst [vmem:[%s2120_s14 + $0x28] sm:$0xff] %v1735_v53   ;;  %1790 = vst [vmem:[%s2114_s11 + $0x20] sm:$0xff] %v1650_v54   ;;  %v1053_v60 = vadd.f32 %v1907_v58, %v2100_v34  ;;  %v564_v61 = vadd.f32 %v2100_v34, %v563_v59  ;;  %v1044_v62 = vpop.f32.mrb[13].mxu1  ;;  %v1872_v63 = vpop.f32.mrb[14].mxu0 }
 0x100   : > { %1805 = vst [vmem:[%s2120_s14 + $0x20] sm:$0xff] %v1730_v56   ;;  %v1045_v0 = vadd.f32 %v2100_v34, %v1044_v62  ;;  %v575_v1 = vadd.f32 %v1872_v63, %v2100_v34  ;;  %v1908_v2 = vpop.f32.mrb[14].mxu1  ;;  %v566_v3 = vpop.f32.mrb[15].mxu0  ;;  %v656_v7 = vmax.f32 %v572_v57, 0.0 }
 0x101   : > { %v1056_v4 = vadd.f32 %v1908_v2, %v2100_v34  ;;  %v567_v5 = vadd.f32 %v2100_v34, %v566_v3  ;;  %v1047_v6 = vpop.f32.mrb[15].mxu1  ;;  %v1137_v10 = vmax.f32 %v1053_v60, 0.0  ;;  %v654_v11 = vmax.f32 %v564_v61, 0.0 }
 0x102   : > { %v657_v8 = vmax.f32 %v575_v1, 0.0  ;;  %v1048_v9 = vadd.f32 %v2100_v34, %v1047_v6  ;;  %v1135_v14 = vmax.f32 %v1045_v0, 0.0 }
 0x103   : > { %v1138_v12 = vmax.f32 %v1056_v4, 0.0  ;;  %v655_v13 = vmax.f32 %v567_v5, 0.0 }
 0x104   : > { %v1665_v15 = vpack.c.bf16 %v657_v8, %v656_v7  ;;  %v1136_v16 = vmax.f32 %v1048_v9, 0.0 }
 0x105   : > { %v1745_v17 = vpack.c.bf16 %v1138_v12, %v1137_v10  ;;  %v1660_v18 = vpack.c.bf16 %v655_v13, %v654_v11  ;;  %v1875_v19 = vpop.f32.mrb[16].mxu0 }
 0x106   : > { %1793 = vst [vmem:[%s2114_s11 + $0x38] sm:$0xff] %v1665_v15   ;;  %v1740_v20 = vpack.c.bf16 %v1136_v16, %v1135_v14  ;;  %v588_v21 = vadd.f32 %v1875_v19, %v2100_v34  ;;  %v1911_v22 = vpop.f32.mrb[16].mxu1  ;;  %v579_v23 = vpop.f32.mrb[17].mxu0 }
 0x107   : > { %1808 = vst [vmem:[%s2120_s14 + $0x38] sm:$0xff] %v1745_v17   ;;  %1792 = vst [vmem:[%s2114_s11 + $0x30] sm:$0xff] %v1660_v18   ;;  %v1069_v24 = vadd.f32 %v1911_v22, %v2100_v34  ;;  %v580_v25 = vadd.f32 %v2100_v34, %v579_v23  ;;  %v1060_v26 = vpop.f32.mrb[17].mxu1  ;;  %v1876_v27 = vpop.f32.mrb[18].mxu0 }
 0x108   : > { %1807 = vst [vmem:[%s2120_s14 + $0x30] sm:$0xff] %v1740_v20   ;;  %v1061_v28 = vadd.f32 %v2100_v34, %v1060_v26  ;;  %v591_v29 = vadd.f32 %v1876_v27, %v2100_v34  ;;  %v1912_v30 = vpop.f32.mrb[18].mxu1  ;;  %v582_v31 = vpop.f32.mrb[19].mxu0  ;;  %v660_v36 = vmax.f32 %v588_v21, 0.0 }
 0x109   : > { %v1072_v32 = vadd.f32 %v1912_v30, %v2100_v34  ;;  %v583_v33 = vadd.f32 %v2100_v34, %v582_v31  ;;  %v1063_v35 = vpop.f32.mrb[19].mxu1  ;;  %v1141_v39 = vmax.f32 %v1069_v24, 0.0  ;;  %v658_v40 = vmax.f32 %v580_v25, 0.0 }
 0x10a   : > { %v661_v37 = vmax.f32 %v591_v29, 0.0  ;;  %v1064_v38 = vadd.f32 %v2100_v34, %v1063_v35  ;;  %v1139_v43 = vmax.f32 %v1061_v28, 0.0 }
 0x10b   : > { %v1142_v41 = vmax.f32 %v1072_v32, 0.0  ;;  %v659_v42 = vmax.f32 %v583_v33, 0.0 }
 0x10c   : > { %v1675_v44 = vpack.c.bf16 %v661_v37, %v660_v36  ;;  %v1140_v45 = vmax.f32 %v1064_v38, 0.0 }
 0x10d   : > { %v1755_v46 = vpack.c.bf16 %v1142_v41, %v1141_v39  ;;  %v1670_v47 = vpack.c.bf16 %v659_v42, %v658_v40  ;;  %v1879_v48 = vpop.f32.mrb[20].mxu0 }
 0x10e   : > { %1795 = vst [vmem:[%s2114_s11 + $0x48] sm:$0xff] %v1675_v44   ;;  %v1750_v49 = vpack.c.bf16 %v1140_v45, %v1139_v43  ;;  %v604_v50 = vadd.f32 %v1879_v48, %v2100_v34  ;;  %v1915_v51 = vpop.f32.mrb[20].mxu1  ;;  %v595_v52 = vpop.f32.mrb[21].mxu0 }
 0x10f   : > { %1810 = vst [vmem:[%s2120_s14 + $0x48] sm:$0xff] %v1755_v46   ;;  %1794 = vst [vmem:[%s2114_s11 + $0x40] sm:$0xff] %v1670_v47   ;;  %v1085_v53 = vadd.f32 %v1915_v51, %v2100_v34  ;;  %v596_v54 = vadd.f32 %v2100_v34, %v595_v52  ;;  %v1076_v55 = vpop.f32.mrb[21].mxu1  ;;  %v1880_v56 = vpop.f32.mrb[22].mxu0 }
 0x110   : > { %1809 = vst [vmem:[%s2120_s14 + $0x40] sm:$0xff] %v1750_v49   ;;  %v1077_v57 = vadd.f32 %v2100_v34, %v1076_v55  ;;  %v607_v58 = vadd.f32 %v1880_v56, %v2100_v34  ;;  %v1916_v59 = vpop.f32.mrb[22].mxu1  ;;  %v598_v60 = vpop.f32.mrb[23].mxu0  ;;  %v664_v0 = vmax.f32 %v604_v50, 0.0 }
 0x111   : > { %v1088_v61 = vadd.f32 %v1916_v59, %v2100_v34  ;;  %v599_v62 = vadd.f32 %v2100_v34, %v598_v60  ;;  %v1079_v63 = vpop.f32.mrb[23].mxu1  ;;  %v1145_v3 = vmax.f32 %v1085_v53, 0.0  ;;  %v662_v4 = vmax.f32 %v596_v54, 0.0 }
 0x112   : > { %v665_v1 = vmax.f32 %v607_v58, 0.0  ;;  %v1080_v2 = vadd.f32 %v2100_v34, %v1079_v63  ;;  %v1143_v7 = vmax.f32 %v1077_v57, 0.0 }
 0x113   : > { %v1146_v5 = vmax.f32 %v1088_v61, 0.0  ;;  %v663_v6 = vmax.f32 %v599_v62, 0.0 }
 0x114   : > { %v1685_v8 = vpack.c.bf16 %v665_v1, %v664_v0  ;;  %v1144_v9 = vmax.f32 %v1080_v2, 0.0 }
 0x115   : > { %v1765_v10 = vpack.c.bf16 %v1146_v5, %v1145_v3  ;;  %v1680_v11 = vpack.c.bf16 %v663_v6, %v662_v4  ;;  %v1883_v12 = vpop.f32.mrb[24].mxu0 }
 0x116   : > { %1797 = vst [vmem:[%s2114_s11 + $0x58] sm:$0xff] %v1685_v8   ;;  %v1760_v13 = vpack.c.bf16 %v1144_v9, %v1143_v7  ;;  %v620_v14 = vadd.f32 %v1883_v12, %v2100_v34  ;;  %v1919_v15 = vpop.f32.mrb[24].mxu1  ;;  %v611_v16 = vpop.f32.mrb[25].mxu0 }
 0x117   : > { %1812 = vst [vmem:[%s2120_s14 + $0x58] sm:$0xff] %v1765_v10   ;;  %1796 = vst [vmem:[%s2114_s11 + $0x50] sm:$0xff] %v1680_v11   ;;  %v1101_v17 = vadd.f32 %v1919_v15, %v2100_v34  ;;  %v612_v18 = vadd.f32 %v2100_v34, %v611_v16  ;;  %v1092_v19 = vpop.f32.mrb[25].mxu1  ;;  %v1884_v20 = vpop.f32.mrb[26].mxu0 }
 0x118   : > { %1811 = vst [vmem:[%s2120_s14 + $0x50] sm:$0xff] %v1760_v13   ;;  %v1093_v21 = vadd.f32 %v2100_v34, %v1092_v19  ;;  %v623_v22 = vadd.f32 %v1884_v20, %v2100_v34  ;;  %v1920_v23 = vpop.f32.mrb[26].mxu1  ;;  %v614_v24 = vpop.f32.mrb[27].mxu0  ;;  %v668_v28 = vmax.f32 %v620_v14, 0.0 }
 0x119   : > { %v1104_v25 = vadd.f32 %v1920_v23, %v2100_v34  ;;  %v615_v26 = vadd.f32 %v2100_v34, %v614_v24  ;;  %v1095_v27 = vpop.f32.mrb[27].mxu1  ;;  %v1149_v31 = vmax.f32 %v1101_v17, 0.0  ;;  %v666_v32 = vmax.f32 %v612_v18, 0.0 }
 0x11a   : > { %v669_v29 = vmax.f32 %v623_v22, 0.0  ;;  %v1096_v30 = vadd.f32 %v2100_v34, %v1095_v27  ;;  %v1147_v36 = vmax.f32 %v1093_v21, 0.0 }
 0x11b   : > { %v1150_v33 = vmax.f32 %v1104_v25, 0.0  ;;  %v667_v35 = vmax.f32 %v615_v26, 0.0 }
 0x11c   : > { %v1695_v37 = vpack.c.bf16 %v669_v29, %v668_v28  ;;  %v1148_v38 = vmax.f32 %v1096_v30, 0.0 }
 0x11d   : > { %v1775_v39 = vpack.c.bf16 %v1150_v33, %v1149_v31  ;;  %v1690_v40 = vpack.c.bf16 %v667_v35, %v666_v32  ;;  %v1887_v41 = vpop.f32.mrb[28].mxu0 }
 0x11e   : > { %1799 = vst [vmem:[%s2114_s11 + $0x68] sm:$0xff] %v1695_v37   ;;  %v1770_v42 = vpack.c.bf16 %v1148_v38, %v1147_v36  ;;  %v636_v43 = vadd.f32 %v1887_v41, %v2100_v34  ;;  %v1923_v44 = vpop.f32.mrb[28].mxu1  ;;  %v627_v45 = vpop.f32.mrb[29].mxu0 }
 0x11f   : > { %1814 = vst [vmem:[%s2120_s14 + $0x68] sm:$0xff] %v1775_v39   ;;  %1798 = vst [vmem:[%s2114_s11 + $0x60] sm:$0xff] %v1690_v40   ;;  %v1117_v46 = vadd.f32 %v1923_v44, %v2100_v34  ;;  %v628_v47 = vadd.f32 %v2100_v34, %v627_v45  ;;  %v1108_v48 = vpop.f32.mrb[29].mxu1  ;;  %v1888_v49 = vpop.f32.mrb[30].mxu0 }
 0x120   : > { %1813 = vst [vmem:[%s2120_s14 + $0x60] sm:$0xff] %v1770_v42   ;;  %v1109_v50 = vadd.f32 %v2100_v34, %v1108_v48  ;;  %v639_v51 = vadd.f32 %v1888_v49, %v2100_v34  ;;  %v1924_v52 = vpop.f32.mrb[30].mxu1  ;;  %v630_v53 = vpop.f32.mrb[31].mxu0  ;;  %v672_v57 = vmax.f32 %v636_v43, 0.0 }
 0x121   : > { %v1120_v54 = vadd.f32 %v1924_v52, %v2100_v34  ;;  %v631_v55 = vadd.f32 %v2100_v34, %v630_v53  ;;  %v1111_v56 = vpop.f32.mrb[31].mxu1  ;;  %v1153_v60 = vmax.f32 %v1117_v46, 0.0  ;;  %v670_v61 = vmax.f32 %v628_v47, 0.0 }
 0x122   : > { %v673_v58 = vmax.f32 %v639_v51, 0.0  ;;  %v1112_v59 = vadd.f32 %v2100_v34, %v1111_v56  ;;  %v1151_v0 = vmax.f32 %v1109_v50, 0.0 }
 0x123   : > { %v1154_v62 = vmax.f32 %v1120_v54, 0.0  ;;  %v671_v63 = vmax.f32 %v631_v55, 0.0 }
 0x124   : > { %v1705_v1 = vpack.c.bf16 %v673_v58, %v672_v57  ;;  %v1152_v2 = vmax.f32 %v1112_v59, 0.0 }
 0x125   : > { %v1785_v3 = vpack.c.bf16 %v1154_v62, %v1153_v60  ;;  %v1700_v4 = vpack.c.bf16 %v671_v63, %v670_v61 }
 0x126   : > { %1801 = vst [vmem:[%s2114_s11 + $0x78] sm:$0xff] %v1705_v1   ;;  %v1780_v5 = vpack.c.bf16 %v1152_v2, %v1151_v0 }
 0x127   : > { %1816 = vst [vmem:[%s2120_s14 + $0x78] sm:$0xff] %v1785_v3   ;;  %1800 = vst [vmem:[%s2114_s11 + $0x70] sm:$0xff] %v1700_v4  }
 0x128   : > { %1815 = vst [vmem:[%s2120_s14 + $0x70] sm:$0xff] %v1780_v5  }
 0x129 PF: > { %s16_s18 = sadd.s32 1, %s1973_s18  }
 0x12a   : > { %p13_p4 = scmp.ge.s32.totalorder %s16_s18, 4  }
 0x12c   :  { %15 = sbr.rel (!%p13_p4) target bundleno = 1 (0x1), region = 81 }

// kernel: combination_loss.3
= control target key start
LH: loop header
LB: loop body
LE: loop exit
PB: predicated region body
PF: predicated region fallthrough
CT: control target
= control target key end

     0   :  { %s423_s12 = smov 0   ;;  %s425_s13 = smov 0   ;;  %s450_s0 = inlined_call_operand.vmem [shape: f32[16,128], index: 0, kind: input, shape index: {}]   ;;  %s451_s1 = inlined_call_operand.vmem [shape: f32[16,128], index: 1, kind: input, shape index: {}]   ;;  %s452_s2 = inlined_call_operand.vmem [shape: f32[2,8,128], index: 2, kind: output, shape index: {0}]   ;;  %s453_s3 = inlined_call_operand.vmem [shape: f32[2,8,128], index: 3, kind: output, shape index: {1}]  }
   0x1   :  { %s427_s14 = smov 0  }
   0x2 LB: > { %s26_s15 = sadd.s32 1, %s397_s13  ;;  %p347_p0 = scmp.ge.s32.totalorder %s401_s14, 1  ;;  %s401_s14 = sphi %s427_s14, %s14_s14   ;;  %s397_s13 = sphi %s425_s13, %s455_s13   ;;  %s393_s12 = sphi %s423_s12, %s454_s12  }
   0x3   : > { %p28_p1 = scmp.ge.s32.totalorder %s26_s15, 2  ;;  %p168_p2 = scmp.lt.s32.totalorder %s401_s14, 3 }
   0x5   : > { %s457_s15 = smov (%p28_p1, %s26_s15), 0  ;;  %p169_p3 = pnand %p347_p0, %p168_p2 }
   0x6   : > { %p201_p4 = scmp.lt.s32.totalorder (!%p169_p3), %s393_s12, 1 }
   0x7   : > { %172 = sbr.rel (%p169_p3) target bundleno = 24 (0x18), region = 28 }
   0xe   : > { %s459_s12 = smov (!%p201_p4, %s393_s12), 1 }
   0xf   : > { %s348_s16 = sshll.u32 %s459_s12, 3 }
  0x10   : > { %s204_s19 = scalar_lea.vmem %s450_s0, %s348_s16  ;;  %s210_s22 = scalar_lea.vmem %s451_s1, %s348_s16 }
  0x11   : > { %v226_v0 = vld [vmem:[%s204_s19] sm:$0xff]  ;;  %s215_s25 = scalar_lea.vmem %s452_s2, %s348_s16  ;;  %s219_s28 = scalar_lea.vmem %s453_s3, %s348_s16 }
  0x12   : > { %v227_v1 = vld [vmem:[%s210_s22] sm:$0xff] }
  0x13   : > { %v228_v2 = vsub.f32 %v226_v0, %v227_v1 }
  0x15   : > { %v229_v3 = vand.u32 2147483647, %v228_v2  ;;  %v231_v4 = vmul.f32 %v228_v2, %v228_v2 }
  0x17   : > { %235 = vst [vmem:[%s215_s25] sm:$0xff] %v229_v3  ;;  %238 = vst [vmem:[%s219_s28] sm:$0xff] %v231_v4 }
  0x18 PF: > { %s14_s14 = sadd.s32 1, %s401_s14   ;;  %s454_s12 = smov %s397_s13 }
  0x19   : > { %p11_p5 = scmp.ge.s32.totalorder %s14_s14, 4   ;;  %s455_s13 = smov %s457_s15 }
  0x1b   :  { %13 = sbr.rel (!%p11_p5) target bundleno = 2 (0x2), region = 77 }

// kernel: combination_loss.5
= control target key start
LH: loop header
LB: loop body
LE: loop exit
PB: predicated region body
PF: predicated region fallthrough
CT: control target
= control target key end

     0   :  { %s5648_s15 = smov 0   ;;  %s5650_s16 = smov 0   ;;  %s7454_s0 = inlined_call_operand.vmem [shape: bf16[4,128,640], index: 0, kind: input, shape index: {}]   ;;  %s7455_s1 = inlined_call_operand.vmem [shape: bf16[4,128,640], index: 1, kind: input, shape index: {}]   ;;  %s7456_s2 = inlined_call_operand.vmem [shape: bf16[640,128], index: 2, kind: input, shape index: {}]   ;;  %s7457_s3 = inlined_call_operand.vmem [shape: f32[1,128], index: 3, kind: input, shape index: {}]   ;;  %s7458_s4 = inlined_call_operand.vmem [shape: f32[2,8,128], index: 4, kind: output, shape index: {}]  }
   0x1   :  { %s5652_s17 = smov 0   ;;  %s5654_s18 = smov 0  }
   0x2   :  { %s5656_s19 = smov 0  }
   0x3 LB: > { %s26_s20 = sadd.s32 1, %s5617_s18  ;;  %p42_p1 = scmp.ne.s32.totalorder %s5609_s16, %s5605_s15  ;;  %s5621_s19 = sphi %s5656_s19, %s14_s19   ;;  %s5617_s18 = sphi %s5654_s18, %s7477_s18   ;;  %s5613_s17 = sphi %s5652_s17, %s7476_s17   ;;  %s5609_s16 = sphi %s5650_s16, %s7475_s16   ;;  %s5605_s15 = sphi %s5648_s15, %s7474_s15  }
   0x4   : > { %p28_p0 = scmp.ge.s32.totalorder %s26_s20, 2  ;;  %p43_p2 = scmp.eq.s32.totalorder %s5621_s19, 0 }
   0x5   : > { %s35_s23 = sadd.s32 1, %s5609_s16  ;;  %p3805_p5 = scmp.ge.s32.totalorder %s5621_s19, 2 }
   0x6   : > { %s7479_s20 = smov (%p28_p0, %s26_s20), 0  ;;  %p5679_p3 = por %p43_p2, %p42_p1 }
   0x7   : > { %s32_s22 = ssub.s32 %s5617_s18, %s7479_s20  ;;  %170 = sbr.rel (%p3805_p5) target bundleno = 130 (0x82), region = 24 }
   0x8   : > { %p33_p4 = scmp.eq.s32.totalorder %s32_s22, 0 }
   0xa   : > { %s5687_s24 = scalar_select %p33_p4, %s5609_s16, %s35_s23  }
   0xe   : > { %173 = sbr.rel (!%p5679_p3) target bundleno = 72 (0x48), region = 28  ;;  %s175_s25 = sand.u32 (%p5679_p3), 1, %s5609_s16  }
   0xf   : > { %s5218_s26 = smul.u32 (%p5679_p3), 160, %s5617_s18 }
  0x10   : > { %s5217_s27 = smul.u32 (%p5679_p3), 640, %s175_s25 }
  0x11   : > { %s5697_s30 = scalar_lea.vmem (%p5679_p3), %s7454_s0, %s5218_s26 }
  0x12   : > { %v197_v0 = vld [vmem:[%s5697_s30] sm:$0xff] (%p5679_p3)  ;;  %v199_v1 = vld [vmem:[%s5697_s30 + $0x8] sm:$0xff] (%p5679_p3)  ;;  %v201_v2 = vld [vmem:[%s5697_s30 + $0x14] sm:$0xff] (%p5679_p3)  ;;  %s5702_s5 = scalar_lea.vmem (%p5679_p3), [#allocation2], %s5217_s27 }
  0x13   : > { %198 = vst [vmem:[%s5702_s5] sm:$0xff] (%p5679_p3), %v197_v0  ;;  %200 = vst [vmem:[%s5702_s5 + $0x8] sm:$0xff] (%p5679_p3), %v199_v1  ;;  %v203_v3 = vld [vmem:[%s5697_s30 + $0x1c] sm:$0xff] (%p5679_p3)  ;;  %v205_v4 = vld [vmem:[%s5697_s30 + $0x28] sm:$0xff] (%p5679_p3) }
  0x14   : > { %202 = vst [vmem:[%s5702_s5 + $0x14] sm:$0xff] (%p5679_p3), %v201_v2  ;;  %v207_v5 = vld [vmem:[%s5697_s30 + $0x30] sm:$0xff] (%p5679_p3)  ;;  %204 = vst [vmem:[%s5702_s5 + $0x1c] sm:$0xff] (%p5679_p3), %v203_v3  ;;  %v209_v6 = vld [vmem:[%s5697_s30 + $0x3c] sm:$0xff] (%p5679_p3) }
  0x15   : > { %206 = vst [vmem:[%s5702_s5 + $0x28] sm:$0xff] %v205_v4  ;;  %208 = vst [vmem:[%s5702_s5 + $0x30] sm:$0xff] %v207_v5  ;;  %v211_v7 = vld [vmem:[%s5697_s30 + $0x44] sm:$0xff]  ;;  %v213_v8 = vld [vmem:[%s5697_s30 + $0x50] sm:$0xff] }
  0x16   : > { %210 = vst [vmem:[%s5702_s5 + $0x3c] sm:$0xff] %v209_v6  ;;  %212 = vst [vmem:[%s5702_s5 + $0x44] sm:$0xff] %v211_v7  ;;  %v215_v9 = vld [vmem:[%s5697_s30 + $0x58] sm:$0xff]  ;;  %v217_v10 = vld [vmem:[%s5697_s30 + $0x64] sm:$0xff] }
  0x17   : > { %214 = vst [vmem:[%s5702_s5 + $0x50] sm:$0xff] %v213_v8  ;;  %v219_v11 = vld [vmem:[%s5697_s30 + $0x6c] sm:$0xff]  ;;  %216 = vst [vmem:[%s5702_s5 + $0x58] sm:$0xff] %v215_v9  ;;  %v221_v12 = vld [vmem:[%s5697_s30 + $0x78] sm:$0xff] }
  0x18   : > { %218 = vst [vmem:[%s5702_s5 + $0x64] sm:$0xff] %v217_v10  ;;  %220 = vst [vmem:[%s5702_s5 + $0x6c] sm:$0xff] %v219_v11  ;;  %v223_v13 = vld [vmem:[%s5697_s30 + $0x80] sm:$0xff]  ;;  %v225_v14 = vld [vmem:[%s5697_s30 + $0x8c] sm:$0xff] }
  0x19   : > { %222 = vst [vmem:[%s5702_s5 + $0x78] sm:$0xff] %v221_v12  ;;  %224 = vst [vmem:[%s5702_s5 + $0x80] sm:$0xff] %v223_v13  ;;  %v227_v15 = vld [vmem:[%s5697_s30 + $0x94] sm:$0xff]  ;;  %v229_v16 = vld [vmem:[%s5697_s30 + $0x140] sm:$0xff] }
  0x1a   : > { %226 = vst [vmem:[%s5702_s5 + $0x8c] sm:$0xff] %v225_v14  ;;  %v231_v17 = vld [vmem:[%s5697_s30 + $0x148] sm:$0xff]  ;;  %228 = vst [vmem:[%s5702_s5 + $0x94] sm:$0xff] %v227_v15  ;;  %v233_v18 = vld [vmem:[%s5697_s30 + $0x154] sm:$0xff] }
  0x1b   : > { %230 = vst [vmem:[%s5702_s5 + $0xa0] sm:$0xff] %v229_v16  ;;  %232 = vst [vmem:[%s5702_s5 + $0xa8] sm:$0xff] %v231_v17  ;;  %v235_v19 = vld [vmem:[%s5697_s30 + $0x15c] sm:$0xff]  ;;  %v237_v20 = vld [vmem:[%s5697_s30 + $0x168] sm:$0xff] }
  0x1c   : > { %234 = vst [vmem:[%s5702_s5 + $0xb4] sm:$0xff] %v233_v18  ;;  %236 = vst [vmem:[%s5702_s5 + $0xbc] sm:$0xff] %v235_v19  ;;  %v239_v21 = vld [vmem:[%s5697_s30 + $0x170] sm:$0xff]  ;;  %v241_v22 = vld [vmem:[%s5697_s30 + $0x17c] sm:$0xff] }
  0x1d   : > { %238 = vst [vmem:[%s5702_s5 + $0xc8] sm:$0xff] %v237_v20  ;;  %v243_v23 = vld [vmem:[%s5697_s30 + $0x184] sm:$0xff]  ;;  %240 = vst [vmem:[%s5702_s5 + $0xd0] sm:$0xff] %v239_v21  ;;  %v245_v24 = vld [vmem:[%s5697_s30 + $0x190] sm:$0xff] }
  0x1e   : > { %242 = vst [vmem:[%s5702_s5 + $0xdc] sm:$0xff] %v241_v22  ;;  %244 = vst [vmem:[%s5702_s5 + $0xe4] sm:$0xff] %v243_v23  ;;  %v247_v25 = vld [vmem:[%s5697_s30 + $0x198] sm:$0xff]  ;;  %v249_v26 = vld [vmem:[%s5697_s30 + $0x1a4] sm:$0xff] }
  0x1f   : > { %246 = vst [vmem:[%s5702_s5 + $0xf0] sm:$0xff] %v245_v24  ;;  %248 = vst [vmem:[%s5702_s5 + $0xf8] sm:$0xff] %v247_v25  ;;  %v251_v27 = vld [vmem:[%s5697_s30 + $0x1ac] sm:$0xff]  ;;  %v253_v28 = vld [vmem:[%s5697_s30 + $0x1b8] sm:$0xff] }
  0x20   : > { %250 = vst [vmem:[%s5702_s5 + $0x104] sm:$0xff] %v249_v26  ;;  %v255_v29 = vld [vmem:[%s5697_s30 + $0x1c0] sm:$0xff]  ;;  %252 = vst [vmem:[%s5702_s5 + $0x10c] sm:$0xff] %v251_v27  ;;  %v257_v30 = vld [vmem:[%s5697_s30 + $0x1cc] sm:$0xff] }
  0x21   : > { %254 = vst [vmem:[%s5702_s5 + $0x118] sm:$0xff] %v253_v28  ;;  %256 = vst [vmem:[%s5702_s5 + $0x120] sm:$0xff] %v255_v29  ;;  %v259_v31 = vld [vmem:[%s5697_s30 + $0x1d4] sm:$0xff]  ;;  %v261_v32 = vld [vmem:[%s5697_s30 + $0x280] sm:$0xff] }
  0x22   : > { %258 = vst [vmem:[%s5702_s5 + $0x12c] sm:$0xff] %v257_v30  ;;  %260 = vst [vmem:[%s5702_s5 + $0x134] sm:$0xff] %v259_v31  ;;  %v263_v33 = vld [vmem:[%s5697_s30 + $0x288] sm:$0xff]  ;;  %v265_v34 = vld [vmem:[%s5697_s30 + $0x294] sm:$0xff] }
  0x23   : > { %262 = vst [vmem:[%s5702_s5 + $0x140] sm:$0xff] %v261_v32  ;;  %v267_v35 = vld [vmem:[%s5697_s30 + $0x29c] sm:$0xff]  ;;  %264 = vst [vmem:[%s5702_s5 + $0x148] sm:$0xff] %v263_v33  ;;  %v269_v36 = vld [vmem:[%s5697_s30 + $0x2a8] sm:$0xff] }
  0x24   : > { %266 = vst [vmem:[%s5702_s5 + $0x154] sm:$0xff] %v265_v34  ;;  %268 = vst [vmem:[%s5702_s5 + $0x15c] sm:$0xff] %v267_v35  ;;  %v271_v37 = vld [vmem:[%s5697_s30 + $0x2b0] sm:$0xff]  ;;  %v273_v38 = vld [vmem:[%s5697_s30 + $0x2bc] sm:$0xff] }
  0x25   : > { %270 = vst [vmem:[%s5702_s5 + $0x168] sm:$0xff] %v269_v36  ;;  %272 = vst [vmem:[%s5702_s5 + $0x170] sm:$0xff] %v271_v37  ;;  %v275_v39 = vld [vmem:[%s5697_s30 + $0x2c4] sm:$0xff]  ;;  %v277_v40 = vld [vmem:[%s5697_s30 + $0x2d0] sm:$0xff] }
  0x26   : > { %274 = vst [vmem:[%s5702_s5 + $0x17c] sm:$0xff] %v273_v38  ;;  %v279_v41 = vld [vmem:[%s5697_s30 + $0x2d8] sm:$0xff]  ;;  %276 = vst [vmem:[%s5702_s5 + $0x184] sm:$0xff] %v275_v39  ;;  %v281_v42 = vld [vmem:[%s5697_s30 + $0x2e4] sm:$0xff] }
  0x27   : > { %278 = vst [vmem:[%s5702_s5 + $0x190] sm:$0xff] %v277_v40  ;;  %280 = vst [vmem:[%s5702_s5 + $0x198] sm:$0xff] %v279_v41  ;;  %v283_v43 = vld [vmem:[%s5697_s30 + $0x2ec] sm:$0xff]  ;;  %v285_v44 = vld [vmem:[%s5697_s30 + $0x2f8] sm:$0xff] }
  0x28   : > { %282 = vst [vmem:[%s5702_s5 + $0x1a4] sm:$0xff] %v281_v42  ;;  %284 = vst [vmem:[%s5702_s5 + $0x1ac] sm:$0xff] %v283_v43  ;;  %v287_v45 = vld [vmem:[%s5697_s30 + $0x300] sm:$0xff]  ;;  %v289_v46 = vld [vmem:[%s5697_s30 + $0x30c] sm:$0xff] }
  0x29   : > { %286 = vst [vmem:[%s5702_s5 + $0x1b8] sm:$0xff] %v285_v44  ;;  %v291_v47 = vld [vmem:[%s5697_s30 + $0x314] sm:$0xff]  ;;  %288 = vst [vmem:[%s5702_s5 + $0x1c0] sm:$0xff] %v287_v45  ;;  %v293_v48 = vld [vmem:[%s5697_s30 + $0x3c0] sm:$0xff] }
  0x2a   : > { %290 = vst [vmem:[%s5702_s5 + $0x1cc] sm:$0xff] %v289_v46  ;;  %292 = vst [vmem:[%s5702_s5 + $0x1d4] sm:$0xff] %v291_v47  ;;  %v295_v49 = vld [vmem:[%s5697_s30 + $0x3c8] sm:$0xff]  ;;  %v297_v50 = vld [vmem:[%s5697_s30 + $0x3d4] sm:$0xff] }
  0x2b   : > { %294 = vst [vmem:[%s5702_s5 + $0x1e0] sm:$0xff] %v293_v48  ;;  %296 = vst [vmem:[%s5702_s5 + $0x1e8] sm:$0xff] %v295_v49  ;;  %v299_v51 = vld [vmem:[%s5697_s30 + $0x3dc] sm:$0xff]  ;;  %v301_v52 = vld [vmem:[%s5697_s30 + $0x3e8] sm:$0xff] }
  0x2c   : > { %298 = vst [vmem:[%s5702_s5 + $0x1f4] sm:$0xff] %v297_v50  ;;  %v303_v53 = vld [vmem:[%s5697_s30 + $0x3f0] sm:$0xff]  ;;  %300 = vst [vmem:[%s5702_s5 + $0x1fc] sm:$0xff] %v299_v51  ;;  %v305_v54 = vld [vmem:[%s5697_s30 + $0x3fc] sm:$0xff] }
  0x2d   : > { %302 = vst [vmem:[%s5702_s5 + $0x208] sm:$0xff] %v301_v52  ;;  %304 = vst [vmem:[%s5702_s5 + $0x210] sm:$0xff] %v303_v53  ;;  %v307_v55 = vld [vmem:[%s5697_s30 + $0x404] sm:$0xff]  ;;  %v309_v56 = vld [vmem:[%s5697_s30 + $0x410] sm:$0xff] }
  0x2e   : > { %306 = vst [vmem:[%s5702_s5 + $0x21c] sm:$0xff] %v305_v54  ;;  %308 = vst [vmem:[%s5702_s5 + $0x224] sm:$0xff] %v307_v55  ;;  %v311_v57 = vld [vmem:[%s5697_s30 + $0x418] sm:$0xff]  ;;  %v313_v58 = vld [vmem:[%s5697_s30 + $0x424] sm:$0xff] }
  0x2f   : > { %310 = vst [vmem:[%s5702_s5 + $0x230] sm:$0xff] %v309_v56  ;;  %v315_v59 = vld [vmem:[%s5697_s30 + $0x42c] sm:$0xff]  ;;  %312 = vst [vmem:[%s5702_s5 + $0x238] sm:$0xff] %v311_v57  ;;  %v317_v60 = vld [vmem:[%s5697_s30 + $0x438] sm:$0xff] }
  0x30   : > { %314 = vst [vmem:[%s5702_s5 + $0x244] sm:$0xff] %v313_v58  ;;  %316 = vst [vmem:[%s5702_s5 + $0x24c] sm:$0xff] %v315_v59  ;;  %v319_v61 = vld [vmem:[%s5697_s30 + $0x440] sm:$0xff]  ;;  %v321_v62 = vld [vmem:[%s5697_s30 + $0x44c] sm:$0xff] }
  0x31   : > { %318 = vst [vmem:[%s5702_s5 + $0x258] sm:$0xff] %v317_v60  ;;  %320 = vst [vmem:[%s5702_s5 + $0x260] sm:$0xff] %v319_v61  ;;  %v323_v63 = vld [vmem:[%s5697_s30 + $0x454] sm:$0xff]  ;;  %v3809_v0 = vld [vmem:[%s5697_s30 + $0x10] sm:$0xf] }
  0x32   : > { %322 = vst [vmem:[%s5702_s5 + $0x26c] sm:$0xff] %v321_v62  ;;  %v3811_v1 = vld [vmem:[%s5697_s30 + $0x24] sm:$0xf]  ;;  %324 = vst [vmem:[%s5702_s5 + $0x274] sm:$0xff] %v323_v63  ;;  %v3813_v2 = vld [vmem:[%s5697_s30 + $0x38] sm:$0xf] }
  0x33   : > { %3810 = vst [vmem:[%s5702_s5 + $0x10] sm:$0xf] %v3809_v0  ;;  %3812 = vst [vmem:[%s5702_s5 + $0x24] sm:$0xf] %v3811_v1  ;;  %v3815_v3 = vld [vmem:[%s5697_s30 + $0x4c] sm:$0xf] }
  0x34   : > { %v3817_v4 = vld [vmem:[%s5697_s30 + $0x60] sm:$0xf]  ;;  %3814 = vst [vmem:[%s5702_s5 + $0x38] sm:$0xf] %v3813_v2  ;;  %3816 = vst [vmem:[%s5702_s5 + $0x4c] sm:$0xf] %v3815_v3 }
  0x35   : > { %3818 = vst [vmem:[%s5702_s5 + $0x60] sm:$0xf] %v3817_v4  ;;  %v3819_v5 = vld [vmem:[%s5697_s30 + $0x74] sm:$0xf]  ;;  %v3821_v6 = vld [vmem:[%s5697_s30 + $0x88] sm:$0xf] }
  0x36   : > { %v3823_v7 = vld [vmem:[%s5697_s30 + $0x9c] sm:$0xf]  ;;  %3820 = vst [vmem:[%s5702_s5 + $0x74] sm:$0xf] %v3819_v5  ;;  %3822 = vst [vmem:[%s5702_s5 + $0x88] sm:$0xf] %v3821_v6 }
  0x37   : > { %3824 = vst [vmem:[%s5702_s5 + $0x9c] sm:$0xf] %v3823_v7  ;;  %v3825_v8 = vld [vmem:[%s5697_s30 + $0x150] sm:$0xf]  ;;  %v3827_v9 = vld [vmem:[%s5697_s30 + $0x164] sm:$0xf] }
  0x38   : > { %v3829_v10 = vld [vmem:[%s5697_s30 + $0x178] sm:$0xf]  ;;  %3826 = vst [vmem:[%s5702_s5 + $0xb0] sm:$0xf] %v3825_v8  ;;  %3828 = vst [vmem:[%s5702_s5 + $0xc4] sm:$0xf] %v3827_v9 }
  0x39   : > { %3830 = vst [vmem:[%s5702_s5 + $0xd8] sm:$0xf] %v3829_v10  ;;  %v3831_v11 = vld [vmem:[%s5697_s30 + $0x18c] sm:$0xf]  ;;  %v3833_v12 = vld [vmem:[%s5697_s30 + $0x1a0] sm:$0xf] }
  0x3a   : > { %v3835_v13 = vld [vmem:[%s5697_s30 + $0x1b4] sm:$0xf]  ;;  %3832 = vst [vmem:[%s5702_s5 + $0xec] sm:$0xf] %v3831_v11  ;;  %3834 = vst [vmem:[%s5702_s5 + $0x100] sm:$0xf] %v3833_v12 }
  0x3b   : > { %3836 = vst [vmem:[%s5702_s5 + $0x114] sm:$0xf] %v3835_v13  ;;  %v3837_v14 = vld [vmem:[%s5697_s30 + $0x1c8] sm:$0xf]  ;;  %v3839_v15 = vld [vmem:[%s5697_s30 + $0x1dc] sm:$0xf] }
  0x3c   : > { %v3841_v16 = vld [vmem:[%s5697_s30 + $0x290] sm:$0xf]  ;;  %3838 = vst [vmem:[%s5702_s5 + $0x128] sm:$0xf] %v3837_v14  ;;  %3840 = vst [vmem:[%s5702_s5 + $0x13c] sm:$0xf] %v3839_v15 }
  0x3d   : > { %3842 = vst [vmem:[%s5702_s5 + $0x150] sm:$0xf] %v3841_v16  ;;  %v3843_v17 = vld [vmem:[%s5697_s30 + $0x2a4] sm:$0xf]  ;;  %v3845_v18 = vld [vmem:[%s5697_s30 + $0x2b8] sm:$0xf] }
  0x3e   : > { %v3847_v19 = vld [vmem:[%s5697_s30 + $0x2cc] sm:$0xf]  ;;  %3844 = vst [vmem:[%s5702_s5 + $0x164] sm:$0xf] %v3843_v17  ;;  %3846 = vst [vmem:[%s5702_s5 + $0x178] sm:$0xf] %v3845_v18 }
  0x3f   : > { %3848 = vst [vmem:[%s5702_s5 + $0x18c] sm:$0xf] %v3847_v19  ;;  %v3849_v20 = vld [vmem:[%s5697_s30 + $0x2e0] sm:$0xf]  ;;  %v3851_v21 = vld [vmem:[%s5697_s30 + $0x2f4] sm:$0xf] }
  0x40   : > { %v3853_v22 = vld [vmem:[%s5697_s30 + $0x308] sm:$0xf]  ;;  %3850 = vst [vmem:[%s5702_s5 + $0x1a0] sm:$0xf] %v3849_v20  ;;  %3852 = vst [vmem:[%s5702_s5 + $0x1b4] sm:$0xf] %v3851_v21 }
  0x41   : > { %3854 = vst [vmem:[%s5702_s5 + $0x1c8] sm:$0xf] %v3853_v22  ;;  %v3855_v23 = vld [vmem:[%s5697_s30 + $0x31c] sm:$0xf]  ;;  %v3857_v24 = vld [vmem:[%s5697_s30 + $0x3d0] sm:$0xf] }
  0x42   : > { %v3859_v25 = vld [vmem:[%s5697_s30 + $0x3e4] sm:$0xf]  ;;  %3856 = vst [vmem:[%s5702_s5 + $0x1dc] sm:$0xf] %v3855_v23  ;;  %3858 = vst [vmem:[%s5702_s5 + $0x1f0] sm:$0xf] %v3857_v24 }
  0x43   : > { %3860 = vst [vmem:[%s5702_s5 + $0x204] sm:$0xf] %v3859_v25  ;;  %v3861_v26 = vld [vmem:[%s5697_s30 + $0x3f8] sm:$0xf]  ;;  %v3863_v27 = vld [vmem:[%s5697_s30 + $0x40c] sm:$0xf] }
  0x44   : > { %v3865_v28 = vld [vmem:[%s5697_s30 + $0x420] sm:$0xf]  ;;  %3862 = vst [vmem:[%s5702_s5 + $0x218] sm:$0xf] %v3861_v26  ;;  %3864 = vst [vmem:[%s5702_s5 + $0x22c] sm:$0xf] %v3863_v27 }
  0x45   : > { %3866 = vst [vmem:[%s5702_s5 + $0x240] sm:$0xf] %v3865_v28  ;;  %v3867_v29 = vld [vmem:[%s5697_s30 + $0x434] sm:$0xf]  ;;  %v3869_v30 = vld [vmem:[%s5697_s30 + $0x448] sm:$0xf] }
  0x46   : > { %v3871_v31 = vld [vmem:[%s5697_s30 + $0x45c] sm:$0xf]  ;;  %3868 = vst [vmem:[%s5702_s5 + $0x254] sm:$0xf] %v3867_v29  ;;  %3870 = vst [vmem:[%s5702_s5 + $0x268] sm:$0xf] %v3869_v30 }
  0x47   : > { %3872 = vst [vmem:[%s5702_s5 + $0x27c] sm:$0xf] %v3871_v31 }
  0x48 PF: > { %401 = sbr.rel (!%p5679_p3) target bundleno = 130 (0x82), region = 54  ;;  %s403_s6 = sand.u32 (%p5679_p3), 1, %s5609_s16  }
  0x49   : > { %s5220_s7 = smul.u32 (%p5679_p3), 160, %s5617_s18 }
  0x4a   : > { %s5219_s8 = smul.u32 (%p5679_p3), 640, %s403_s6 }
  0x4b   : > { %s5900_s11 = scalar_lea.vmem (%p5679_p3), %s7455_s1, %s5220_s7 }
  0x4c   : > { %v425_v32 = vld [vmem:[%s5900_s11] sm:$0xff] (%p5679_p3)  ;;  %v427_v33 = vld [vmem:[%s5900_s11 + $0x8] sm:$0xff] (%p5679_p3)  ;;  %v429_v34 = vld [vmem:[%s5900_s11 + $0x14] sm:$0xff] (%p5679_p3)  ;;  %s5905_s12 = scalar_lea.vmem (%p5679_p3), [#allocation3], %s5219_s8 }
  0x4d   : > { %426 = vst [vmem:[%s5905_s12] sm:$0xff] (%p5679_p3), %v425_v32  ;;  %428 = vst [vmem:[%s5905_s12 + $0x8] sm:$0xff] (%p5679_p3), %v427_v33  ;;  %v431_v35 = vld [vmem:[%s5900_s11 + $0x1c] sm:$0xff] (%p5679_p3)  ;;  %v433_v36 = vld [vmem:[%s5900_s11 + $0x28] sm:$0xff] (%p5679_p3) }
  0x4e   : > { %430 = vst [vmem:[%s5905_s12 + $0x14] sm:$0xff] (%p5679_p3), %v429_v34  ;;  %v435_v37 = vld [vmem:[%s5900_s11 + $0x30] sm:$0xff] (%p5679_p3)  ;;  %432 = vst [vmem:[%s5905_s12 + $0x1c] sm:$0xff] (%p5679_p3), %v431_v35  ;;  %v437_v38 = vld [vmem:[%s5900_s11 + $0x3c] sm:$0xff] (%p5679_p3) }
  0x4f   : > { %434 = vst [vmem:[%s5905_s12 + $0x28] sm:$0xff] %v433_v36  ;;  %436 = vst [vmem:[%s5905_s12 + $0x30] sm:$0xff] %v435_v37  ;;  %v439_v39 = vld [vmem:[%s5900_s11 + $0x44] sm:$0xff]  ;;  %v441_v40 = vld [vmem:[%s5900_s11 + $0x50] sm:$0xff] }
  0x50   : > { %438 = vst [vmem:[%s5905_s12 + $0x3c] sm:$0xff] %v437_v38  ;;  %440 = vst [vmem:[%s5905_s12 + $0x44] sm:$0xff] %v439_v39  ;;  %v443_v41 = vld [vmem:[%s5900_s11 + $0x58] sm:$0xff]  ;;  %v445_v42 = vld [vmem:[%s5900_s11 + $0x64] sm:$0xff] }
  0x51   : > { %442 = vst [vmem:[%s5905_s12 + $0x50] sm:$0xff] %v441_v40  ;;  %v447_v43 = vld [vmem:[%s5900_s11 + $0x6c] sm:$0xff]  ;;  %444 = vst [vmem:[%s5905_s12 + $0x58] sm:$0xff] %v443_v41  ;;  %v449_v44 = vld [vmem:[%s5900_s11 + $0x78] sm:$0xff] }
  0x52   : > { %446 = vst [vmem:[%s5905_s12 + $0x64] sm:$0xff] %v445_v42  ;;  %448 = vst [vmem:[%s5905_s12 + $0x6c] sm:$0xff] %v447_v43  ;;  %v451_v45 = vld [vmem:[%s5900_s11 + $0x80] sm:$0xff]  ;;  %v453_v46 = vld [vmem:[%s5900_s11 + $0x8c] sm:$0xff] }
  0x53   : > { %450 = vst [vmem:[%s5905_s12 + $0x78] sm:$0xff] %v449_v44  ;;  %452 = vst [vmem:[%s5905_s12 + $0x80] sm:$0xff] %v451_v45  ;;  %v455_v47 = vld [vmem:[%s5900_s11 + $0x94] sm:$0xff]  ;;  %v457_v48 = vld [vmem:[%s5900_s11 + $0x140] sm:$0xff] }
  0x54   : > { %454 = vst [vmem:[%s5905_s12 + $0x8c] sm:$0xff] %v453_v46  ;;  %v459_v49 = vld [vmem:[%s5900_s11 + $0x148] sm:$0xff]  ;;  %456 = vst [vmem:[%s5905_s12 + $0x94] sm:$0xff] %v455_v47  ;;  %v461_v50 = vld [vmem:[%s5900_s11 + $0x154] sm:$0xff] }
  0x55   : > { %458 = vst [vmem:[%s5905_s12 + $0xa0] sm:$0xff] %v457_v48  ;;  %460 = vst [vmem:[%s5905_s12 + $0xa8] sm:$0xff] %v459_v49  ;;  %v463_v51 = vld [vmem:[%s5900_s11 + $0x15c] sm:$0xff]  ;;  %v465_v52 = vld [vmem:[%s5900_s11 + $0x168] sm:$0xff] }
  0x56   : > { %462 = vst [vmem:[%s5905_s12 + $0xb4] sm:$0xff] %v461_v50  ;;  %464 = vst [vmem:[%s5905_s12 + $0xbc] sm:$0xff] %v463_v51  ;;  %v467_v53 = vld [vmem:[%s5900_s11 + $0x170] sm:$0xff]  ;;  %v469_v54 = vld [vmem:[%s5900_s11 + $0x17c] sm:$0xff] }
  0x57   : > { %466 = vst [vmem:[%s5905_s12 + $0xc8] sm:$0xff] %v465_v52  ;;  %v471_v55 = vld [vmem:[%s5900_s11 + $0x184] sm:$0xff]  ;;  %468 = vst [vmem:[%s5905_s12 + $0xd0] sm:$0xff] %v467_v53  ;;  %v473_v56 = vld [vmem:[%s5900_s11 + $0x190] sm:$0xff] }
  0x58   : > { %470 = vst [vmem:[%s5905_s12 + $0xdc] sm:$0xff] %v469_v54  ;;  %472 = vst [vmem:[%s5905_s12 + $0xe4] sm:$0xff] %v471_v55  ;;  %v475_v57 = vld [vmem:[%s5900_s11 + $0x198] sm:$0xff]  ;;  %v477_v58 = vld [vmem:[%s5900_s11 + $0x1a4] sm:$0xff] }
  0x59   : > { %474 = vst [vmem:[%s5905_s12 + $0xf0] sm:$0xff] %v473_v56  ;;  %476 = vst [vmem:[%s5905_s12 + $0xf8] sm:$0xff] %v475_v57  ;;  %v479_v59 = vld [vmem:[%s5900_s11 + $0x1ac] sm:$0xff]  ;;  %v481_v60 = vld [vmem:[%s5900_s11 + $0x1b8] sm:$0xff] }
  0x5a   : > { %478 = vst [vmem:[%s5905_s12 + $0x104] sm:$0xff] %v477_v58  ;;  %v483_v61 = vld [vmem:[%s5900_s11 + $0x1c0] sm:$0xff]  ;;  %480 = vst [vmem:[%s5905_s12 + $0x10c] sm:$0xff] %v479_v59  ;;  %v485_v62 = vld [vmem:[%s5900_s11 + $0x1cc] sm:$0xff] }
  0x5b   : > { %482 = vst [vmem:[%s5905_s12 + $0x118] sm:$0xff] %v481_v60  ;;  %484 = vst [vmem:[%s5905_s12 + $0x120] sm:$0xff] %v483_v61  ;;  %v487_v63 = vld [vmem:[%s5900_s11 + $0x1d4] sm:$0xff]  ;;  %v489_v0 = vld [vmem:[%s5900_s11 + $0x280] sm:$0xff] }
  0x5c   : > { %486 = vst [vmem:[%s5905_s12 + $0x12c] sm:$0xff] %v485_v62  ;;  %488 = vst [vmem:[%s5905_s12 + $0x134] sm:$0xff] %v487_v63  ;;  %v491_v1 = vld [vmem:[%s5900_s11 + $0x288] sm:$0xff]  ;;  %v493_v2 = vld [vmem:[%s5900_s11 + $0x294] sm:$0xff] }
  0x5d   : > { %490 = vst [vmem:[%s5905_s12 + $0x140] sm:$0xff] %v489_v0  ;;  %v495_v3 = vld [vmem:[%s5900_s11 + $0x29c] sm:$0xff]  ;;  %492 = vst [vmem:[%s5905_s12 + $0x148] sm:$0xff] %v491_v1  ;;  %v497_v4 = vld [vmem:[%s5900_s11 + $0x2a8] sm:$0xff] }
  0x5e   : > { %494 = vst [vmem:[%s5905_s12 + $0x154] sm:$0xff] %v493_v2  ;;  %496 = vst [vmem:[%s5905_s12 + $0x15c] sm:$0xff] %v495_v3  ;;  %v499_v5 = vld [vmem:[%s5900_s11 + $0x2b0] sm:$0xff]  ;;  %v501_v6 = vld [vmem:[%s5900_s11 + $0x2bc] sm:$0xff] }
  0x5f   : > { %498 = vst [vmem:[%s5905_s12 + $0x168] sm:$0xff] %v497_v4  ;;  %500 = vst [vmem:[%s5905_s12 + $0x170] sm:$0xff] %v499_v5  ;;  %v503_v7 = vld [vmem:[%s5900_s11 + $0x2c4] sm:$0xff]  ;;  %v505_v8 = vld [vmem:[%s5900_s11 + $0x2d0] sm:$0xff] }
  0x60   : > { %502 = vst [vmem:[%s5905_s12 + $0x17c] sm:$0xff] %v501_v6  ;;  %v507_v9 = vld [vmem:[%s5900_s11 + $0x2d8] sm:$0xff]  ;;  %504 = vst [vmem:[%s5905_s12 + $0x184] sm:$0xff] %v503_v7  ;;  %v509_v10 = vld [vmem:[%s5900_s11 + $0x2e4] sm:$0xff] }
  0x61   : > { %506 = vst [vmem:[%s5905_s12 + $0x190] sm:$0xff] %v505_v8  ;;  %508 = vst [vmem:[%s5905_s12 + $0x198] sm:$0xff] %v507_v9  ;;  %v511_v11 = vld [vmem:[%s5900_s11 + $0x2ec] sm:$0xff]  ;;  %v513_v12 = vld [vmem:[%s5900_s11 + $0x2f8] sm:$0xff] }
  0x62   : > { %510 = vst [vmem:[%s5905_s12 + $0x1a4] sm:$0xff] %v509_v10  ;;  %512 = vst [vmem:[%s5905_s12 + $0x1ac] sm:$0xff] %v511_v11  ;;  %v515_v13 = vld [vmem:[%s5900_s11 + $0x300] sm:$0xff]  ;;  %v517_v14 = vld [vmem:[%s5900_s11 + $0x30c] sm:$0xff] }
  0x63   : > { %514 = vst [vmem:[%s5905_s12 + $0x1b8] sm:$0xff] %v513_v12  ;;  %v519_v15 = vld [vmem:[%s5900_s11 + $0x314] sm:$0xff]  ;;  %516 = vst [vmem:[%s5905_s12 + $0x1c0] sm:$0xff] %v515_v13  ;;  %v521_v16 = vld [vmem:[%s5900_s11 + $0x3c0] sm:$0xff] }
  0x64   : > { %518 = vst [vmem:[%s5905_s12 + $0x1cc] sm:$0xff] %v517_v14  ;;  %520 = vst [vmem:[%s5905_s12 + $0x1d4] sm:$0xff] %v519_v15  ;;  %v523_v17 = vld [vmem:[%s5900_s11 + $0x3c8] sm:$0xff]  ;;  %v525_v18 = vld [vmem:[%s5900_s11 + $0x3d4] sm:$0xff] }
  0x65   : > { %522 = vst [vmem:[%s5905_s12 + $0x1e0] sm:$0xff] %v521_v16  ;;  %524 = vst [vmem:[%s5905_s12 + $0x1e8] sm:$0xff] %v523_v17  ;;  %v527_v19 = vld [vmem:[%s5900_s11 + $0x3dc] sm:$0xff]  ;;  %v529_v20 = vld [vmem:[%s5900_s11 + $0x3e8] sm:$0xff] }
  0x66   : > { %526 = vst [vmem:[%s5905_s12 + $0x1f4] sm:$0xff] %v525_v18  ;;  %v531_v21 = vld [vmem:[%s5900_s11 + $0x3f0] sm:$0xff]  ;;  %528 = vst [vmem:[%s5905_s12 + $0x1fc] sm:$0xff] %v527_v19  ;;  %v533_v22 = vld [vmem:[%s5900_s11 + $0x3fc] sm:$0xff] }
  0x67   : > { %530 = vst [vmem:[%s5905_s12 + $0x208] sm:$0xff] %v529_v20  ;;  %532 = vst [vmem:[%s5905_s12 + $0x210] sm:$0xff] %v531_v21  ;;  %v535_v23 = vld [vmem:[%s5900_s11 + $0x404] sm:$0xff]  ;;  %v537_v24 = vld [vmem:[%s5900_s11 + $0x410] sm:$0xff] }
  0x68   : > { %534 = vst [vmem:[%s5905_s12 + $0x21c] sm:$0xff] %v533_v22  ;;  %536 = vst [vmem:[%s5905_s12 + $0x224] sm:$0xff] %v535_v23  ;;  %v539_v25 = vld [vmem:[%s5900_s11 + $0x418] sm:$0xff]  ;;  %v541_v26 = vld [vmem:[%s5900_s11 + $0x424] sm:$0xff] }
  0x69   : > { %538 = vst [vmem:[%s5905_s12 + $0x230] sm:$0xff] %v537_v24  ;;  %v543_v27 = vld [vmem:[%s5900_s11 + $0x42c] sm:$0xff]  ;;  %540 = vst [vmem:[%s5905_s12 + $0x238] sm:$0xff] %v539_v25  ;;  %v545_v28 = vld [vmem:[%s5900_s11 + $0x438] sm:$0xff] }
  0x6a   : > { %542 = vst [vmem:[%s5905_s12 + $0x244] sm:$0xff] %v541_v26  ;;  %544 = vst [vmem:[%s5905_s12 + $0x24c] sm:$0xff] %v543_v27  ;;  %v547_v29 = vld [vmem:[%s5900_s11 + $0x440] sm:$0xff]  ;;  %v549_v30 = vld [vmem:[%s5900_s11 + $0x44c] sm:$0xff] }
  0x6b   : > { %546 = vst [vmem:[%s5905_s12 + $0x258] sm:$0xff] %v545_v28  ;;  %548 = vst [vmem:[%s5905_s12 + $0x260] sm:$0xff] %v547_v29  ;;  %v551_v31 = vld [vmem:[%s5900_s11 + $0x454] sm:$0xff]  ;;  %v3876_v32 = vld [vmem:[%s5900_s11 + $0x10] sm:$0xf] }
  0x6c   : > { %550 = vst [vmem:[%s5905_s12 + $0x26c] sm:$0xff] %v549_v30  ;;  %v3878_v33 = vld [vmem:[%s5900_s11 + $0x24] sm:$0xf]  ;;  %552 = vst [vmem:[%s5905_s12 + $0x274] sm:$0xff] %v551_v31  ;;  %v3880_v34 = vld [vmem:[%s5900_s11 + $0x38] sm:$0xf] }
  0x6d   : > { %3877 = vst [vmem:[%s5905_s12 + $0x10] sm:$0xf] %v3876_v32  ;;  %3879 = vst [vmem:[%s5905_s12 + $0x24] sm:$0xf] %v3878_v33  ;;  %v3882_v35 = vld [vmem:[%s5900_s11 + $0x4c] sm:$0xf] }
  0x6e   : > { %v3884_v36 = vld [vmem:[%s5900_s11 + $0x60] sm:$0xf]  ;;  %3881 = vst [vmem:[%s5905_s12 + $0x38] sm:$0xf] %v3880_v34  ;;  %3883 = vst [vmem:[%s5905_s12 + $0x4c] sm:$0xf] %v3882_v35 }
  0x6f   : > { %3885 = vst [vmem:[%s5905_s12 + $0x60] sm:$0xf] %v3884_v36  ;;  %v3886_v37 = vld [vmem:[%s5900_s11 + $0x74] sm:$0xf]  ;;  %v3888_v38 = vld [vmem:[%s5900_s11 + $0x88] sm:$0xf] }
  0x70   : > { %v3890_v39 = vld [vmem:[%s5900_s11 + $0x9c] sm:$0xf]  ;;  %3887 = vst [vmem:[%s5905_s12 + $0x74] sm:$0xf] %v3886_v37  ;;  %3889 = vst [vmem:[%s5905_s12 + $0x88] sm:$0xf] %v3888_v38 }
  0x71   : > { %3891 = vst [vmem:[%s5905_s12 + $0x9c] sm:$0xf] %v3890_v39  ;;  %v3892_v40 = vld [vmem:[%s5900_s11 + $0x150] sm:$0xf]  ;;  %v3894_v41 = vld [vmem:[%s5900_s11 + $0x164] sm:$0xf] }
  0x72   : > { %v3896_v42 = vld [vmem:[%s5900_s11 + $0x178] sm:$0xf]  ;;  %3893 = vst [vmem:[%s5905_s12 + $0xb0] sm:$0xf] %v3892_v40  ;;  %3895 = vst [vmem:[%s5905_s12 + $0xc4] sm:$0xf] %v3894_v41 }
  0x73   : > { %3897 = vst [vmem:[%s5905_s12 + $0xd8] sm:$0xf] %v3896_v42  ;;  %v3898_v43 = vld [vmem:[%s5900_s11 + $0x18c] sm:$0xf]  ;;  %v3900_v44 = vld [vmem:[%s5900_s11 + $0x1a0] sm:$0xf] }
  0x74   : > { %v3902_v45 = vld [vmem:[%s5900_s11 + $0x1b4] sm:$0xf]  ;;  %3899 = vst [vmem:[%s5905_s12 + $0xec] sm:$0xf] %v3898_v43  ;;  %3901 = vst [vmem:[%s5905_s12 + $0x100] sm:$0xf] %v3900_v44 }
  0x75   : > { %3903 = vst [vmem:[%s5905_s12 + $0x114] sm:$0xf] %v3902_v45  ;;  %v3904_v46 = vld [vmem:[%s5900_s11 + $0x1c8] sm:$0xf]  ;;  %v3906_v47 = vld [vmem:[%s5900_s11 + $0x1dc] sm:$0xf] }
  0x76   : > { %v3908_v48 = vld [vmem:[%s5900_s11 + $0x290] sm:$0xf]  ;;  %3905 = vst [vmem:[%s5905_s12 + $0x128] sm:$0xf] %v3904_v46  ;;  %3907 = vst [vmem:[%s5905_s12 + $0x13c] sm:$0xf] %v3906_v47 }
  0x77   : > { %3909 = vst [vmem:[%s5905_s12 + $0x150] sm:$0xf] %v3908_v48  ;;  %v3910_v49 = vld [vmem:[%s5900_s11 + $0x2a4] sm:$0xf]  ;;  %v3912_v50 = vld [vmem:[%s5900_s11 + $0x2b8] sm:$0xf] }
  0x78   : > { %v3914_v51 = vld [vmem:[%s5900_s11 + $0x2cc] sm:$0xf]  ;;  %3911 = vst [vmem:[%s5905_s12 + $0x164] sm:$0xf] %v3910_v49  ;;  %3913 = vst [vmem:[%s5905_s12 + $0x178] sm:$0xf] %v3912_v50 }
  0x79   : > { %3915 = vst [vmem:[%s5905_s12 + $0x18c] sm:$0xf] %v3914_v51  ;;  %v3916_v52 = vld [vmem:[%s5900_s11 + $0x2e0] sm:$0xf]  ;;  %v3918_v53 = vld [vmem:[%s5900_s11 + $0x2f4] sm:$0xf] }
  0x7a   : > { %v3920_v54 = vld [vmem:[%s5900_s11 + $0x308] sm:$0xf]  ;;  %3917 = vst [vmem:[%s5905_s12 + $0x1a0] sm:$0xf] %v3916_v52  ;;  %3919 = vst [vmem:[%s5905_s12 + $0x1b4] sm:$0xf] %v3918_v53 }
  0x7b   : > { %3921 = vst [vmem:[%s5905_s12 + $0x1c8] sm:$0xf] %v3920_v54  ;;  %v3922_v55 = vld [vmem:[%s5900_s11 + $0x31c] sm:$0xf]  ;;  %v3924_v56 = vld [vmem:[%s5900_s11 + $0x3d0] sm:$0xf] }
  0x7c   : > { %v3926_v57 = vld [vmem:[%s5900_s11 + $0x3e4] sm:$0xf]  ;;  %3923 = vst [vmem:[%s5905_s12 + $0x1dc] sm:$0xf] %v3922_v55  ;;  %3925 = vst [vmem:[%s5905_s12 + $0x1f0] sm:$0xf] %v3924_v56 }
  0x7d   : > { %3927 = vst [vmem:[%s5905_s12 + $0x204] sm:$0xf] %v3926_v57  ;;  %v3928_v58 = vld [vmem:[%s5900_s11 + $0x3f8] sm:$0xf]  ;;  %v3930_v59 = vld [vmem:[%s5900_s11 + $0x40c] sm:$0xf] }
  0x7e   : > { %v3932_v60 = vld [vmem:[%s5900_s11 + $0x420] sm:$0xf]  ;;  %3929 = vst [vmem:[%s5905_s12 + $0x218] sm:$0xf] %v3928_v58  ;;  %3931 = vst [vmem:[%s5905_s12 + $0x22c] sm:$0xf] %v3930_v59 }
  0x7f   : > { %3933 = vst [vmem:[%s5905_s12 + $0x240] sm:$0xf] %v3932_v60  ;;  %v3934_v61 = vld [vmem:[%s5900_s11 + $0x434] sm:$0xf]  ;;  %v3936_v62 = vld [vmem:[%s5900_s11 + $0x448] sm:$0xf] }
  0x80   : > { %v3938_v63 = vld [vmem:[%s5900_s11 + $0x45c] sm:$0xf]  ;;  %3935 = vst [vmem:[%s5905_s12 + $0x254] sm:$0xf] %v3934_v61  ;;  %3937 = vst [vmem:[%s5905_s12 + $0x268] sm:$0xf] %v3936_v62 }
  0x81   : > { %3939 = vst [vmem:[%s5905_s12 + $0x27c] sm:$0xf] %v3938_v63 }
  0x82 PF: > { %p3940_p6 = scmp.ge.s32.totalorder %s5621_s19, 1  ;;  %p628_p7 = scmp.lt.s32.totalorder %s5621_s19, 3 }
  0x84   : > { %p629_p8 = pnand %p3940_p6, %p628_p7 }
  0x85   : > { %v6101_v0 = vld [vmem:[%s7456_s2 + $0x40] sm:$0xff] (!%p629_p8)   ;;  %v6124_v4 = vld [vmem:[%s7456_s2 + $0x48] sm:$0xff] (!%p629_p8)   ;;  %v6148_v8 = vld [vmem:[%s7456_s2 + $0x50] sm:$0xff] (!%p629_p8)   ;;  %s635_s28 = sand.u32 (!%p629_p8), 1, %s5605_s15   ;;  %p674_p9 = scmp.lt.s32.totalorder (!%p629_p8), %s5613_s17, 1 }
  0x86   : > { %632 = sbr.rel (%p629_p8) target bundleno = 778 (0x30a), region = 80  ;;  %v6106_v1 = vld [vmem:[%s7456_s2 + $0xc0] sm:$0xff] (!%p629_p8)   ;;  %4289 = vmatprep.subr.bf16.mxu0 (!%p629_p8), %v6101_v0  ;;  %v6130_v5 = vld [vmem:[%s7456_s2 + $0xc8] sm:$0xff] (!%p629_p8)   ;;  %v6154_v9 = vld [vmem:[%s7456_s2 + $0xd0] sm:$0xff] (!%p629_p8)  }
  0x87   : > { %v6112_v2 = vld [vmem:[%s7456_s2] sm:$0xff] (!%p629_p8)   ;;  %4329 = vmatprep.subr.bf16.mxu1 (!%p629_p8), %v6106_v1  ;;  %v6136_v6 = vld [vmem:[%s7456_s2 + $0x8] sm:$0xff] (!%p629_p8)   ;;  %v6160_v10 = vld [vmem:[%s7456_s2 + $0x10] sm:$0xff] (!%p629_p8)   ;;  %s6253_s15 = smul.u32 (!%p629_p8), 640, %s635_s28 }
  0x88   : > { %v6118_v3 = vld [vmem:[%s7456_s2 + $0x80] sm:$0xff] (!%p629_p8)   ;;  %4290 = vmatpush3.bf16.msra.mxu0 (!%p629_p8), %v6112_v2  ;;  %v6142_v7 = vld [vmem:[%s7456_s2 + $0x88] sm:$0xff] (!%p629_p8)   ;;  %v6166_v11 = vld [vmem:[%s7456_s2 + $0x90] sm:$0xff] (!%p629_p8)  }
  0x89   : > { %4330 = vmatpush3.bf16.msra.mxu1 (!%p629_p8), %v6118_v3  ;;  %4291 = vmatprep.subr.bf16.mxu0 (!%p629_p8), %v6124_v4  ;;  %v6172_v12 = vld [vmem:[%s7456_s2 + $0x58] sm:$0xff] (!%p629_p8)   ;;  %v6196_v16 = vld [vmem:[%s7456_s2 + $0x60] sm:$0xff] (!%p629_p8)   ;;  %v6220_v20 = vld [vmem:[%s7456_s2 + $0x68] sm:$0xff] (!%p629_p8)   ;;  %s6293_s28 = scalar_lea.vmem (!%p629_p8), [#allocation2], %s6253_s15  ;;  %s6433_s26 = scalar_lea.vmem (!%p629_p8), [#allocation3], %s6253_s15 }
  0x8a   : > { %4331 = vmatprep.subr.bf16.mxu1 (!%p629_p8), %v6130_v5  ;;  %v6178_v13 = vld [vmem:[%s7456_s2 + $0xd8] sm:$0xff] (!%p629_p8)   ;;  %v6202_v17 = vld [vmem:[%s7456_s2 + $0xe0] sm:$0xff] (!%p629_p8)   ;;  %v6226_v21 = vld [vmem:[%s7456_s2 + $0xe8] sm:$0xff] (!%p629_p8)  }
  0x8b   : > { %v6184_v14 = vld [vmem:[%s7456_s2 + $0x18] sm:$0xff] (!%p629_p8)   ;;  %v6208_v18 = vld [vmem:[%s7456_s2 + $0x20] sm:$0xff] (!%p629_p8)   ;;  %v6232_v22 = vld [vmem:[%s7456_s2 + $0x28] sm:$0xff] (!%p629_p8)  }
  0x8c   : > { %4292 = vmatpush3.bf16.msra.mxu0 (!%p629_p8), %v6136_v6  ;;  %v6190_v15 = vld [vmem:[%s7456_s2 + $0x98] sm:$0xff] (!%p629_p8)   ;;  %v6214_v19 = vld [vmem:[%s7456_s2 + $0xa0] sm:$0xff] (!%p629_p8)   ;;  %v6239_v23 = vld [vmem:[%s7456_s2 + $0xa8] sm:$0xff] (!%p629_p8)  }
  0x8d   : > { %4332 = vmatpush3.bf16.msra.mxu1 %v6142_v7  ;;  %4293 = vmatprep.subr.bf16.mxu0 %v6148_v8  ;;  %v6245_v24 = vld [vmem:[%s7456_s2 + $0x70] sm:$0xff]   ;;  %v6271_v28 = vld [vmem:[%s7456_s2 + $0x78] sm:$0xff]   ;;  %v5300_v35 = vld [vmem:[%s6293_s28 + $0xc] ss:$20 sps:$4 sm:$0xff]   ;;  %s7481_s17 = smov (!%p674_p9, %s5613_s17), 1 }
  0x8e   : > { %4333 = vmatprep.subr.bf16.mxu1 %v6154_v9  ;;  %v6251_v25 = vld [vmem:[%s7456_s2 + $0xf0] sm:$0xff]   ;;  %v6277_v29 = vld [vmem:[%s7456_s2 + $0xf8] sm:$0xff]   ;;  %v6304_v36 = vld [vmem:[%s7456_s2 + $0x100] sm:$0xff]   ;;  %1230 = vmatprep.mubr.bf16.mxu1 %v5300_v35  ;;  %s3941_s29 = sshll.u32 %s7481_s17, 3 }
  0x8f   : > { %v6259_v26 = vld [vmem:[%s7456_s2 + $0x30] sm:$0xff]   ;;  %v6283_v30 = vld [vmem:[%s7456_s2 + $0x38] sm:$0xff]   ;;  %v6309_v37 = vld [vmem:[%s7456_s2 + $0x108] sm:$0xff]   ;;  %s677_s5 = scalar_lea.vmem %s7458_s4, %s3941_s29 }
  0x90   : > { %4294 = vmatpush3.bf16.msra.mxu0 %v6160_v10  ;;  %v6265_v27 = vld [vmem:[%s7456_s2 + $0xb0] sm:$0xff]   ;;  %v6289_v31 = vld [vmem:[%s7456_s2 + $0xb8] sm:$0xff]   ;;  %v5303_v38 = vld [vmem:[%s6293_s28 + $0x2c] ss:$20 sps:$4 sm:$0xff]  }
  0x91   : > { %4334 = vmatpush3.bf16.msra.mxu1 %v6166_v11  ;;  %4295 = vmatprep.subr.bf16.mxu0 %v6172_v12  ;;  %v5295_v32 = vld [vmem:[%s6293_s28] ss:$20 sps:$4 sm:$0xff]   ;;  %v5297_v33 = vld [vmem:[%s6293_s28 + $0x4] ss:$20 sps:$4 sm:$0xff]   ;;  %v5298_v34 = vld [vmem:[%s6293_s28 + $0x8] ss:$20 sps:$4 sm:$0xff]  }
  0x92   : > { %4335 = vmatprep.subr.bf16.mxu1 %v6178_v13  ;;  %1165 = vmatprep.mubr.bf16.mxu0 %v5297_v33  ;;  %v5305_v39 = vld [vmem:[%s6293_s28 + $0x34] ss:$20 sps:$4 sm:$0xff]   ;;  %v5308_v42 = vld [vmem:[%s6293_s28 + $0x30] ss:$20 sps:$4 sm:$0xff]   ;;  %v6333_v44 = vld [vmem:[%s7456_s2 + $0x118] sm:$0xff]  }
  0x93   : > { %v5307_v40 = vld [vmem:[%s6293_s28 + $0x28] ss:$20 sps:$4 sm:$0xff]   ;;  %v6322_v41 = vld [vmem:[%s7456_s2 + $0x110] sm:$0xff]   ;;  %v6343_v46 = vld [vmem:[%s7456_s2 + $0x120] sm:$0xff]  }
  0x94   : > { %4296 = vmatpush3.bf16.msra.mxu0 %v6184_v14  ;;  %v5311_v43 = vld [vmem:[%s6293_s28 + $0x54] ss:$20 sps:$4 sm:$0xff]   ;;  %v5313_v45 = vld [vmem:[%s6293_s28 + $0x5c] ss:$20 sps:$4 sm:$0xff]   ;;  %v5316_v48 = vld [vmem:[%s6293_s28 + $0x58] ss:$20 sps:$4 sm:$0xff]  }
  0x95   : > { %4336 = vmatpush3.bf16.msra.mxu1 %v6190_v15  ;;  %4297 = vmatprep.subr.bf16.mxu0 %v6196_v16  ;;  %v5315_v47 = vld [vmem:[%s6293_s28 + $0x50] ss:$20 sps:$4 sm:$0xff]   ;;  %v6355_v50 = vld [vmem:[%s7456_s2 + $0x128] sm:$0xff]   ;;  %v5324_v54 = vld [vmem:[%s6293_s28 + $0x80] ss:$20 sps:$4 sm:$0xff]  }
  0x96   : > { %4337 = vmatprep.subr.bf16.mxu1 %v6202_v17  ;;  %v5319_v49 = vld [vmem:[%s6293_s28 + $0x7c] ss:$20 sps:$4 sm:$0xff]   ;;  %v5321_v51 = vld [vmem:[%s6293_s28 + $0x84] ss:$20 sps:$4 sm:$0xff]   ;;  %v5329_v59 = vld [vmem:[%s6293_s28 + $0xa0] ss:$20 sps:$4 sm:$0xff]  }
  0x97   : > { %v5323_v52 = vld [vmem:[%s6293_s28 + $0x78] ss:$20 sps:$4 sm:$0xff]   ;;  %v6366_v53 = vld [vmem:[%s7456_s2 + $0x130] sm:$0xff]   ;;  %v5333_v62 = vld [vmem:[%s6293_s28 + $0x88] ss:$20 sps:$4 sm:$0xff]  }
  0x98   : > { %4298 = vmatpush3.bf16.msra.mxu0 %v6208_v18  ;;  %v5327_v55 = vld [vmem:[%s6293_s28 + $0x10] ss:$20 sps:$4 sm:$0xff]   ;;  %v6377_v56 = vld [vmem:[%s7456_s2 + $0x138] sm:$0xff]   ;;  %v5332_v60 = vld [vmem:[%s6293_s28 + $0x60] ss:$20 sps:$4 sm:$0xff]  }
  0x99   : > { %4338 = vmatpush3.bf16.msra.mxu1 %v6214_v19  ;;  %4299 = vmatprep.subr.bf16.mxu0 %v6220_v20  ;;  %v5331_v57 = vld [vmem:[%s6293_s28 + $0xa4] ss:$20 sps:$4 sm:$0xff]   ;;  %v5334_v61 = vld [vmem:[%s6293_s28 + $0xcc] ss:$20 sps:$4 sm:$0xff]   ;;  %v5336_v63 = vld [vmem:[%s6293_s28 + $0xc8] ss:$20 sps:$4 sm:$0xff]  }
  0x9a   : > { %4339 = vmatprep.subr.bf16.mxu1 %v6226_v21  ;;  %v5328_v58 = vld [vmem:[%s6293_s28 + $0x38] ss:$20 sps:$4 sm:$0xff]   ;;  %v5340_v35 = vld [vmem:[%s6293_s28 + $0x11c] ss:$20 sps:$4 sm:$0xff]  }
  0x9b   : > { %v5345_v33 = vld [vmem:[%s6293_s28 + $0xac] ss:$20 sps:$4 sm:$0xff]  }
  0x9c   : > { %4300 = vmatpush3.bf16.msra.mxu0 %v6232_v22 }
  0x9d   : > { %4340 = vmatpush3.bf16.msra.mxu1 %v6239_v23  ;;  %4301 = vmatprep.subr.bf16.mxu0 %v6245_v24 }
  0x9e   : > { %4341 = vmatprep.subr.bf16.mxu1 %v6251_v25 }
  0xa0   : > { %4302 = vmatpush3.bf16.msra.mxu0 %v6259_v26 }
  0xa1   : > { %4342 = vmatpush3.bf16.msra.mxu1 %v6265_v27  ;;  %4303 = vmatprep.subr.bf16.mxu0 %v6271_v28 }
  0xa2   : > { %4343 = vmatprep.subr.bf16.mxu1 %v6277_v29 }
  0xa4   : > { %4304 = vmatpush3.bf16.msra.mxu0 %v6283_v30 }
  0xa5   : > { %4344 = vmatpush3.bf16.msra.mxu1 %v6289_v31  ;;  %5025 = vmatprep.subr.bf16.mxu0 %v6304_v36 }
  0xa6   : > { %4381 = vmatprep.subr.bf16.mxu1 %v6101_v0 }
  0xa7   : > { %1166 = vmatmul.mubr.bf16.vlgmr.msra.gmra.mrb[0].mxu0 %v5295_v32  ;;  %v5337_v32 = vld [vmem:[%s6293_s28 + $0xf4] ss:$20 sps:$4 sm:$0xff]  }
  0xa8   : > { %1231 = vmatmul.mubr.bf16.vlgmr.msra.gmra.mrb[0].mxu1 %v5298_v34  ;;  %5026 = vmatpush3.bf16.msra.mxu0 %v6304_v36  ;;  %v5339_v34 = vld [vmem:[%s6293_s28 + $0xf0] ss:$20 sps:$4 sm:$0xff]  }
  0xa9   : > { %4382 = vmatpush3.bf16.msra.mxu1 %v6112_v2  ;;  %5027 = vmatprep.subr.bf16.mxu0 %v6309_v37 }
  0xaa   : > { %4383 = vmatprep.subr.bf16.mxu1 %v6124_v4  ;;  %1173 = vmatprep.mubr.bf16.mxu0 %v5303_v38  ;;  %v5342_v38 = vld [vmem:[%s6293_s28 + $0x118] ss:$20 sps:$4 sm:$0xff]  }
  0xab   : > { %1238 = vmatprep.mubr.bf16.mxu1 %v5305_v39  ;;  %v5346_v39 = vld [vmem:[%s6293_s28 + $0xb0] ss:$20 sps:$4 sm:$0xff]  }
  0xac   : > { %5028 = vmatpush3.bf16.msra.mxu0 %v6309_v37 }
  0xad   : > { %4384 = vmatpush3.bf16.msra.mxu1 %v6136_v6  ;;  %5029 = vmatprep.subr.bf16.mxu0 %v6322_v41 }
  0xae   : > { %4385 = vmatprep.subr.bf16.mxu1 %v6148_v8 }
  0xaf   : > { %1174 = vmatmul.mubr.bf16.gmra.mrb[4].mxu0 %v5307_v40  ;;  %v5343_v40 = vld [vmem:[%s6293_s28 + $0xa8] ss:$20 sps:$4 sm:$0xff]  }
  0xb0   : > { %1239 = vmatmul.mubr.bf16.gmra.mrb[4].mxu1 %v5308_v42  ;;  %1181 = vmatprep.mubr.bf16.mxu0 %v5311_v43  ;;  %v5347_v42 = vld [vmem:[%s6293_s28 + $0xd8] ss:$20 sps:$4 sm:$0xff]   ;;  %v5348_v43 = vld [vmem:[%s6293_s28 + $0xd4] ss:$20 sps:$4 sm:$0xff]  }
  0xb1   : > { %5030 = vmatpush3.bf16.msra.mxu0 %v6322_v41  ;;  %4386 = vmatpush3.bf16.msra.mxu1 %v6160_v10 }
  0xb2   : > { %5031 = vmatprep.subr.bf16.mxu0 %v6333_v44  ;;  %4387 = vmatprep.subr.bf16.mxu1 %v6172_v12 }
  0xb3   : > { %1246 = vmatprep.mubr.bf16.mxu1 %v5313_v45  ;;  %v5354_v45 = vld [vmem:[%s6293_s28 + $0x100] ss:$20 sps:$4 sm:$0xff]  }
  0xb5   : > { %5032 = vmatpush3.bf16.msra.mxu0 %v6333_v44  ;;  %4388 = vmatpush3.bf16.msra.mxu1 %v6184_v14 }
  0xb6   : > { %5033 = vmatprep.subr.bf16.mxu0 %v6343_v46  ;;  %4389 = vmatprep.subr.bf16.mxu1 %v6196_v16 }
  0xb7   : > { %1182 = vmatmul.mubr.bf16.gmra.mrb[8].mxu0 %v5315_v47  ;;  %v5350_v47 = vld [vmem:[%s6293_s28 + $0xd0] ss:$20 sps:$4 sm:$0xff]  }
  0xb8   : > { %1247 = vmatmul.mubr.bf16.gmra.mrb[8].mxu1 %v5316_v48  ;;  %1189 = vmatprep.mubr.bf16.mxu0 %v5319_v49  ;;  %v5355_v48 = vld [vmem:[%s6293_s28 + $0x128] ss:$20 sps:$4 sm:$0xff]  }
  0xb9   : > { %5034 = vmatpush3.bf16.msra.mxu0 %v6343_v46  ;;  %4390 = vmatpush3.bf16.msra.mxu1 %v6208_v18  ;;  %v5377_v49 = vld [vmem:[%s6293_s28 + $0x1bc] ss:$20 sps:$4 sm:$0xff]  }
  0xba   : > { %5035 = vmatprep.subr.bf16.mxu0 %v6355_v50  ;;  %4391 = vmatprep.subr.bf16.mxu1 %v6220_v20 }
  0xbb   : > { %1254 = vmatprep.mubr.bf16.mxu1 %v5321_v51  ;;  %v5379_v51 = vld [vmem:[%s6293_s28 + $0x1c4] ss:$20 sps:$4 sm:$0xff]  }
  0xbd   : > { %5036 = vmatpush3.bf16.msra.mxu0 %v6355_v50  ;;  %4392 = vmatpush3.bf16.msra.mxu1 %v6232_v22 }
  0xbe   : > { %5037 = vmatprep.subr.bf16.mxu0 %v6366_v53  ;;  %4393 = vmatprep.subr.bf16.mxu1 %v6245_v24 }
  0xbf   : > { %1190 = vmatmul.mubr.bf16.gmra.mrb[12].mxu0 %v5323_v52  ;;  %v6569_v52 = vld [vmem:[%s7456_s2 + $0x80] sm:$0xff]  }
  0xc0   : > { %1255 = vmatmul.mubr.bf16.gmra.mrb[12].mxu1 %v5324_v54  ;;  %5041 = vmatprep.mubr.bf16.mxu0 %v5327_v55  ;;  %v5389_v54 = vld [vmem:[%s6293_s28 + $0x1c8] ss:$20 sps:$4 sm:$0xff]  }
  0xc1   : > { %5038 = vmatpush3.bf16.msra.mxu0 %v6366_v53  ;;  %4394 = vmatpush3.bf16.msra.mxu1 %v6259_v26  ;;  %v5392_v55 = vld [vmem:[%s6293_s28 + $0x208] ss:$20 sps:$4 sm:$0xff]  }
  0xc2   : > { %5039 = vmatprep.subr.bf16.mxu0 %v6377_v56  ;;  %4395 = vmatprep.subr.bf16.mxu1 %v6271_v28 }
  0xc3   : > { %1489 = vmatprep.mubr.bf16.mxu1 %v5331_v57  ;;  %v6585_v57 = vld [vmem:[%s7456_s2 + $0x88] sm:$0xff]  }
  0xc5   : > { %5040 = vmatpush3.bf16.msra.mxu0 %v6377_v56  ;;  %4396 = vmatpush3.bf16.msra.mxu1 %v6283_v30 }
  0xc6   : > { %4421 = vmatprep.subr.bf16.mxu0 %v6106_v1  ;;  %5049 = vmatprep.subr.bf16.mxu1 %v6304_v36 }
  0xc8   : > { %5042 = vmatmul.mubr.bf16.vlgmr.msra.gmra.mrb[16].mxu0 %v5328_v58  ;;  %1490 = vmatmul.mubr.bf16.vlgmr.msra.gmra.mrb[16].mxu1 %v5329_v59  ;;  %v5393_v58 = vld [vmem:[%s6293_s28 + $0x234] ss:$20 sps:$4 sm:$0xff]   ;;  %v5401_v59 = vld [vmem:[%s6293_s28 + $0x1ec] ss:$20 sps:$4 sm:$0xff]  }
  0xc9   : > { %4422 = vmatpush3.bf16.msra.mxu0 %v6118_v3  ;;  %5050 = vmatpush3.bf16.msra.mxu1 %v6304_v36 }
  0xca   : > { %4423 = vmatprep.subr.bf16.mxu0 %v6130_v5  ;;  %5051 = vmatprep.subr.bf16.mxu1 %v6309_v37 }
  0xcb   : > { %5045 = vmatprep.mubr.bf16.mxu0 %v5332_v60  ;;  %1497 = vmatprep.mubr.bf16.mxu1 %v5334_v61  ;;  %v6601_v60 = vld [vmem:[%s7456_s2 + $0x90] sm:$0xff]  }
  0xcc   : > { %v5395_v61 = vld [vmem:[%s6293_s28 + $0x230] ss:$20 sps:$4 sm:$0xff]  }
  0xcd   : > { %4424 = vmatpush3.bf16.msra.mxu0 %v6142_v7  ;;  %5052 = vmatpush3.bf16.msra.mxu1 %v6309_v37 }
  0xce   : > { %4425 = vmatprep.subr.bf16.mxu0 %v6154_v9  ;;  %5053 = vmatprep.subr.bf16.mxu1 %v6322_v41 }
  0xd0   : > { %5046 = vmatmul.mubr.bf16.gmra.mrb[20].mxu0 %v5333_v62  ;;  %1498 = vmatmul.mubr.bf16.gmra.mrb[20].mxu1 %v5336_v63  ;;  %v6616_v62 = vld [vmem:[%s7456_s2 + $0x98] sm:$0xff]  }
  0xd1   : > { %4426 = vmatpush3.bf16.msra.mxu0 %v6166_v11  ;;  %5054 = vmatpush3.bf16.msra.mxu1 %v6322_v41  ;;  %v5396_v63 = vld [vmem:[%s6293_s28 + $0x25c] ss:$20 sps:$4 sm:$0xff]  }
  0xd2   : > { %4427 = vmatprep.subr.bf16.mxu0 %v6178_v13  ;;  %5055 = vmatprep.subr.bf16.mxu1 %v6333_v44 }
  0xd3   : > { %1505 = vmatprep.mubr.bf16.mxu1 %v5337_v32  ;;  %1554 = vmatprep.mubr.bf16.mxu0 %v5345_v33  ;;  %v6631_v32 = vld [vmem:[%s7456_s2 + $0xa0] sm:$0xff]   ;;  %v5398_v33 = vld [vmem:[%s6293_s28 + $0x258] ss:$20 sps:$4 sm:$0xff]  }
  0xd5   : > { %4428 = vmatpush3.bf16.msra.mxu0 %v6190_v15  ;;  %5056 = vmatpush3.bf16.msra.mxu1 %v6333_v44 }
  0xd6   : > { %4429 = vmatprep.subr.bf16.mxu0 %v6202_v17  ;;  %5057 = vmatprep.subr.bf16.mxu1 %v6343_v46 }
  0xd8   : > { %1506 = vmatmul.mubr.bf16.gmra.mrb[24].mxu1 %v5339_v34  ;;  %v6646_v34 = vld [vmem:[%s7456_s2 + $0xa8] sm:$0xff]  }
  0xd9   : > { %4430 = vmatpush3.bf16.msra.mxu0 %v6214_v19  ;;  %5058 = vmatpush3.bf16.msra.mxu1 %v6343_v46 }
  0xda   : > { %4431 = vmatprep.subr.bf16.mxu0 %v6226_v21  ;;  %5059 = vmatprep.subr.bf16.mxu1 %v6355_v50 }
  0xdb   : > { %1513 = vmatprep.mubr.bf16.mxu1 %v5340_v35  ;;  %v5402_v35 = vld [vmem:[%s6293_s28 + $0x1f0] ss:$20 sps:$4 sm:$0xff]  }
  0xdd   : > { %4432 = vmatpush3.bf16.msra.mxu0 %v6239_v23  ;;  %5060 = vmatpush3.bf16.msra.mxu1 %v6355_v50 }
  0xde   : > { %4433 = vmatprep.subr.bf16.mxu0 %v6251_v25  ;;  %5061 = vmatprep.subr.bf16.mxu1 %v6366_v53 }
  0xe0   : > { %1514 = vmatmul.mubr.bf16.gmra.mrb[28].mxu1 %v5342_v38  ;;  %v6661_v38 = vld [vmem:[%s7456_s2 + $0xb0] sm:$0xff]  }
  0xe1   : > { %4434 = vmatpush3.bf16.msra.mxu0 %v6265_v27  ;;  %5062 = vmatpush3.bf16.msra.mxu1 %v6366_v53 }
  0xe2   : > { %4435 = vmatprep.subr.bf16.mxu0 %v6277_v29  ;;  %5063 = vmatprep.subr.bf16.mxu1 %v6377_v56 }
  0xe3   : > { %5065 = vmatprep.mubr.bf16.mxu1 %v5346_v39  ;;  %v5399_v39 = vld [vmem:[%s6293_s28 + $0x1e8] ss:$20 sps:$4 sm:$0xff]  }
  0xe5   : > { %4436 = vmatpush3.bf16.msra.mxu0 %v6289_v31  ;;  %5064 = vmatpush3.bf16.msra.mxu1 %v6377_v56 }
  0xe6   : > { %4473 = vmatprep.subr.bf16.mxu0 %v6101_v0  ;;  %4513 = vmatprep.subr.bf16.mxu1 %v6106_v1  ;;  %v5351_v0 = vld [vmem:[%s6293_s28 + $0xfc] ss:$20 sps:$4 sm:$0xff]   ;;  %v5364_v1 = vld [vmem:[%s6293_s28 + $0x14c] ss:$20 sps:$4 sm:$0xff]  }
  0xe8   : > { %1555 = vmatmul.mubr.bf16.vlgmr.msra.gmra.mrb[24].mxu0 %v5343_v40  ;;  %5066 = vmatmul.mubr.bf16.vlgmr.msra.gmra.mrb[32].mxu1 %v5347_v42  ;;  %v5403_v40 = vld [vmem:[%s6293_s28 + $0x218] ss:$20 sps:$4 sm:$0xff]  }
  0xe9   : > { %4474 = vmatpush3.bf16.msra.mxu0 %v6112_v2  ;;  %4514 = vmatpush3.bf16.msra.mxu1 %v6118_v3  ;;  %v5353_v2 = vld [vmem:[%s6293_s28 + $0xf8] ss:$20 sps:$4 sm:$0xff]  }
  0xea   : > { %4475 = vmatprep.subr.bf16.mxu0 %v6124_v4  ;;  %4515 = vmatprep.subr.bf16.mxu1 %v6130_v5  ;;  %v5356_v3 = vld [vmem:[%s6293_s28 + $0x124] ss:$20 sps:$4 sm:$0xff]   ;;  %v5358_v4 = vld [vmem:[%s6293_s28 + $0x120] ss:$20 sps:$4 sm:$0xff]  }
  0xeb   : > { %1562 = vmatprep.mubr.bf16.mxu0 %v5348_v43  ;;  %5069 = vmatprep.mubr.bf16.mxu1 %v5354_v45  ;;  %v5361_v5 = vld [vmem:[%s6293_s28 + $0x144] ss:$20 sps:$4 sm:$0xff]   ;;  %v5410_v43 = vld [vmem:[%s6293_s28 + $0x240] ss:$20 sps:$4 sm:$0xff]   ;;  %v5411_v45 = vld [vmem:[%s6293_s28 + $0x268] ss:$20 sps:$4 sm:$0xff]  }
  0xec   : > { %v6677_v42 = vld [vmem:[%s7456_s2 + $0xb8] sm:$0xff]  }
  0xed   : > { %4476 = vmatpush3.bf16.msra.mxu0 %v6136_v6  ;;  %4516 = vmatpush3.bf16.msra.mxu1 %v6142_v7  ;;  %v5359_v6 = vld [vmem:[%s6293_s28 + $0x140] ss:$20 sps:$4 sm:$0xff]   ;;  %v5362_v7 = vld [vmem:[%s6293_s28 + $0x148] ss:$20 sps:$4 sm:$0xff]  }
  0xee   : > { %4477 = vmatprep.subr.bf16.mxu0 %v6148_v8  ;;  %4517 = vmatprep.subr.bf16.mxu1 %v6154_v9  ;;  %v6483_v8 = vld [vmem:[%s7456_s2 + $0x40] sm:$0xff]  }
  0xef   : > { %v5365_v9 = vld [vmem:[%s6293_s28 + $0x16c] ss:$20 sps:$4 sm:$0xff]  }
  0xf0   : > { %1563 = vmatmul.mubr.bf16.gmra.mrb[28].mxu0 %v5350_v47  ;;  %5070 = vmatmul.mubr.bf16.gmra.mrb[36].mxu1 %v5355_v48  ;;  %v5407_v47 = vld [vmem:[%s6293_s28 + $0x23c] ss:$20 sps:$4 sm:$0xff]   ;;  %v5420_v48 = vld [vmem:[%s6433_s26 + $0xc] ss:$20 sps:$4 sm:$0xff]  }
  0xf1   : > { %4478 = vmatpush3.bf16.msra.mxu0 %v6160_v10  ;;  %4518 = vmatpush3.bf16.msra.mxu1 %v6166_v11  ;;  %v5367_v10 = vld [vmem:[%s6293_s28 + $0x174] ss:$20 sps:$4 sm:$0xff]   ;;  %v6492_v11 = vld [vmem:[%s7456_s2] sm:$0xff]  }
  0xf2   : > { %4479 = vmatprep.subr.bf16.mxu0 %v6172_v12  ;;  %4519 = vmatprep.subr.bf16.mxu1 %v6178_v13  ;;  %v6499_v13 = vld [vmem:[%s7456_s2 + $0x48] sm:$0xff]  }
  0xf3   : > { %1570 = vmatprep.mubr.bf16.mxu0 %v5351_v0  ;;  %1886 = vmatprep.mubr.bf16.mxu1 %v5364_v1  ;;  %v6702_v0 = vld [vmem:[%s7456_s2 + $0x58] sm:$0xff]  }
  0xf4   : > { %v5409_v1 = vld [vmem:[%s6293_s28 + $0x238] ss:$20 sps:$4 sm:$0xff]  }
  0xf5   : > { %4480 = vmatpush3.bf16.msra.mxu0 %v6184_v14  ;;  %4520 = vmatpush3.bf16.msra.mxu1 %v6190_v15  ;;  %v5369_v15 = vld [vmem:[%s6293_s28 + $0x168] ss:$20 sps:$4 sm:$0xff]  }
  0xf6   : > { %4481 = vmatprep.subr.bf16.mxu0 %v6196_v16  ;;  %4521 = vmatprep.subr.bf16.mxu1 %v6202_v17  ;;  %v5370_v17 = vld [vmem:[%s6293_s28 + $0x170] ss:$20 sps:$4 sm:$0xff]  }
  0xf8   : > { %1571 = vmatmul.mubr.bf16.gmra.mrb[32].mxu0 %v5353_v2  ;;  %v6710_v2 = vld [vmem:[%s7456_s2 + $0x18] sm:$0xff]  }
  0xf9   : > { %4482 = vmatpush3.bf16.msra.mxu0 %v6208_v18  ;;  %4522 = vmatpush3.bf16.msra.mxu1 %v6214_v19  ;;  %v6508_v19 = vld [vmem:[%s7456_s2 + $0x8] sm:$0xff]  }
  0xfa   : > { %4483 = vmatprep.subr.bf16.mxu0 %v6220_v20  ;;  %4523 = vmatprep.subr.bf16.mxu1 %v6226_v21  ;;  %v6515_v21 = vld [vmem:[%s7456_s2 + $0x50] sm:$0xff]  }
  0xfb   : > { %1578 = vmatprep.mubr.bf16.mxu0 %v5356_v3  ;;  %v6717_v3 = vld [vmem:[%s7456_s2 + $0x60] sm:$0xff]  }
  0xfd   : > { %4484 = vmatpush3.bf16.msra.mxu0 %v6232_v22  ;;  %4524 = vmatpush3.bf16.msra.mxu1 %v6239_v23  ;;  %v5371_v23 = vld [vmem:[%s6293_s28 + $0x194] ss:$20 sps:$4 sm:$0xff]  }
  0xfe   : > { %4485 = vmatprep.subr.bf16.mxu0 %v6245_v24  ;;  %4525 = vmatprep.subr.bf16.mxu1 %v6251_v25  ;;  %v5373_v25 = vld [vmem:[%s6293_s28 + $0x19c] ss:$20 sps:$4 sm:$0xff]  }
 0x100   : > { %1579 = vmatmul.mubr.bf16.gmra.mrb[36].mxu0 %v5358_v4  ;;  %v5412_v4 = vld [vmem:[%s6293_s28 + $0x264] ss:$20 sps:$4 sm:$0xff]  }
 0x101   : > { %4486 = vmatpush3.bf16.msra.mxu0 %v6259_v26  ;;  %4526 = vmatpush3.bf16.msra.mxu1 %v6265_v27  ;;  %v6524_v27 = vld [vmem:[%s7456_s2 + $0x10] sm:$0xff]  }
 0x102   : > { %4487 = vmatprep.subr.bf16.mxu0 %v6271_v28  ;;  %4527 = vmatprep.subr.bf16.mxu1 %v6277_v29  ;;  %v5375_v29 = vld [vmem:[%s6293_s28 + $0x190] ss:$20 sps:$4 sm:$0xff]  }
 0x103   : > { %1821 = vmatprep.mubr.bf16.mxu0 %v5361_v5  ;;  %v6725_v5 = vld [vmem:[%s7456_s2 + $0x20] sm:$0xff]  }
 0x105   : > { %4488 = vmatpush3.bf16.msra.mxu0 %v6283_v30  ;;  %4528 = vmatpush3.bf16.msra.mxu1 %v6289_v31  ;;  %v5376_v31 = vld [vmem:[%s6293_s28 + $0x198] ss:$20 sps:$4 sm:$0xff]  }
 0x106   : > { %5073 = vmatprep.subr.bf16.mxu0 %v6304_v36  ;;  %4565 = vmatprep.subr.bf16.mxu1 %v6483_v8 }
 0x108   : > { %1822 = vmatmul.mubr.bf16.vlgmr.msra.gmra.mrb[40].mxu0 %v5359_v6  ;;  %1887 = vmatmul.mubr.bf16.vlgmr.msra.gmra.mrb[40].mxu1 %v5362_v7  ;;  %v6732_v6 = vld [vmem:[%s7456_s2 + $0x68] sm:$0xff]   ;;  %v5414_v7 = vld [vmem:[%s6293_s28 + $0x260] ss:$20 sps:$4 sm:$0xff]  }
 0x109   : > { %5074 = vmatpush3.bf16.msra.mxu0 %v6304_v36  ;;  %4566 = vmatpush3.bf16.msra.mxu1 %v6492_v11 }
 0x10a   : > { %5075 = vmatprep.subr.bf16.mxu0 %v6309_v37  ;;  %4567 = vmatprep.subr.bf16.mxu1 %v6499_v13 }
 0x10b   : > { %1829 = vmatprep.mubr.bf16.mxu0 %v5365_v9  ;;  %1894 = vmatprep.mubr.bf16.mxu1 %v5367_v10  ;;  %v6740_v9 = vld [vmem:[%s7456_s2 + $0x28] sm:$0xff]   ;;  %v6747_v10 = vld [vmem:[%s7456_s2 + $0x70] sm:$0xff]  }
 0x10d   : > { %5076 = vmatpush3.bf16.msra.mxu0 %v6309_v37  ;;  %4568 = vmatpush3.bf16.msra.mxu1 %v6508_v19 }
 0x10e   : > { %5077 = vmatprep.subr.bf16.mxu0 %v6322_v41  ;;  %4569 = vmatprep.subr.bf16.mxu1 %v6515_v21 }
 0x110   : > { %1830 = vmatmul.mubr.bf16.gmra.mrb[44].mxu0 %v5369_v15  ;;  %1895 = vmatmul.mubr.bf16.gmra.mrb[44].mxu1 %v5370_v17  ;;  %v5417_v15 = vld [vmem:[%s6433_s26 + $0x4] ss:$20 sps:$4 sm:$0xff]   ;;  %v6755_v17 = vld [vmem:[%s7456_s2 + $0x30] sm:$0xff]  }
 0x111   : > { %5078 = vmatpush3.bf16.msra.mxu0 %v6322_v41  ;;  %4570 = vmatpush3.bf16.msra.mxu1 %v6524_v27 }
 0x112   : > { %5079 = vmatprep.subr.bf16.mxu0 %v6333_v44  ;;  %4571 = vmatprep.subr.bf16.mxu1 %v6172_v12  ;;  %v5381_v12 = vld [vmem:[%s6293_s28 + $0x1b8] ss:$20 sps:$4 sm:$0xff]  }
 0x113   : > { %1837 = vmatprep.mubr.bf16.mxu0 %v5371_v23  ;;  %1902 = vmatprep.mubr.bf16.mxu1 %v5373_v25  ;;  %v6762_v23 = vld [vmem:[%s7456_s2 + $0x78] sm:$0xff]   ;;  %v5415_v25 = vld [vmem:[%s6433_s26] ss:$20 sps:$4 sm:$0xff]  }
 0x115   : > { %5080 = vmatpush3.bf16.msra.mxu0 %v6333_v44  ;;  %4572 = vmatpush3.bf16.msra.mxu1 %v6184_v14  ;;  %v5382_v14 = vld [vmem:[%s6293_s28 + $0x1c0] ss:$20 sps:$4 sm:$0xff]  }
 0x116   : > { %5081 = vmatprep.subr.bf16.mxu0 %v6343_v46  ;;  %4573 = vmatprep.subr.bf16.mxu1 %v6196_v16  ;;  %v5383_v16 = vld [vmem:[%s6293_s28 + $0x150] ss:$20 sps:$4 sm:$0xff]  }
 0x118   : > { %1838 = vmatmul.mubr.bf16.gmra.mrb[48].mxu0 %v5375_v29  ;;  %1903 = vmatmul.mubr.bf16.gmra.mrb[48].mxu1 %v5376_v31  ;;  %v5418_v29 = vld [vmem:[%s6433_s26 + $0x8] ss:$20 sps:$4 sm:$0xff]  }
 0x119   : > { %5082 = vmatpush3.bf16.msra.mxu0 %v6343_v46  ;;  %4574 = vmatpush3.bf16.msra.mxu1 %v6208_v18  ;;  %v5387_v18 = vld [vmem:[%s6293_s28 + $0x1e4] ss:$20 sps:$4 sm:$0xff]  }
 0x11a   : > { %5083 = vmatprep.subr.bf16.mxu0 %v6355_v50  ;;  %4575 = vmatprep.subr.bf16.mxu1 %v6220_v20  ;;  %v5384_v20 = vld [vmem:[%s6293_s28 + $0x178] ss:$20 sps:$4 sm:$0xff]  }
 0x11b   : > { %1845 = vmatprep.mubr.bf16.mxu0 %v5377_v49  ;;  %1910 = vmatprep.mubr.bf16.mxu1 %v5379_v51  ;;  %v6771_v31 = vld [vmem:[%s7456_s2 + $0x38] sm:$0xff]   ;;  %v6778_v49 = vld [vmem:[%s7456_s2 + $0x100] sm:$0xff]  }
 0x11c   : > { %v5421_v51 = vld [vmem:[%s6433_s26 + $0x2c] ss:$20 sps:$4 sm:$0xff]  }
 0x11d   : > { %5084 = vmatpush3.bf16.msra.mxu0 %v6355_v50  ;;  %4576 = vmatpush3.bf16.msra.mxu1 %v6232_v22  ;;  %v5385_v22 = vld [vmem:[%s6293_s28 + $0x1e0] ss:$20 sps:$4 sm:$0xff]  }
 0x11e   : > { %5085 = vmatprep.subr.bf16.mxu0 %v6366_v53  ;;  %4577 = vmatprep.subr.bf16.mxu1 %v6245_v24  ;;  %v6560_v24 = vld [vmem:[%s7456_s2 + $0xc0] sm:$0xff]  }
 0x120   : > { %1846 = vmatmul.mubr.bf16.gmra.mrb[52].mxu0 %v5381_v12  ;;  %1911 = vmatmul.mubr.bf16.gmra.mrb[52].mxu1 %v5382_v14  ;;  %v5423_v12 = vld [vmem:[%s6433_s26 + $0x34] ss:$20 sps:$4 sm:$0xff]  }
 0x121   : > { %5086 = vmatpush3.bf16.msra.mxu0 %v6366_v53  ;;  %4578 = vmatpush3.bf16.msra.mxu1 %v6259_v26  ;;  %v5388_v26 = vld [vmem:[%s6293_s28 + $0x1a0] ss:$20 sps:$4 sm:$0xff]   ;;  %v6789_v14 = vld [vmem:[%s7456_s2 + $0x108] sm:$0xff]  }
 0x122   : > { %5087 = vmatprep.subr.bf16.mxu0 %v6377_v56  ;;  %4579 = vmatprep.subr.bf16.mxu1 %v6271_v28  ;;  %v5390_v28 = vld [vmem:[%s6293_s28 + $0x20c] ss:$20 sps:$4 sm:$0xff]  }
 0x123   : > { %5089 = vmatprep.mubr.bf16.mxu0 %v5383_v16  ;;  %2153 = vmatprep.mubr.bf16.mxu1 %v5387_v18  ;;  %v5425_v16 = vld [vmem:[%s6433_s26 + $0x28] ss:$20 sps:$4 sm:$0xff]   ;;  %v5426_v18 = vld [vmem:[%s6433_s26 + $0x30] ss:$20 sps:$4 sm:$0xff]  }
 0x125   : > { %5088 = vmatpush3.bf16.msra.mxu0 %v6377_v56  ;;  %4580 = vmatpush3.bf16.msra.mxu1 %v6283_v30  ;;  %v6576_v30 = vld [vmem:[%s7456_s2 + $0xc8] sm:$0xff]  }
 0x126   : > { %4605 = vmatprep.subr.bf16.mxu0 %v6560_v24  ;;  %5097 = vmatprep.subr.bf16.mxu1 %v6304_v36 }
 0x128   : > { %5090 = vmatmul.mubr.bf16.vlgmr.msra.gmra.mrb[56].mxu0 %v5384_v20  ;;  %2154 = vmatmul.mubr.bf16.vlgmr.msra.gmra.mrb[56].mxu1 %v5385_v22  ;;  %v6800_v20 = vld [vmem:[%s7456_s2 + $0x110] sm:$0xff]  }
 0x129   : > { %4606 = vmatpush3.bf16.msra.mxu0 %v6569_v52  ;;  %5098 = vmatpush3.bf16.msra.mxu1 %v6304_v36  ;;  %v6592_v36 = vld [vmem:[%s7456_s2 + $0xd0] sm:$0xff]  }
 0x12a   : > { %4607 = vmatprep.subr.bf16.mxu0 %v6576_v30  ;;  %5099 = vmatprep.subr.bf16.mxu1 %v6309_v37  ;;  %v5427_v22 = vld [vmem:[%s6433_s26 + $0x54] ss:$20 sps:$4 sm:$0xff]  }
 0x12b   : > { %5093 = vmatprep.mubr.bf16.mxu0 %v5388_v26  ;;  %2161 = vmatprep.mubr.bf16.mxu1 %v5390_v28  ;;  %v5429_v26 = vld [vmem:[%s6433_s26 + $0x5c] ss:$20 sps:$4 sm:$0xff]  }
 0x12c   : > { %v6811_v28 = vld [vmem:[%s7456_s2 + $0x118] sm:$0xff]  }
 0x12d   : > { %4608 = vmatpush3.bf16.msra.mxu0 %v6585_v57  ;;  %5100 = vmatpush3.bf16.msra.mxu1 %v6309_v37  ;;  %v6608_v37 = vld [vmem:[%s7456_s2 + $0xd8] sm:$0xff]  }
 0x12e   : > { %4609 = vmatprep.subr.bf16.mxu0 %v6592_v36  ;;  %5101 = vmatprep.subr.bf16.mxu1 %v6322_v41 }
 0x130   : > { %5094 = vmatmul.mubr.bf16.gmra.mrb[60].mxu0 %v5389_v54  ;;  %2162 = vmatmul.mubr.bf16.gmra.mrb[60].mxu1 %v5392_v55  ;;  %v5431_v54 = vld [vmem:[%s6433_s26 + $0x50] ss:$20 sps:$4 sm:$0xff]   ;;  %v5432_v55 = vld [vmem:[%s6433_s26 + $0x58] ss:$20 sps:$4 sm:$0xff]  }
 0x131   : > { %4610 = vmatpush3.bf16.msra.mxu0 %v6601_v60  ;;  %5102 = vmatpush3.bf16.msra.mxu1 %v6322_v41  ;;  %v6623_v41 = vld [vmem:[%s7456_s2 + $0xe0] sm:$0xff]  }
 0x132   : > { %4611 = vmatprep.subr.bf16.mxu0 %v6608_v37  ;;  %5103 = vmatprep.subr.bf16.mxu1 %v6333_v44 }
 0x133   : > { %2169 = vmatprep.mubr.bf16.mxu1 %v5393_v58  ;;  %2218 = vmatprep.mubr.bf16.mxu0 %v5401_v59  ;;  %v6822_v58 = vld [vmem:[%s7456_s2 + $0x120] sm:$0xff]   ;;  %v5433_v59 = vld [vmem:[%s6433_s26 + $0x7c] ss:$20 sps:$4 sm:$0xff]  }
 0x135   : > { %4612 = vmatpush3.bf16.msra.mxu0 %v6616_v62  ;;  %5104 = vmatpush3.bf16.msra.mxu1 %v6333_v44  ;;  %v6638_v44 = vld [vmem:[%s7456_s2 + $0xe8] sm:$0xff]  }
 0x136   : > { %4613 = vmatprep.subr.bf16.mxu0 %v6623_v41  ;;  %5105 = vmatprep.subr.bf16.mxu1 %v6343_v46 }
 0x138   : > { %2170 = vmatmul.mubr.bf16.gmra.mrb[64].mxu1 %v5395_v61  ;;  %v5435_v61 = vld [vmem:[%s6433_s26 + $0x84] ss:$20 sps:$4 sm:$0xff]  }
 0x139   : > { %4614 = vmatpush3.bf16.msra.mxu0 %v6631_v32  ;;  %5106 = vmatpush3.bf16.msra.mxu1 %v6343_v46  ;;  %v6653_v46 = vld [vmem:[%s7456_s2 + $0xf0] sm:$0xff]  }
 0x13a   : > { %4615 = vmatprep.subr.bf16.mxu0 %v6638_v44  ;;  %5107 = vmatprep.subr.bf16.mxu1 %v6355_v50 }
 0x13b   : > { %2177 = vmatprep.mubr.bf16.mxu1 %v5396_v63 }
 0x13d   : > { %4616 = vmatpush3.bf16.msra.mxu0 %v6646_v34  ;;  %5108 = vmatpush3.bf16.msra.mxu1 %v6355_v50  ;;  %v6668_v50 = vld [vmem:[%s7456_s2 + $0xf8] sm:$0xff]  }
 0x13e   : > { %4617 = vmatprep.subr.bf16.mxu0 %v6653_v46  ;;  %5109 = vmatprep.subr.bf16.mxu1 %v6366_v53 }
 0x140   : > { %2178 = vmatmul.mubr.bf16.gmra.mrb[68].mxu1 %v5398_v33  ;;  %v6833_v33 = vld [vmem:[%s7456_s2 + $0x128] sm:$0xff]  }
 0x141   : > { %4618 = vmatpush3.bf16.msra.mxu0 %v6661_v38  ;;  %5110 = vmatpush3.bf16.msra.mxu1 %v6366_v53  ;;  %v5404_v53 = vld [vmem:[%s6293_s28 + $0x214] ss:$20 sps:$4 sm:$0xff]  }
 0x142   : > { %4619 = vmatprep.subr.bf16.mxu0 %v6668_v50  ;;  %5111 = vmatprep.subr.bf16.mxu1 %v6377_v56 }
 0x143   : > { %5113 = vmatprep.mubr.bf16.mxu1 %v5402_v35 }
 0x145   : > { %4620 = vmatpush3.bf16.msra.mxu0 %v6677_v42  ;;  %5112 = vmatpush3.bf16.msra.mxu1 %v6377_v56  ;;  %v5406_v56 = vld [vmem:[%s6293_s28 + $0x210] ss:$20 sps:$4 sm:$0xff]  }
 0x146   : > { %4657 = vmatprep.subr.bf16.mxu0 %v6483_v8  ;;  %4697 = vmatprep.subr.bf16.mxu1 %v6560_v24 }
 0x148   : > { %2219 = vmatmul.mubr.bf16.vlgmr.msra.gmra.mrb[64].mxu0 %v5399_v39  ;;  %5114 = vmatmul.mubr.bf16.vlgmr.msra.gmra.mrb[72].mxu1 %v5403_v40 }
 0x149   : > { %4658 = vmatpush3.bf16.msra.mxu0 %v6492_v11  ;;  %4698 = vmatpush3.bf16.msra.mxu1 %v6569_v52 }
 0x14a   : > { %4659 = vmatprep.subr.bf16.mxu0 %v6499_v13  ;;  %4699 = vmatprep.subr.bf16.mxu1 %v6576_v30 }
 0x14b   : > { %2226 = vmatprep.mubr.bf16.mxu0 %v5404_v53  ;;  %5117 = vmatprep.mubr.bf16.mxu1 %v5410_v43 }
 0x14d   : > { %4660 = vmatpush3.bf16.msra.mxu0 %v6508_v19  ;;  %4700 = vmatpush3.bf16.msra.mxu1 %v6585_v57 }
 0x14e   : > { %4661 = vmatprep.subr.bf16.mxu0 %v6515_v21  ;;  %4701 = vmatprep.subr.bf16.mxu1 %v6592_v36 }
 0x150   : > { %2227 = vmatmul.mubr.bf16.gmra.mrb[68].mxu0 %v5406_v56  ;;  %5118 = vmatmul.mubr.bf16.gmra.mrb[76].mxu1 %v5411_v45  ;;  %v5437_v56 = vld [vmem:[%s6433_s26 + $0x78] ss:$20 sps:$4 sm:$0xff]   ;;  %v5438_v45 = vld [vmem:[%s6433_s26 + $0x80] ss:$20 sps:$4 sm:$0xff]  }
 0x151   : > { %4662 = vmatpush3.bf16.msra.mxu0 %v6524_v27  ;;  %4702 = vmatpush3.bf16.msra.mxu1 %v6601_v60 }
 0x152   : > { %4663 = vmatprep.subr.bf16.mxu0 %v6702_v0  ;;  %4703 = vmatprep.subr.bf16.mxu1 %v6608_v37 }
 0x153   : > { %2234 = vmatprep.mubr.bf16.mxu0 %v5407_v47  ;;  %2571 = vmatprep.mubr.bf16.mxu1 %v5420_v48 }
 0x155   : > { %4664 = vmatpush3.bf16.msra.mxu0 %v6710_v2  ;;  %4704 = vmatpush3.bf16.msra.mxu1 %v6616_v62 }
 0x156   : > { %4665 = vmatprep.subr.bf16.mxu0 %v6717_v3  ;;  %4705 = vmatprep.subr.bf16.mxu1 %v6623_v41 }
 0x158   : > { %2235 = vmatmul.mubr.bf16.gmra.mrb[72].mxu0 %v5409_v1 }
 0x159   : > { %4666 = vmatpush3.bf16.msra.mxu0 %v6725_v5  ;;  %4706 = vmatpush3.bf16.msra.mxu1 %v6631_v32 }
 0x15a   : > { %4667 = vmatprep.subr.bf16.mxu0 %v6732_v6  ;;  %4707 = vmatprep.subr.bf16.mxu1 %v6638_v44 }
 0x15b   : > { %2242 = vmatprep.mubr.bf16.mxu0 %v5412_v4 }
 0x15d   : > { %4668 = vmatpush3.bf16.msra.mxu0 %v6740_v9  ;;  %4708 = vmatpush3.bf16.msra.mxu1 %v6646_v34 }
 0x15e   : > { %4669 = vmatprep.subr.bf16.mxu0 %v6747_v10  ;;  %4709 = vmatprep.subr.bf16.mxu1 %v6653_v46 }
 0x160   : > { %2243 = vmatmul.mubr.bf16.gmra.mrb[76].mxu0 %v5414_v7 }
 0x161   : > { %4670 = vmatpush3.bf16.msra.mxu0 %v6755_v17  ;;  %4710 = vmatpush3.bf16.msra.mxu1 %v6661_v38 }
 0x162   : > { %4671 = vmatprep.subr.bf16.mxu0 %v6762_v23  ;;  %4711 = vmatprep.subr.bf16.mxu1 %v6668_v50 }
 0x163   : > { %2506 = vmatprep.mubr.bf16.mxu0 %v5417_v15  ;;  %v6844_v15 = vld [vmem:[%s7456_s2 + $0x130] sm:$0xff]  }
 0x165   : > { %4672 = vmatpush3.bf16.msra.mxu0 %v6771_v31  ;;  %4712 = vmatpush3.bf16.msra.mxu1 %v6677_v42 }
 0x166   : > { %5121 = vmatprep.subr.bf16.mxu0 %v6778_v49  ;;  %4749 = vmatprep.subr.bf16.mxu1 %v6483_v8 }
 0x168   : > { %2507 = vmatmul.mubr.bf16.vlgmr.msra.gmra.mrb[80].mxu0 %v5415_v25  ;;  %2572 = vmatmul.mubr.bf16.vlgmr.msra.gmra.mrb[80].mxu1 %v5418_v29  ;;  %v5439_v29 = vld [vmem:[%s6433_s26 + $0x10] ss:$20 sps:$4 sm:$0xff]  }
 0x169   : > { %5122 = vmatpush3.bf16.msra.mxu0 %v6778_v49  ;;  %4750 = vmatpush3.bf16.msra.mxu1 %v6492_v11 }
 0x16a   : > { %5123 = vmatprep.subr.bf16.mxu0 %v6789_v14  ;;  %4751 = vmatprep.subr.bf16.mxu1 %v6499_v13 }
 0x16b   : > { %2514 = vmatprep.mubr.bf16.mxu0 %v5421_v51  ;;  %2579 = vmatprep.mubr.bf16.mxu1 %v5423_v12  ;;  %v5443_v51 = vld [vmem:[%s6433_s26 + $0xa4] ss:$20 sps:$4 sm:$0xff]  }
 0x16d   : > { %5124 = vmatpush3.bf16.msra.mxu0 %v6789_v14  ;;  %4752 = vmatpush3.bf16.msra.mxu1 %v6508_v19 }
 0x16e   : > { %5125 = vmatprep.subr.bf16.mxu0 %v6800_v20  ;;  %4753 = vmatprep.subr.bf16.mxu1 %v6515_v21 }
 0x170   : > { %2515 = vmatmul.mubr.bf16.gmra.mrb[84].mxu0 %v5425_v16  ;;  %2580 = vmatmul.mubr.bf16.gmra.mrb[84].mxu1 %v5426_v18 }
 0x171   : > { %5126 = vmatpush3.bf16.msra.mxu0 %v6800_v20  ;;  %4754 = vmatpush3.bf16.msra.mxu1 %v6524_v27 }
 0x172   : > { %5127 = vmatprep.subr.bf16.mxu0 %v6811_v28  ;;  %4755 = vmatprep.subr.bf16.mxu1 %v6702_v0 }
 0x173   : > { %2522 = vmatprep.mubr.bf16.mxu0 %v5427_v22  ;;  %2587 = vmatprep.mubr.bf16.mxu1 %v5429_v26  ;;  %v6859_v22 = vld [vmem:[%s7456_s2 + $0x138] sm:$0xff]  }
 0x175   : > { %5128 = vmatpush3.bf16.msra.mxu0 %v6811_v28  ;;  %4756 = vmatpush3.bf16.msra.mxu1 %v6710_v2 }
 0x176   : > { %5129 = vmatprep.subr.bf16.mxu0 %v6822_v58  ;;  %4757 = vmatprep.subr.bf16.mxu1 %v6717_v3 }
 0x178   : > { %2523 = vmatmul.mubr.bf16.gmra.mrb[88].mxu0 %v5431_v54  ;;  %2588 = vmatmul.mubr.bf16.gmra.mrb[88].mxu1 %v5432_v55 }
 0x179   : > { %5130 = vmatpush3.bf16.msra.mxu0 %v6822_v58  ;;  %4758 = vmatpush3.bf16.msra.mxu1 %v6725_v5 }
 0x17a   : > { %v4305_v63 = vpop.f32.mrb[0].mxu0  ;;  %5131 = vmatprep.subr.bf16.mxu0 %v6833_v33  ;;  %4759 = vmatprep.subr.bf16.mxu1 %v6732_v6 }
 0x17b   : > { %v4345_v35 = vpop.f32.mrb[0].mxu1  ;;  %v4306_v39 = vpop.f32.mrb[1].mxu0  ;;  %2530 = vmatprep.mubr.bf16.mxu0 %v5433_v59  ;;  %2595 = vmatprep.mubr.bf16.mxu1 %v5435_v61 }
 0x17c   : > { %v4307_v40 = vadd.f32 %v4306_v39, %v4305_v63  ;;  %v4346_v53 = vpop.f32.mrb[1].mxu1  ;;  %v4308_v43 = vpop.f32.mrb[2].mxu0  ;;  %v5440_v63 = vld [vmem:[%s6433_s26 + $0x38] ss:$20 sps:$4 sm:$0xff]  }
 0x17d   : > { %v4347_v47 = vadd.f32 %v4346_v53, %v4345_v35  ;;  %v4348_v48 = vpop.f32.mrb[2].mxu1  ;;  %5132 = vmatpush3.bf16.msra.mxu0 %v6833_v33  ;;  %4760 = vmatpush3.bf16.msra.mxu1 %v6740_v9  ;;  %v4309_v1 = vpop.f32.mrb[3].mxu0  ;;  %v5441_v35 = vld [vmem:[%s6433_s26 + $0xa0] ss:$20 sps:$4 sm:$0xff]  }
 0x17e   : > { %v4310_v4 = vadd.f32 %v4309_v1, %v4308_v43  ;;  %v4349_v7 = vpop.f32.mrb[3].mxu1  ;;  %5133 = vmatprep.subr.bf16.mxu0 %v6844_v15  ;;  %4761 = vmatprep.subr.bf16.mxu1 %v6747_v10 }
 0x17f   : > { %v4350_v25 = vadd.f32 %v4349_v7, %v4348_v48  ;;  %v6850_v12 = vadd.f32 %v4347_v47, %v4307_v40  ;;  %v5444_v47 = vld [vmem:[%s6433_s26 + $0x60] ss:$20 sps:$4 sm:$0xff]  }
 0x180   : > { %2531 = vmatmul.mubr.bf16.gmra.mrb[92].mxu0 %v5437_v56  ;;  %2596 = vmatmul.mubr.bf16.gmra.mrb[92].mxu1 %v5438_v45  ;;  %v5446_v48 = vld [vmem:[%s6433_s26 + $0xcc] ss:$20 sps:$4 sm:$0xff]  }
 0x181   : > { %5134 = vmatpush3.bf16.msra.mxu0 %v6844_v15  ;;  %4762 = vmatpush3.bf16.msra.mxu1 %v6755_v17  ;;  %v6854_v16 = vadd.f32 %v4350_v25, %v4310_v4 }
 0x182   : > { %v4311_v18 = vpop.f32.mrb[4].mxu0  ;;  %5135 = vmatprep.subr.bf16.mxu0 %v6859_v22  ;;  %4763 = vmatprep.subr.bf16.mxu1 %v6762_v23 }
 0x183   : > { %v4351_v26 = vpop.f32.mrb[4].mxu1  ;;  %v4312_v54 = vpop.f32.mrb[5].mxu0  ;;  %5137 = vmatprep.mubr.bf16.mxu0 %v5439_v29  ;;  %2830 = vmatprep.mubr.bf16.mxu1 %v5443_v51 }
 0x184   : > { %v4313_v55 = vadd.f32 %v4312_v54, %v4311_v18  ;;  %v4352_v59 = vpop.f32.mrb[5].mxu1  ;;  %v4314_v61 = vpop.f32.mrb[6].mxu0  ;;  %v5445_v54 = vld [vmem:[%s6433_s26 + $0x88] ss:$20 sps:$4 sm:$0xff]  }
 0x185   : > { %v4353_v39 = vadd.f32 %v4352_v59, %v4351_v26  ;;  %v4354_v40 = vpop.f32.mrb[6].mxu1  ;;  %5136 = vmatpush3.bf16.msra.mxu0 %v6859_v22  ;;  %4764 = vmatpush3.bf16.msra.mxu1 %v6771_v31  ;;  %v4315_v53 = vpop.f32.mrb[7].mxu0 }
 0x186   : > { %v4316_v43 = vadd.f32 %v4315_v53, %v4314_v61  ;;  %v4355_v56 = vpop.f32.mrb[7].mxu1  ;;  %4789 = vmatprep.subr.bf16.mxu0 %v6560_v24  ;;  %5145 = vmatprep.subr.bf16.mxu1 %v6778_v49  ;;  %v5449_v53 = vld [vmem:[%s6433_s26 + $0xf4] ss:$20 sps:$4 sm:$0xff]  }
 0x187   : > { %v4356_v45 = vadd.f32 %v4355_v56, %v4354_v40  ;;  %v6871_v1 = vadd.f32 %v4353_v39, %v4313_v55  ;;  %v5448_v55 = vld [vmem:[%s6433_s26 + $0xc8] ss:$20 sps:$4 sm:$0xff]   ;;  %v5457_v56 = vld [vmem:[%s6433_s26 + $0xac] ss:$20 sps:$4 sm:$0xff]  }
 0x188   : > { %5138 = vmatmul.mubr.bf16.vlgmr.msra.gmra.mrb[96].mxu0 %v5440_v63  ;;  %2831 = vmatmul.mubr.bf16.vlgmr.msra.gmra.mrb[96].mxu1 %v5441_v35 }
 0x189   : > { %4790 = vmatpush3.bf16.msra.mxu0 %v6569_v52  ;;  %5146 = vmatpush3.bf16.msra.mxu1 %v6778_v49  ;;  %v6875_v4 = vadd.f32 %v4356_v45, %v4316_v43 }
 0x18a   : > { %v4317_v7 = vpop.f32.mrb[8].mxu0  ;;  %4791 = vmatprep.subr.bf16.mxu0 %v6576_v30  ;;  %5147 = vmatprep.subr.bf16.mxu1 %v6789_v14 }
 0x18b   : > { %v4357_v25 = vpop.f32.mrb[8].mxu1  ;;  %v4318_v29 = vpop.f32.mrb[9].mxu0  ;;  %5141 = vmatprep.mubr.bf16.mxu0 %v5444_v47  ;;  %2838 = vmatprep.mubr.bf16.mxu1 %v5446_v48 }
 0x18c   : > { %v4319_v51 = vadd.f32 %v4318_v29, %v4317_v7  ;;  %v4358_v18 = vpop.f32.mrb[9].mxu1  ;;  %v4320_v26 = vpop.f32.mrb[10].mxu0 }
 0x18d   : > { %v4359_v59 = vadd.f32 %v4358_v18, %v4357_v25  ;;  %v4360_v61 = vpop.f32.mrb[10].mxu1  ;;  %4792 = vmatpush3.bf16.msra.mxu0 %v6585_v57  ;;  %5148 = vmatpush3.bf16.msra.mxu1 %v6789_v14  ;;  %v4321_v63 = vpop.f32.mrb[11].mxu0  ;;  %v5451_v18 = vld [vmem:[%s6433_s26 + $0xf0] ss:$20 sps:$4 sm:$0xff]  }
 0x18e   : > { %v4322_v35 = vadd.f32 %v4321_v63, %v4320_v26  ;;  %v4361_v39 = vpop.f32.mrb[11].mxu1  ;;  %4793 = vmatprep.subr.bf16.mxu0 %v6592_v36  ;;  %5149 = vmatprep.subr.bf16.mxu1 %v6800_v20 }
 0x18f   : > { %v4362_v40 = vadd.f32 %v4361_v39, %v4360_v61  ;;  %v6886_v43 = vadd.f32 %v4359_v59, %v4319_v51 }
 0x190   : > { %5142 = vmatmul.mubr.bf16.gmra.mrb[100].mxu0 %v5445_v54  ;;  %2839 = vmatmul.mubr.bf16.gmra.mrb[100].mxu1 %v5448_v55 }
 0x191   : > { %4794 = vmatpush3.bf16.msra.mxu0 %v6601_v60  ;;  %5150 = vmatpush3.bf16.msra.mxu1 %v6800_v20  ;;  %v6891_v45 = vadd.f32 %v4362_v40, %v4322_v35  ;;  %v5452_v35 = vld [vmem:[%s6433_s26 + $0x11c] ss:$20 sps:$4 sm:$0xff]  }
 0x192   : > { %v4323_v47 = vpop.f32.mrb[12].mxu0  ;;  %4795 = vmatprep.subr.bf16.mxu0 %v6608_v37  ;;  %5151 = vmatprep.subr.bf16.mxu1 %v6811_v28 }
 0x193   : > { %v4363_v48 = vpop.f32.mrb[12].mxu1  ;;  %v4324_v7 = vpop.f32.mrb[13].mxu0  ;;  %2846 = vmatprep.mubr.bf16.mxu1 %v5449_v53  ;;  %2895 = vmatprep.mubr.bf16.mxu0 %v5457_v56 }
 0x194   : > { %v4325_v25 = vadd.f32 %v4324_v7, %v4323_v47  ;;  %v4364_v29 = vpop.f32.mrb[13].mxu1  ;;  %v4326_v51 = vpop.f32.mrb[14].mxu0  ;;  %v5454_v7 = vld [vmem:[%s6433_s26 + $0x118] ss:$20 sps:$4 sm:$0xff]  }
 0x195   : > { %v4365_v26 = vadd.f32 %v4364_v29, %v4363_v48  ;;  %v4366_v54 = vpop.f32.mrb[14].mxu1  ;;  %4796 = vmatpush3.bf16.msra.mxu0 %v6616_v62  ;;  %5152 = vmatpush3.bf16.msra.mxu1 %v6811_v28  ;;  %v4327_v55 = vpop.f32.mrb[15].mxu0 }
 0x196   : > { %v4328_v59 = vadd.f32 %v4327_v55, %v4326_v51  ;;  %v4367_v61 = vpop.f32.mrb[15].mxu1  ;;  %4797 = vmatprep.subr.bf16.mxu0 %v6623_v41  ;;  %5153 = vmatprep.subr.bf16.mxu1 %v6822_v58 }
 0x197   : > { %v4368_v63 = vadd.f32 %v4367_v61, %v4366_v54  ;;  %v1257_v39 = vadd.f32 %v4365_v26, %v4325_v25 }
 0x198   : > { %2847 = vmatmul.mubr.bf16.gmra.mrb[104].mxu1 %v5451_v18 }
 0x199   : > { %4798 = vmatpush3.bf16.msra.mxu0 %v6631_v32  ;;  %5154 = vmatpush3.bf16.msra.mxu1 %v6822_v58  ;;  %v1260_v40 = vadd.f32 %v4368_v63, %v4328_v59  ;;  %v5458_v59 = vld [vmem:[%s6433_s26 + $0xb0] ss:$20 sps:$4 sm:$0xff]  }
 0x19a   : > { %4799 = vmatprep.subr.bf16.mxu0 %v6638_v44  ;;  %5155 = vmatprep.subr.bf16.mxu1 %v6833_v33 }
 0x19b   : > { %v5043_v53 = vpop.f32.mrb[16].mxu0  ;;  %2854 = vmatprep.mubr.bf16.mxu1 %v5452_v35  ;;  %v4397_v56 = vpop.f32.mrb[16].mxu1 }
 0x19c   : > { %v6906_v47 = vadd.f32 %v5043_v53, %v6871_v1  ;;  %v1297_v48 = vpop.f32.mrb[17].mxu0  ;;  %v4398_v25 = vpop.f32.mrb[17].mxu1 }
 0x19d   : > { %v6910_v29 = vadd.f32 %v1297_v48, %v6850_v12  ;;  %v5044_v51 = vpop.f32.mrb[18].mxu0  ;;  %4800 = vmatpush3.bf16.msra.mxu0 %v6646_v34  ;;  %5156 = vmatpush3.bf16.msra.mxu1 %v6833_v33  ;;  %v6914_v18 = vadd.f32 %v4398_v25, %v4397_v56  ;;  %v4400_v26 = vpop.f32.mrb[18].mxu1  ;;  %v5459_v56 = vld [vmem:[%s6433_s26 + $0xd8] ss:$20 sps:$4 sm:$0xff]  }
 0x19e   : > { %v6917_v54 = vadd.f32 %v5044_v51, %v6875_v4  ;;  %v1300_v1 = vpop.f32.mrb[19].mxu0  ;;  %4801 = vmatprep.subr.bf16.mxu0 %v6653_v46  ;;  %5157 = vmatprep.subr.bf16.mxu1 %v6844_v15  ;;  %v4401_v12 = vpop.f32.mrb[19].mxu1 }
 0x19f   : > { %v6922_v55 = vadd.f32 %v1300_v1, %v6854_v16  ;;  %v6925_v61 = vadd.f32 %v4401_v12, %v4400_v26  ;;  %v5455_v16 = vld [vmem:[%s6433_s26 + $0xa8] ss:$20 sps:$4 sm:$0xff]  }
 0x1a0   : > { %2855 = vmatmul.mubr.bf16.gmra.mrb[108].mxu1 %v5454_v7 }
 0x1a1   : > { %4802 = vmatpush3.bf16.msra.mxu0 %v6661_v38  ;;  %5158 = vmatpush3.bf16.msra.mxu1 %v6844_v15 }
 0x1a2   : > { %4803 = vmatprep.subr.bf16.mxu0 %v6668_v50  ;;  %5159 = vmatprep.subr.bf16.mxu1 %v6859_v22 }
 0x1a3   : > { %v5047_v4 = vpop.f32.mrb[20].mxu0  ;;  %5161 = vmatprep.mubr.bf16.mxu1 %v5458_v59  ;;  %v4403_v63 = vpop.f32.mrb[20].mxu1  ;;  %v5460_v59 = vld [vmem:[%s6433_s26 + $0xd4] ss:$20 sps:$4 sm:$0xff]  }
 0x1a4   : > { %v6931_v35 = vadd.f32 %v5047_v4, %v1257_v39  ;;  %v1313_v53 = vpop.f32.mrb[21].mxu0  ;;  %v4404_v48 = vpop.f32.mrb[21].mxu1 }
 0x1a5   : > { %v6936_v7 = vadd.f32 %v1313_v53, %v6886_v43  ;;  %v5048_v25 = vpop.f32.mrb[22].mxu0  ;;  %4804 = vmatpush3.bf16.msra.mxu0 %v6677_v42  ;;  %5160 = vmatpush3.bf16.msra.mxu1 %v6859_v22  ;;  %v6940_v51 = vadd.f32 %v4404_v48, %v4403_v63  ;;  %v4406_v26 = vpop.f32.mrb[22].mxu1  ;;  %v5466_v53 = vld [vmem:[%s6433_s26 + $0x100] ss:$20 sps:$4 sm:$0xff]   ;;  %v5467_v63 = vld [vmem:[%s6433_s26 + $0x128] ss:$20 sps:$4 sm:$0xff]  }
 0x1a6   : > { %v6942_v1 = vadd.f32 %v5048_v25, %v1260_v40  ;;  %v1316_v39 = vpop.f32.mrb[23].mxu0  ;;  %4841 = vmatprep.subr.bf16.mxu0 %v6483_v8  ;;  %4881 = vmatprep.subr.bf16.mxu1 %v6560_v24  ;;  %v4407_v12 = vpop.f32.mrb[23].mxu1  ;;  %v5476_v25 = vld [vmem:[%s6433_s26 + $0x14c] ss:$20 sps:$4 sm:$0xff]  }
 0x1a7   : > { %v6947_v43 = vadd.f32 %v1316_v39, %v6891_v45  ;;  %v6950_v4 = vadd.f32 %v4407_v12, %v4406_v26  ;;  %v5462_v45 = vld [vmem:[%s6433_s26 + $0xd0] ss:$20 sps:$4 sm:$0xff]  }
 0x1a8   : > { %2896 = vmatmul.mubr.bf16.vlgmr.msra.gmra.mrb[104].mxu0 %v5455_v16  ;;  %5162 = vmatmul.mubr.bf16.vlgmr.msra.gmra.mrb[112].mxu1 %v5459_v56 }
 0x1a9   : > { %4842 = vmatpush3.bf16.msra.mxu0 %v6492_v11  ;;  %4882 = vmatpush3.bf16.msra.mxu1 %v6569_v52 }
 0x1aa   : > { %4843 = vmatprep.subr.bf16.mxu0 %v6499_v13  ;;  %4883 = vmatprep.subr.bf16.mxu1 %v6576_v30  ;;  %v5463_v30 = vld [vmem:[%s6433_s26 + $0xfc] ss:$20 sps:$4 sm:$0xff]  }
 0x1ab   : > { %2903 = vmatprep.mubr.bf16.mxu0 %v5460_v59  ;;  %v4409_v24 = vpop.f32.mrb[24].mxu1  ;;  %5165 = vmatprep.mubr.bf16.mxu1 %v5466_v53 }
 0x1ac   : > { %v4410_v40 = vpop.f32.mrb[25].mxu1 }
 0x1ad   : > { %4844 = vmatpush3.bf16.msra.mxu0 %v6508_v19  ;;  %4884 = vmatpush3.bf16.msra.mxu1 %v6585_v57  ;;  %v6961_v16 = vadd.f32 %v4410_v40, %v4409_v24  ;;  %v4412_v56 = vpop.f32.mrb[26].mxu1 }
 0x1ae   : > { %4845 = vmatprep.subr.bf16.mxu0 %v6515_v21  ;;  %4885 = vmatprep.subr.bf16.mxu1 %v6592_v36  ;;  %v4413_v52 = vpop.f32.mrb[27].mxu1  ;;  %v5465_v36 = vld [vmem:[%s6433_s26 + $0xf8] ss:$20 sps:$4 sm:$0xff]  }
 0x1af   : > { %v6966_v48 = vadd.f32 %v4413_v52, %v4412_v56 }
 0x1b0   : > { %2904 = vmatmul.mubr.bf16.gmra.mrb[108].mxu0 %v5462_v45  ;;  %5166 = vmatmul.mubr.bf16.gmra.mrb[116].mxu1 %v5467_v63 }
 0x1b1   : > { %4846 = vmatpush3.bf16.msra.mxu0 %v6524_v27  ;;  %4886 = vmatpush3.bf16.msra.mxu1 %v6601_v60 }
 0x1b2   : > { %4847 = vmatprep.subr.bf16.mxu0 %v6702_v0  ;;  %4887 = vmatprep.subr.bf16.mxu1 %v6608_v37  ;;  %v5468_v37 = vld [vmem:[%s6433_s26 + $0x124] ss:$20 sps:$4 sm:$0xff]  }
 0x1b3   : > { %2911 = vmatprep.mubr.bf16.mxu0 %v5463_v30  ;;  %v4415_v57 = vpop.f32.mrb[28].mxu1  ;;  %3227 = vmatprep.mubr.bf16.mxu1 %v5476_v25  ;;  %v5473_v25 = vld [vmem:[%s6433_s26 + $0x144] ss:$20 sps:$4 sm:$0xff]  }
 0x1b4   : > { %v4416_v26 = vpop.f32.mrb[29].mxu1 }
 0x1b5   : > { %4848 = vmatpush3.bf16.msra.mxu0 %v6710_v2  ;;  %4888 = vmatpush3.bf16.msra.mxu1 %v6616_v62  ;;  %v6976_v39 = vadd.f32 %v4416_v26, %v4415_v57  ;;  %v4418_v12 = vpop.f32.mrb[30].mxu1 }
 0x1b6   : > { %4849 = vmatprep.subr.bf16.mxu0 %v6717_v3  ;;  %4889 = vmatprep.subr.bf16.mxu1 %v6623_v41  ;;  %v4419_v60 = vpop.f32.mrb[31].mxu1  ;;  %v5470_v41 = vld [vmem:[%s6433_s26 + $0x120] ss:$20 sps:$4 sm:$0xff]  }
 0x1b7   : > { %v6980_v59 = vadd.f32 %v4419_v60, %v4418_v12  ;;  %v5471_v60 = vld [vmem:[%s6433_s26 + $0x140] ss:$20 sps:$4 sm:$0xff]  }
 0x1b8   : > { %2912 = vmatmul.mubr.bf16.gmra.mrb[112].mxu0 %v5465_v36 }
 0x1b9   : > { %4850 = vmatpush3.bf16.msra.mxu0 %v6725_v5  ;;  %4890 = vmatpush3.bf16.msra.mxu1 %v6631_v32 }
 0x1ba   : > { %4851 = vmatprep.subr.bf16.mxu0 %v6732_v6  ;;  %4891 = vmatprep.subr.bf16.mxu1 %v6638_v44 }
 0x1bb   : > { %v4437_v62 = vpop.f32.mrb[24].mxu0  ;;  %v5067_v53 = vpop.f32.mrb[32].mxu1  ;;  %2919 = vmatprep.mubr.bf16.mxu0 %v5468_v37 }
 0x1bc   : > { %v4438_v24 = vpop.f32.mrb[25].mxu0  ;;  %v1621_v45 = vpop.f32.mrb[33].mxu1 }
 0x1bd   : > { %v4439_v40 = vadd.f32 %v4438_v24, %v4437_v62  ;;  %v4440_v63 = vpop.f32.mrb[26].mxu0  ;;  %4852 = vmatpush3.bf16.msra.mxu0 %v6740_v9  ;;  %4892 = vmatpush3.bf16.msra.mxu1 %v6646_v34  ;;  %v5068_v56 = vpop.f32.mrb[34].mxu1 }
 0x1be   : > { %v4441_v52 = vpop.f32.mrb[27].mxu0  ;;  %4853 = vmatprep.subr.bf16.mxu0 %v6747_v10  ;;  %4893 = vmatprep.subr.bf16.mxu1 %v6653_v46  ;;  %v1624_v32 = vpop.f32.mrb[35].mxu1 }
 0x1bf   : > { %v4442_v44 = vadd.f32 %v4441_v52, %v4440_v63  ;;  %v1557_v30 = vadd.f32 %v4439_v40, %v6914_v18 }
 0x1c0   : > { %2920 = vmatmul.mubr.bf16.gmra.mrb[116].mxu0 %v5470_v41  ;;  %v5477_v41 = vld [vmem:[%s6433_s26 + $0x16c] ss:$20 sps:$4 sm:$0xff]  }
 0x1c1   : > { %v6994_v57 = vadd.f32 %v1621_v45, %v1557_v30  ;;  %4854 = vmatpush3.bf16.msra.mxu0 %v6755_v17  ;;  %4894 = vmatpush3.bf16.msra.mxu1 %v6661_v38  ;;  %v1560_v34 = vadd.f32 %v4442_v44, %v6925_v61  ;;  %v5474_v38 = vld [vmem:[%s6433_s26 + $0x148] ss:$20 sps:$4 sm:$0xff]  }
 0x1c2   : > { %4855 = vmatprep.subr.bf16.mxu0 %v6762_v23  ;;  %4895 = vmatprep.subr.bf16.mxu1 %v6668_v50 }
 0x1c3   : > { %v1652_v46 = vmax.f32 %v6910_v29, %v6994_v57  ;;  %v7003_v36 = vadd.f32 %v1624_v32, %v1560_v34  ;;  %v4443_v18 = vpop.f32.mrb[28].mxu0  ;;  %3162 = vmatprep.mubr.bf16.mxu0 %v5473_v25  ;;  %v7005_v26 = vpop.f32.mrb[36].mxu1  ;;  %v5479_v32 = vld [vmem:[%s6433_s26 + $0x174] ss:$20 sps:$4 sm:$0xff]   ;;  %v5482_v25 = vld [vmem:[%s6433_s26 + $0x170] ss:$20 sps:$4 sm:$0xff]  }
 0x1c4   : > { %v4444_v12 = vpop.f32.mrb[29].mxu0  ;;  %v1637_v37 = vpop.f32.mrb[37].mxu1  ;;  %v5580_v29 = vld [vmem:[%s7456_s2 + $0xb0] sm:$0xff]  }
 0x1c5   : > { %v1653_v61 = vmax.f32 %v6922_v55, %v7003_v36  ;;  %v4445_v62 = vadd.f32 %v4444_v12, %v4443_v18  ;;  %v4446_v50 = vpop.f32.mrb[30].mxu0  ;;  %4856 = vmatpush3.bf16.msra.mxu0 %v6771_v31  ;;  %4896 = vmatpush3.bf16.msra.mxu1 %v6677_v42  ;;  %v7013_v24 = vpop.f32.mrb[38].mxu1 }
 0x1c6   : > { %v4447_v45 = vpop.f32.mrb[31].mxu0  ;;  %5169 = vmatprep.subr.bf16.mxu0 %v6778_v49  ;;  %4933 = vmatprep.subr.bf16.mxu1 %v6483_v8  ;;  %v1640_v40 = vpop.f32.mrb[39].mxu1 }
 0x1c7   : > { %v1565_v63 = vadd.f32 %v4445_v62, %v6940_v51  ;;  %v4448_v52 = vadd.f32 %v4447_v45, %v4446_v50  ;;  %v5487_v45 = vld [vmem:[%s6433_s26 + $0x190] ss:$20 sps:$4 sm:$0xff]  }
 0x1c8   : > { %3163 = vmatmul.mubr.bf16.vlgmr.msra.gmra.mrb[120].mxu0 %v5471_v60  ;;  %3228 = vmatmul.mubr.bf16.vlgmr.msra.gmra.mrb[120].mxu1 %v5474_v38  ;;  %v5485_v38 = vld [vmem:[%s6433_s26 + $0x19c] ss:$20 sps:$4 sm:$0xff]  }
 0x1c9   : > { %v7020_v44 = vadd.f32 %v5067_v53, %v1565_v63  ;;  %v1568_v42 = vadd.f32 %v4448_v52, %v6950_v4  ;;  %5170 = vmatpush3.bf16.msra.mxu0 %v6778_v49  ;;  %4934 = vmatpush3.bf16.msra.mxu1 %v6492_v11  ;;  %v5481_v4 = vld [vmem:[%s6433_s26 + $0x168] ss:$20 sps:$4 sm:$0xff]  }
 0x1ca   : > { %5171 = vmatprep.subr.bf16.mxu0 %v6789_v14  ;;  %3170 = vmatprep.mubr.bf16.mxu0 %v5477_v41  ;;  %v5488_v41 = vld [vmem:[%s6433_s26 + $0x198] ss:$20 sps:$4 sm:$0xff]  }
 0x1cb   : > { %v7026_v8 = vadd.f32 %v5068_v56, %v1568_v42  ;;  %v4449_v51 = vpop.f32.mrb[32].mxu0  ;;  %3235 = vmatprep.mubr.bf16.mxu1 %v5479_v32  ;;  %4935 = vmatprep.subr.bf16.mxu1 %v6499_v13  ;;  %v1654_v53 = vmax.f32 %v6906_v47, %v7020_v44  ;;  %v5483_v13 = vld [vmem:[%s6433_s26 + $0x194] ss:$20 sps:$4 sm:$0xff]   ;;  %v5491_v42 = vld [vmem:[%s6433_s26 + $0x1c4] ss:$20 sps:$4 sm:$0xff]  }
 0x1cc   : > { %v4450_v30 = vpop.f32.mrb[33].mxu0 }
 0x1cd   : > { %v4451_v34 = vadd.f32 %v4450_v30, %v4449_v51  ;;  %v4452_v18 = vpop.f32.mrb[34].mxu0  ;;  %5172 = vmatpush3.bf16.msra.mxu0 %v6789_v14  ;;  %4936 = vmatpush3.bf16.msra.mxu1 %v6508_v19  ;;  %v1655_v11 = vmax.f32 %v6917_v54, %v7026_v8  ;;  %v5581_v54 = vld [vmem:[%s7456_s2 + $0xf8] sm:$0xff]  }
 0x1ce   : > { %v4453_v56 = vpop.f32.mrb[35].mxu0  ;;  %5173 = vmatprep.subr.bf16.mxu0 %v6800_v20  ;;  %4937 = vmatprep.subr.bf16.mxu1 %v6515_v21  ;;  %v5515_v8 = vld [vmem:[%s6433_s26 + $0x218] ss:$20 sps:$4 sm:$0xff]  }
 0x1cf   : > { %v4454_v12 = vadd.f32 %v4453_v56, %v4452_v18  ;;  %v1573_v60 = vadd.f32 %v4451_v34, %v6961_v16 }
 0x1d0   : > { %3171 = vmatmul.mubr.bf16.gmra.mrb[124].mxu0 %v5481_v4  ;;  %3236 = vmatmul.mubr.bf16.gmra.mrb[124].mxu1 %v5482_v25  ;;  %v5493_v25 = vld [vmem:[%s6433_s26 + $0x1b8] ss:$20 sps:$4 sm:$0xff]  }
 0x1d1   : > { %v7042_v62 = vadd.f32 %v1637_v37, %v1573_v60  ;;  %5174 = vmatpush3.bf16.msra.mxu0 %v6800_v20  ;;  %v1576_v19 = vadd.f32 %v4454_v12, %v6966_v48  ;;  %4938 = vmatpush3.bf16.msra.mxu1 %v6524_v27  ;;  %v5495_v60 = vld [vmem:[%s6433_s26 + $0x150] ss:$20 sps:$4 sm:$0xff]  }
 0x1d2   : > { %5175 = vmatprep.subr.bf16.mxu0 %v6811_v28  ;;  %3178 = vmatprep.mubr.bf16.mxu0 %v5483_v13 }
 0x1d3   : > { %v1656_v21 = vmax.f32 %v6936_v7, %v7042_v62  ;;  %v7050_v16 = vadd.f32 %v1640_v40, %v1576_v19  ;;  %v4455_v50 = vpop.f32.mrb[36].mxu0  ;;  %3243 = vmatprep.mubr.bf16.mxu1 %v5485_v38  ;;  %4939 = vmatprep.subr.bf16.mxu1 %v6702_v0  ;;  %v5489_v40 = vld [vmem:[%s6433_s26 + $0x1bc] ss:$20 sps:$4 sm:$0xff]  }
 0x1d4   : > { %v4456_v37 = vpop.f32.mrb[37].mxu0  ;;  %v5518_v62 = vld [vmem:[%s6433_s26 + $0x210] ss:$20 sps:$4 sm:$0xff]  }
 0x1d5   : > { %v1657_v27 = vmax.f32 %v6947_v43, %v7050_v16  ;;  %v4457_v48 = vadd.f32 %v4456_v37, %v4455_v50  ;;  %v4458_v63 = vpop.f32.mrb[38].mxu0  ;;  %5176 = vmatpush3.bf16.msra.mxu0 %v6811_v28  ;;  %4940 = vmatpush3.bf16.msra.mxu1 %v6710_v2  ;;  %v5499_v50 = vld [vmem:[%s6433_s26 + $0x1e4] ss:$20 sps:$4 sm:$0xff]  }
 0x1d6   : > { %v4459_v52 = vpop.f32.mrb[39].mxu0  ;;  %5177 = vmatprep.subr.bf16.mxu0 %v6822_v58  ;;  %4941 = vmatprep.subr.bf16.mxu1 %v6717_v3  ;;  %v5521_v16 = vld [vmem:[%s6433_s26 + $0x238] ss:$20 sps:$4 sm:$0xff]  }
 0x1d7   : > { %v1581_v0 = vadd.f32 %v4457_v48, %v6976_v39  ;;  %v4460_v32 = vadd.f32 %v4459_v52, %v4458_v63  ;;  %v5496_v63 = vld [vmem:[%s6433_s26 + $0x178] ss:$20 sps:$4 sm:$0xff]   ;;  %v5497_v52 = vld [vmem:[%s6433_s26 + $0x1e0] ss:$20 sps:$4 sm:$0xff]  }
 0x1d8   : > { %3179 = vmatmul.mubr.bf16.gmra.mrb[128].mxu0 %v5487_v45  ;;  %3244 = vmatmul.mubr.bf16.gmra.mrb[128].mxu1 %v5488_v41 }
 0x1d9   : > { %v7065_v51 = vadd.f32 %v7005_v26, %v1581_v0  ;;  %v1584_v30 = vadd.f32 %v4460_v32, %v6980_v59  ;;  %5178 = vmatpush3.bf16.msra.mxu0 %v6822_v58  ;;  %4942 = vmatpush3.bf16.msra.mxu1 %v6725_v5  ;;  %v5494_v5 = vld [vmem:[%s6433_s26 + $0x1c0] ss:$20 sps:$4 sm:$0xff]  }
 0x1da   : > { %5179 = vmatprep.subr.bf16.mxu0 %v6833_v33  ;;  %3186 = vmatprep.mubr.bf16.mxu0 %v5489_v40 }
 0x1db   : > { %v7072_v2 = vadd.f32 %v7013_v24, %v1584_v30  ;;  %v4489_v3 = vpop.f32.mrb[40].mxu0  ;;  %v4529_v39 = vpop.f32.mrb[40].mxu1  ;;  %3251 = vmatprep.mubr.bf16.mxu1 %v5491_v42  ;;  %4943 = vmatprep.subr.bf16.mxu1 %v6732_v6  ;;  %v1658_v26 = vmax.f32 %v6931_v35, %v7065_v51  ;;  %v5523_v51 = vld [vmem:[%s6433_s26 + $0x268] ss:$20 sps:$4 sm:$0xff]  }
 0x1dc   : > { %v4490_v59 = vpop.f32.mrb[41].mxu0  ;;  %v4530_v4 = vpop.f32.mrb[41].mxu1 }
 0x1dd   : > { %v4491_v34 = vadd.f32 %v4490_v59, %v4489_v3  ;;  %v4531_v18 = vadd.f32 %v4530_v4, %v4529_v39  ;;  %v4492_v56 = vpop.f32.mrb[42].mxu0  ;;  %v4532_v13 = vpop.f32.mrb[42].mxu1  ;;  %5180 = vmatpush3.bf16.msra.mxu0 %v6833_v33  ;;  %4944 = vmatpush3.bf16.msra.mxu1 %v6740_v9  ;;  %v1659_v6 = vmax.f32 %v6942_v1, %v7072_v2  ;;  %v5500_v3 = vld [vmem:[%s6433_s26 + $0x1a0] ss:$20 sps:$4 sm:$0xff]  }
 0x1de   : > { %v4493_v24 = vpop.f32.mrb[43].mxu0  ;;  %v4533_v12 = vpop.f32.mrb[43].mxu1  ;;  %5181 = vmatprep.subr.bf16.mxu0 %v6844_v15  ;;  %4945 = vmatprep.subr.bf16.mxu1 %v6747_v10  ;;  %v5502_v4 = vld [vmem:[%s6433_s26 + $0x20c] ss:$20 sps:$4 sm:$0xff]  }
 0x1df   : > { %v4494_v38 = vadd.f32 %v4493_v24, %v4492_v56  ;;  %v4534_v19 = vadd.f32 %v4533_v12, %v4532_v13  ;;  %v7087_v37 = vadd.f32 %v4531_v18, %v4491_v34  ;;  %v5569_v34 = vld [vmem:[%s7456_s2 + $0xc8] sm:$0xff]  }
 0x1e0   : > { %3187 = vmatmul.mubr.bf16.gmra.mrb[132].mxu0 %v5493_v25  ;;  %3252 = vmatmul.mubr.bf16.gmra.mrb[132].mxu1 %v5494_v5  ;;  %v5501_v12 = vld [vmem:[%s6433_s26 + $0x1c8] ss:$20 sps:$4 sm:$0xff]  }
 0x1e1   : > { %5182 = vmatpush3.bf16.msra.mxu0 %v6844_v15  ;;  %4946 = vmatpush3.bf16.msra.mxu1 %v6755_v17  ;;  %v7091_v9 = vadd.f32 %v4534_v19, %v4494_v38 }
 0x1e2   : > { %5183 = vmatprep.subr.bf16.mxu0 %v6859_v22  ;;  %5185 = vmatprep.mubr.bf16.mxu0 %v5495_v60  ;;  %v5504_v60 = vld [vmem:[%s6433_s26 + $0x208] ss:$20 sps:$4 sm:$0xff]  }
 0x1e3   : > { %v4495_v10 = vpop.f32.mrb[44].mxu0  ;;  %v4535_v45 = vpop.f32.mrb[44].mxu1  ;;  %4947 = vmatprep.subr.bf16.mxu1 %v6762_v23  ;;  %3494 = vmatprep.mubr.bf16.mxu1 %v5499_v50  ;;  %v5567_v23 = vld [vmem:[%s7456_s2 + $0xc0] sm:$0xff]  }
 0x1e4   : > { %v4496_v41 = vpop.f32.mrb[45].mxu0  ;;  %v4536_v48 = vpop.f32.mrb[45].mxu1 }
 0x1e5   : > { %v4497_v40 = vadd.f32 %v4496_v41, %v4495_v10  ;;  %v4537_v0 = vadd.f32 %v4536_v48, %v4535_v45  ;;  %v4498_v32 = vpop.f32.mrb[46].mxu0  ;;  %v4538_v17 = vpop.f32.mrb[46].mxu1  ;;  %5184 = vmatpush3.bf16.msra.mxu0 %v6859_v22  ;;  %4948 = vmatpush3.bf16.msra.mxu1 %v6771_v31  ;;  %v5568_v31 = vld [vmem:[%s7456_s2 + $0x80] sm:$0xff]   ;;  %v5570_v10 = vld [vmem:[%s7456_s2 + $0x88] sm:$0xff]   ;;  %v5571_v48 = vld [vmem:[%s7456_s2 + $0xd0] sm:$0xff]  }
 0x1e6   : > { %v4499_v42 = vpop.f32.mrb[47].mxu0  ;;  %v4539_v30 = vpop.f32.mrb[47].mxu1  ;;  %4973 = vmatprep.subr.bf16.mxu0 %v5567_v23  ;;  %5193 = vmatprep.subr.bf16.mxu1 %v6778_v49 }
 0x1e7   : > { %v4500_v39 = vadd.f32 %v4499_v42, %v4498_v32  ;;  %v4540_v59 = vadd.f32 %v4539_v30, %v4538_v17  ;;  %v7105_v25 = vadd.f32 %v4537_v0, %v4497_v40  ;;  %v5505_v40 = vld [vmem:[%s6433_s26 + $0x234] ss:$20 sps:$4 sm:$0xff]   ;;  %v5513_v32 = vld [vmem:[%s6433_s26 + $0x1ec] ss:$20 sps:$4 sm:$0xff]   ;;  %v5573_v42 = vld [vmem:[%s7456_s2 + $0xd8] sm:$0xff]  }
 0x1e8   : > { %5186 = vmatmul.mubr.bf16.vlgmr.msra.gmra.mrb[136].mxu0 %v5496_v63  ;;  %3495 = vmatmul.mubr.bf16.vlgmr.msra.gmra.mrb[136].mxu1 %v5497_v52 }
 0x1e9   : > { %4974 = vmatpush3.bf16.msra.mxu0 %v5568_v31  ;;  %5194 = vmatpush3.bf16.msra.mxu1 %v6778_v49  ;;  %v7111_v5 = vadd.f32 %v4540_v59, %v4500_v39  ;;  %v5507_v59 = vld [vmem:[%s6433_s26 + $0x230] ss:$20 sps:$4 sm:$0xff]  }
 0x1ea   : > { %4975 = vmatprep.subr.bf16.mxu0 %v5569_v34  ;;  %5189 = vmatprep.mubr.bf16.mxu0 %v5500_v3 }
 0x1eb   : > { %v4501_v18 = vpop.f32.mrb[48].mxu0  ;;  %v4541_v56 = vpop.f32.mrb[48].mxu1  ;;  %5195 = vmatprep.subr.bf16.mxu1 %v6789_v14  ;;  %3502 = vmatprep.mubr.bf16.mxu1 %v5502_v4 }
 0x1ec   : > { %v4502_v13 = vpop.f32.mrb[49].mxu0  ;;  %v4542_v24 = vpop.f32.mrb[49].mxu1 }
 0x1ed   : > { %v4503_v38 = vadd.f32 %v4502_v13, %v4501_v18  ;;  %v4543_v49 = vadd.f32 %v4542_v24, %v4541_v56  ;;  %v4504_v19 = vpop.f32.mrb[50].mxu0  ;;  %v4544_v50 = vpop.f32.mrb[50].mxu1  ;;  %4976 = vmatpush3.bf16.msra.mxu0 %v5570_v10  ;;  %5196 = vmatpush3.bf16.msra.mxu1 %v6789_v14  ;;  %v5572_v14 = vld [vmem:[%s7456_s2 + $0x90] sm:$0xff]   ;;  %v5574_v18 = vld [vmem:[%s7456_s2 + $0x98] sm:$0xff]   ;;  %v5575_v24 = vld [vmem:[%s7456_s2 + $0xe0] sm:$0xff]  }
 0x1ee   : > { %v4505_v45 = vpop.f32.mrb[51].mxu0  ;;  %v4545_v41 = vpop.f32.mrb[51].mxu1  ;;  %4977 = vmatprep.subr.bf16.mxu0 %v5571_v48  ;;  %5197 = vmatprep.subr.bf16.mxu1 %v6800_v20 }
 0x1ef   : > { %v4506_v63 = vadd.f32 %v4505_v45, %v4504_v19  ;;  %v4546_v52 = vadd.f32 %v4545_v41, %v4544_v50  ;;  %v7128_v0 = vadd.f32 %v4543_v49, %v4503_v38  ;;  %v5508_v49 = vld [vmem:[%s6433_s26 + $0x25c] ss:$20 sps:$4 sm:$0xff]   ;;  %v5576_v19 = vld [vmem:[%s7456_s2 + $0xa0] sm:$0xff]   ;;  %v5577_v50 = vld [vmem:[%s7456_s2 + $0xe8] sm:$0xff]  }
 0x1f0   : > { %5190 = vmatmul.mubr.bf16.gmra.mrb[140].mxu0 %v5501_v12  ;;  %3503 = vmatmul.mubr.bf16.gmra.mrb[140].mxu1 %v5504_v60 }
 0x1f1   : > { %4978 = vmatpush3.bf16.msra.mxu0 %v5572_v14  ;;  %5198 = vmatpush3.bf16.msra.mxu1 %v6800_v20  ;;  %v7135_v17 = vadd.f32 %v4546_v52, %v4506_v63  ;;  %v5510_v63 = vld [vmem:[%s6433_s26 + $0x258] ss:$20 sps:$4 sm:$0xff]  }
 0x1f2   : > { %4979 = vmatprep.subr.bf16.mxu0 %v5573_v42  ;;  %5199 = vmatprep.subr.bf16.mxu1 %v6811_v28 }
 0x1f3   : > { %v4507_v30 = vpop.f32.mrb[52].mxu0  ;;  %v4547_v23 = vpop.f32.mrb[52].mxu1  ;;  %3510 = vmatprep.mubr.bf16.mxu1 %v5505_v40  ;;  %3559 = vmatprep.mubr.bf16.mxu0 %v5513_v32 }
 0x1f4   : > { %v4508_v3 = vpop.f32.mrb[53].mxu0  ;;  %v4548_v39 = vpop.f32.mrb[53].mxu1 }
 0x1f5   : > { %v4509_v4 = vadd.f32 %v4508_v3, %v4507_v30  ;;  %v4549_v31 = vadd.f32 %v4548_v39, %v4547_v23  ;;  %v4510_v20 = vpop.f32.mrb[54].mxu0  ;;  %v4550_v34 = vpop.f32.mrb[54].mxu1  ;;  %4980 = vmatpush3.bf16.msra.mxu0 %v5574_v18  ;;  %5200 = vmatpush3.bf16.msra.mxu1 %v6811_v28  ;;  %v5579_v23 = vld [vmem:[%s7456_s2 + $0xf0] sm:$0xff]  }
 0x1f6   : > { %v4511_v56 = vpop.f32.mrb[55].mxu0  ;;  %v4551_v13 = vpop.f32.mrb[55].mxu1  ;;  %4981 = vmatprep.subr.bf16.mxu0 %v5575_v24  ;;  %5201 = vmatprep.subr.bf16.mxu1 %v6822_v58 }
 0x1f7   : > { %v4512_v12 = vadd.f32 %v4511_v56, %v4510_v20  ;;  %v4552_v60 = vadd.f32 %v4551_v13, %v4550_v34  ;;  %v1913_v38 = vadd.f32 %v4549_v31, %v4509_v4  ;;  %v5516_v4 = vld [vmem:[%s6433_s26 + $0x214] ss:$20 sps:$4 sm:$0xff]  }
 0x1f8   : > { %3511 = vmatmul.mubr.bf16.gmra.mrb[144].mxu1 %v5507_v59  ;;  %v5582_v59 = vld [vmem:[%s7456_s2 + $0xb8] sm:$0xff]   ;;  %v5522_v34 = vld [vmem:[%s6433_s26 + $0x240] ss:$20 sps:$4 sm:$0xff]  }
 0x1f9   : > { %4982 = vmatpush3.bf16.msra.mxu0 %v5576_v19  ;;  %5202 = vmatpush3.bf16.msra.mxu1 %v6822_v58  ;;  %v1916_v28 = vadd.f32 %v4552_v60, %v4512_v12  ;;  %v5578_v58 = vld [vmem:[%s7456_s2 + $0xa8] sm:$0xff]   ;;  %v5524_v19 = vld [vmem:[%s6433_s26 + $0x264] ss:$20 sps:$4 sm:$0xff]  }
 0x1fa   : > { %4983 = vmatprep.subr.bf16.mxu0 %v5577_v50  ;;  %5203 = vmatprep.subr.bf16.mxu1 %v6833_v33 }
 0x1fb   : > { %v5091_v10 = vpop.f32.mrb[56].mxu0  ;;  %3518 = vmatprep.mubr.bf16.mxu1 %v5508_v49  ;;  %v4581_v45 = vpop.f32.mrb[56].mxu1 }
 0x1fc   : > { %v1962_v41 = vadd.f32 %v5091_v10, %v7105_v25  ;;  %v1953_v48 = vpop.f32.mrb[57].mxu0  ;;  %v4582_v52 = vpop.f32.mrb[57].mxu1 }
 0x1fd   : > { %v1954_v40 = vadd.f32 %v1953_v48, %v7087_v37  ;;  %v5092_v32 = vpop.f32.mrb[58].mxu0  ;;  %4984 = vmatpush3.bf16.msra.mxu0 %v5578_v58  ;;  %5204 = vmatpush3.bf16.msra.mxu1 %v6833_v33  ;;  %v7166_v14 = vadd.f32 %v4582_v52, %v4581_v45  ;;  %v4584_v42 = vpop.f32.mrb[58].mxu1 }
 0x1fe   : > { %v7171_v25 = vmax.f32 %v1654_v53, %v1962_v41  ;;  %v1965_v30 = vadd.f32 %v5092_v32, %v7111_v5  ;;  %v1956_v37 = vpop.f32.mrb[59].mxu0  ;;  %4985 = vmatprep.subr.bf16.mxu0 %v5579_v23  ;;  %5205 = vmatprep.subr.bf16.mxu1 %v6844_v15  ;;  %v4585_v3 = vpop.f32.mrb[59].mxu1  ;;  %v5514_v53 = vld [vmem:[%s6433_s26 + $0x1f0] ss:$20 sps:$4 sm:$0xff]  }
 0x1ff   : > { %v7181_v33 = vmax.f32 %v1652_v46, %v1954_v40  ;;  %v1957_v47 = vadd.f32 %v1956_v37, %v7091_v9  ;;  %v7184_v44 = vadd.f32 %v4585_v3, %v4584_v42 }
 0x200   : > { %v7190_v5 = vmax.f32 %v1655_v11, %v1965_v30  ;;  %3519 = vmatmul.mubr.bf16.gmra.mrb[148].mxu1 %v5510_v63  ;;  %v5526_v63 = vld [vmem:[%s6433_s26 + $0x260] ss:$20 sps:$4 sm:$0xff]  }
 0x201   : > { %v7195_v39 = vmax.f32 %v1653_v61, %v1957_v47  ;;  %4986 = vmatpush3.bf16.msra.mxu0 %v5580_v29  ;;  %5206 = vmatpush3.bf16.msra.mxu1 %v6844_v15  ;;  %v5511_v61 = vld [vmem:[%s6433_s26 + $0x1e8] ss:$20 sps:$4 sm:$0xff]  }
 0x202   : > { %4987 = vmatprep.subr.bf16.mxu0 %v5581_v54  ;;  %5207 = vmatprep.subr.bf16.mxu1 %v6859_v22 }
 0x203   : > { %v5095_v57 = vpop.f32.mrb[60].mxu0  ;;  %5209 = vmatprep.mubr.bf16.mxu1 %v5514_v53  ;;  %v4587_v55 = vpop.f32.mrb[60].mxu1 }
 0x204   : > { %v1978_v46 = vadd.f32 %v5095_v57, %v1913_v38  ;;  %v1969_v36 = vpop.f32.mrb[61].mxu0  ;;  %v4588_v11 = vpop.f32.mrb[61].mxu1 }
 0x205   : > { %v1970_v9 = vadd.f32 %v1969_v36, %v7128_v0  ;;  %v5096_v15 = vpop.f32.mrb[62].mxu0  ;;  %4988 = vmatpush3.bf16.msra.mxu0 %v5582_v59  ;;  %5208 = vmatpush3.bf16.msra.mxu1 %v6859_v22  ;;  %v7213_v31 = vadd.f32 %v4588_v11, %v4587_v55  ;;  %v4590_v20 = vpop.f32.mrb[62].mxu1 }
 0x206   : > { %v7219_v18 = vmax.f32 %v1658_v26, %v1978_v46  ;;  %v1981_v0 = vadd.f32 %v5096_v15, %v1916_v28  ;;  %v1972_v56 = vpop.f32.mrb[63].mxu0  ;;  %v4591_v13 = vpop.f32.mrb[63].mxu1  ;;  %v5519_v26 = vld [vmem:[%s6433_s26 + $0x23c] ss:$20 sps:$4 sm:$0xff]  }
 0x207   : > { %v7224_v22 = vmax.f32 %v1656_v21, %v1970_v9  ;;  %v1973_v24 = vadd.f32 %v1972_v56, %v7135_v17  ;;  %v4592_v12 = vadd.f32 %v4591_v13, %v4590_v20 }
 0x208   : > { %v7230_v60 = vmax.f32 %v1659_v6, %v1981_v0  ;;  %3560 = vmatmul.mubr.bf16.vlgmr.msra.gmra.mrb[144].mxu0 %v5511_v61  ;;  %5210 = vmatmul.mubr.bf16.vlgmr.msra.gmra.mrb[152].mxu1 %v5515_v8 }
 0x209   : > { %v7235_v35 = vmax.f32 %v1657_v27, %v1973_v24  ;;  %3567 = vmatprep.mubr.bf16.mxu0 %v5516_v4  ;;  %5213 = vmatprep.mubr.bf16.mxu1 %v5522_v34 }
 0x20b   : > { %v4593_v7 = vpop.f32.mrb[64].mxu1 }
 0x20c   : > { %v4594_v21 = vpop.f32.mrb[65].mxu1 }
 0x20d   : > { %v4595_v17 = vadd.f32 %v4594_v21, %v4593_v7  ;;  %v4596_v1 = vpop.f32.mrb[66].mxu1 }
 0x20e   : > { %v4597_v2 = vpop.f32.mrb[67].mxu1 }
 0x20f   : > { %v4598_v6 = vadd.f32 %v4597_v2, %v4596_v1 }
 0x210   : > { %3568 = vmatmul.mubr.bf16.gmra.mrb[148].mxu0 %v5518_v62  ;;  %5214 = vmatmul.mubr.bf16.gmra.mrb[156].mxu1 %v5523_v51 }
 0x211   : > { %3575 = vmatprep.mubr.bf16.mxu0 %v5519_v26 }
 0x213   : > { %v4599_v43 = vpop.f32.mrb[68].mxu1 }
 0x214   : > { %v4600_v27 = vpop.f32.mrb[69].mxu1 }
 0x215   : > { %v4601_v38 = vadd.f32 %v4600_v27, %v4599_v43  ;;  %v4602_v49 = vpop.f32.mrb[70].mxu1 }
 0x216   : > { %v4603_v28 = vpop.f32.mrb[71].mxu1 }
 0x217   : > { %v4604_v50 = vadd.f32 %v4603_v28, %v4602_v49 }
 0x218   : > { %3576 = vmatmul.mubr.bf16.gmra.mrb[152].mxu0 %v5521_v16 }
 0x219   : > { %3583 = vmatprep.mubr.bf16.mxu0 %v5524_v19 }
 0x21b   : > { %v4621_v10 = vpop.f32.mrb[64].mxu0  ;;  %v5115_v45 = vpop.f32.mrb[72].mxu1 }
 0x21c   : > { %v4622_v41 = vpop.f32.mrb[65].mxu0  ;;  %v2285_v48 = vpop.f32.mrb[73].mxu1 }
 0x21d   : > { %v4623_v52 = vadd.f32 %v4622_v41, %v4621_v10  ;;  %v4624_v40 = vpop.f32.mrb[66].mxu0  ;;  %v5116_v32 = vpop.f32.mrb[74].mxu1 }
 0x21e   : > { %v4625_v58 = vpop.f32.mrb[67].mxu0  ;;  %v2288_v42 = vpop.f32.mrb[75].mxu1 }
 0x21f   : > { %v4626_v30 = vadd.f32 %v4625_v58, %v4624_v40  ;;  %v2221_v37 = vadd.f32 %v4623_v52, %v7166_v14 }
 0x220   : > { %3584 = vmatmul.mubr.bf16.gmra.mrb[156].mxu0 %v5526_v63 }
 0x221   : > { %v7244_v23 = vadd.f32 %v2285_v48, %v2221_v37  ;;  %v2224_v3 = vadd.f32 %v4626_v30, %v7184_v44 }
 0x223   : > { %v7249_v53 = vadd.f32 %v2288_v42, %v2224_v3  ;;  %v4627_v29 = vpop.f32.mrb[68].mxu0  ;;  %v5119_v54 = vpop.f32.mrb[76].mxu1 }
 0x224   : > { %v4628_v57 = vpop.f32.mrb[69].mxu0  ;;  %v2301_v55 = vpop.f32.mrb[77].mxu1 }
 0x225   : > { %v4629_v36 = vadd.f32 %v4628_v57, %v4627_v29  ;;  %v4630_v61 = vpop.f32.mrb[70].mxu0  ;;  %v5120_v14 = vpop.f32.mrb[78].mxu1 }
 0x226   : > { %v4631_v8 = vpop.f32.mrb[71].mxu0  ;;  %v2304_v11 = vpop.f32.mrb[79].mxu1 }
 0x227   : > { %v2229_v9 = vadd.f32 %v4629_v36, %v7213_v31  ;;  %v4632_v44 = vadd.f32 %v4631_v8, %v4630_v61 }
 0x229   : > { %v7254_v15 = vadd.f32 %v5115_v45, %v2229_v9  ;;  %v2232_v59 = vadd.f32 %v4632_v44, %v4592_v12 }
 0x22b   : > { %v7258_v20 = vadd.f32 %v5116_v32, %v2232_v59  ;;  %v4633_v34 = vpop.f32.mrb[72].mxu0 }
 0x22c   : > { %v4634_v0 = vpop.f32.mrb[73].mxu0 }
 0x22d   : > { %v4635_v13 = vadd.f32 %v4634_v0, %v4633_v34  ;;  %v4636_v24 = vpop.f32.mrb[74].mxu0 }
 0x22e   : > { %v4637_v7 = vpop.f32.mrb[75].mxu0 }
 0x22f   : > { %v4638_v62 = vadd.f32 %v4637_v7, %v4636_v24  ;;  %v2237_v21 = vadd.f32 %v4635_v13, %v4595_v17 }
 0x231   : > { %v7262_v31 = vadd.f32 %v2301_v55, %v2237_v21  ;;  %v2240_v51 = vadd.f32 %v4638_v62, %v4598_v6 }
 0x233   : > { %v7266_v26 = vadd.f32 %v2304_v11, %v2240_v51  ;;  %v4639_v1 = vpop.f32.mrb[76].mxu0 }
 0x234   : > { %v4640_v2 = vpop.f32.mrb[77].mxu0 }
 0x235   : > { %v4641_v16 = vadd.f32 %v4640_v2, %v4639_v1  ;;  %v4642_v27 = vpop.f32.mrb[78].mxu0 }
 0x236   : > { %v4643_v49 = vpop.f32.mrb[79].mxu0 }
 0x237   : > { %v2245_v19 = vadd.f32 %v4641_v16, %v4601_v38  ;;  %v4644_v28 = vadd.f32 %v4643_v49, %v4642_v27 }
 0x239   : > { %v7270_v10 = vadd.f32 %v5119_v54, %v2245_v19  ;;  %v2248_v17 = vadd.f32 %v4644_v28, %v4604_v50 }
 0x23b   : > { %v7274_v45 = vadd.f32 %v5120_v14, %v2248_v17  ;;  %v4673_v41 = vpop.f32.mrb[80].mxu0  ;;  %v4713_v48 = vpop.f32.mrb[80].mxu1 }
 0x23c   : > { %v4674_v63 = vpop.f32.mrb[81].mxu0  ;;  %v4714_v52 = vpop.f32.mrb[81].mxu1 }
 0x23d   : > { %v4675_v32 = vadd.f32 %v4674_v63, %v4673_v41  ;;  %v4715_v58 = vadd.f32 %v4714_v52, %v4713_v48  ;;  %v4676_v42 = vpop.f32.mrb[82].mxu0  ;;  %v4716_v38 = vpop.f32.mrb[82].mxu1 }
 0x23e   : > { %v4677_v30 = vpop.f32.mrb[83].mxu0  ;;  %v4717_v37 = vpop.f32.mrb[83].mxu1 }
 0x23f   : > { %v4678_v3 = vadd.f32 %v4677_v30, %v4676_v42  ;;  %v4718_v50 = vadd.f32 %v4717_v37, %v4716_v38  ;;  %v2574_v29 = vadd.f32 %v4715_v58, %v4675_v32 }
 0x241   : > { %v2577_v54 = vadd.f32 %v4718_v50, %v4678_v3 }
 0x243   : > { %v4679_v57 = vpop.f32.mrb[84].mxu0  ;;  %v4719_v55 = vpop.f32.mrb[84].mxu1 }
 0x244   : > { %v4680_v36 = vpop.f32.mrb[85].mxu0  ;;  %v4720_v61 = vpop.f32.mrb[85].mxu1 }
 0x245   : > { %v4681_v14 = vadd.f32 %v4680_v36, %v4679_v57  ;;  %v4721_v8 = vadd.f32 %v4720_v61, %v4719_v55  ;;  %v4682_v11 = vpop.f32.mrb[86].mxu0  ;;  %v4722_v9 = vpop.f32.mrb[86].mxu1 }
 0x246   : > { %v4683_v44 = vpop.f32.mrb[87].mxu0  ;;  %v4723_v59 = vpop.f32.mrb[87].mxu1 }
 0x247   : > { %v4684_v34 = vadd.f32 %v4683_v44, %v4682_v11  ;;  %v4724_v0 = vadd.f32 %v4723_v59, %v4722_v9  ;;  %v2582_v13 = vadd.f32 %v4721_v8, %v4681_v14 }
 0x249   : > { %v2585_v24 = vadd.f32 %v4724_v0, %v4684_v34 }
 0x24b   : > { %v4685_v7 = vpop.f32.mrb[88].mxu0  ;;  %v4725_v62 = vpop.f32.mrb[88].mxu1 }
 0x24c   : > { %v4686_v21 = vpop.f32.mrb[89].mxu0  ;;  %v4726_v51 = vpop.f32.mrb[89].mxu1 }
 0x24d   : > { %v4687_v1 = vadd.f32 %v4686_v21, %v4685_v7  ;;  %v4727_v2 = vadd.f32 %v4726_v51, %v4725_v62  ;;  %v4688_v16 = vpop.f32.mrb[90].mxu0  ;;  %v4728_v27 = vpop.f32.mrb[90].mxu1 }
 0x24e   : > { %v4689_v49 = vpop.f32.mrb[91].mxu0  ;;  %v4729_v19 = vpop.f32.mrb[91].mxu1 }
 0x24f   : > { %v4690_v28 = vadd.f32 %v4689_v49, %v4688_v16  ;;  %v4730_v17 = vadd.f32 %v4729_v19, %v4728_v27  ;;  %v2590_v41 = vadd.f32 %v4727_v2, %v4687_v1 }
 0x251   : > { %v2593_v48 = vadd.f32 %v4730_v17, %v4690_v28 }
 0x253   : > { %v4691_v63 = vpop.f32.mrb[92].mxu0  ;;  %v4731_v52 = vpop.f32.mrb[92].mxu1 }
 0x254   : > { %v4692_v32 = vpop.f32.mrb[93].mxu0  ;;  %v4732_v58 = vpop.f32.mrb[93].mxu1 }
 0x255   : > { %v4693_v42 = vadd.f32 %v4692_v32, %v4691_v63  ;;  %v4733_v38 = vadd.f32 %v4732_v58, %v4731_v52  ;;  %v4694_v30 = vpop.f32.mrb[94].mxu0  ;;  %v4734_v37 = vpop.f32.mrb[94].mxu1 }
 0x256   : > { %v4695_v3 = vpop.f32.mrb[95].mxu0  ;;  %v4735_v50 = vpop.f32.mrb[95].mxu1 }
 0x257   : > { %v4696_v57 = vadd.f32 %v4695_v3, %v4694_v30  ;;  %v4736_v55 = vadd.f32 %v4735_v50, %v4734_v37  ;;  %v2598_v36 = vadd.f32 %v4733_v38, %v4693_v42 }
 0x259   : > { %v2601_v61 = vadd.f32 %v4736_v55, %v4696_v57 }
 0x25b   : > { %v5139_v14 = vpop.f32.mrb[96].mxu0  ;;  %v4765_v8 = vpop.f32.mrb[96].mxu1 }
 0x25c   : > { %v7278_v11 = vadd.f32 %v5139_v14, %v2582_v13  ;;  %v2638_v9 = vpop.f32.mrb[97].mxu0  ;;  %v4766_v44 = vpop.f32.mrb[97].mxu1 }
 0x25d   : > { %v7280_v59 = vadd.f32 %v2638_v9, %v2574_v29  ;;  %v5140_v34 = vpop.f32.mrb[98].mxu0  ;;  %v4767_v0 = vadd.f32 %v4766_v44, %v4765_v8  ;;  %v4768_v7 = vpop.f32.mrb[98].mxu1 }
 0x25e   : > { %v7282_v62 = vadd.f32 %v5140_v34, %v2585_v24  ;;  %v2641_v21 = vpop.f32.mrb[99].mxu0  ;;  %v4769_v51 = vpop.f32.mrb[99].mxu1 }
 0x25f   : > { %v7284_v1 = vadd.f32 %v2641_v21, %v2577_v54  ;;  %v4770_v2 = vadd.f32 %v4769_v51, %v4768_v7 }
 0x263   : > { %v5143_v16 = vpop.f32.mrb[100].mxu0  ;;  %v4771_v27 = vpop.f32.mrb[100].mxu1 }
 0x264   : > { %v7286_v49 = vadd.f32 %v5143_v16, %v2598_v36  ;;  %v2654_v13 = vpop.f32.mrb[101].mxu0  ;;  %v4772_v19 = vpop.f32.mrb[101].mxu1 }
 0x265   : > { %v7288_v28 = vadd.f32 %v2654_v13, %v2590_v41  ;;  %v5144_v29 = vpop.f32.mrb[102].mxu0  ;;  %v4773_v17 = vadd.f32 %v4772_v19, %v4771_v27  ;;  %v4774_v63 = vpop.f32.mrb[102].mxu1 }
 0x266   : > { %v7290_v52 = vadd.f32 %v5144_v29, %v2601_v61  ;;  %v2657_v24 = vpop.f32.mrb[103].mxu0  ;;  %v4775_v32 = vpop.f32.mrb[103].mxu1 }
 0x267   : > { %v7292_v58 = vadd.f32 %v2657_v24, %v2593_v48  ;;  %v4776_v54 = vadd.f32 %v4775_v32, %v4774_v63 }
 0x26b   : > { %v4777_v42 = vpop.f32.mrb[104].mxu1 }
 0x26c   : > { %v4778_v38 = vpop.f32.mrb[105].mxu1 }
 0x26d   : > { %v4779_v30 = vadd.f32 %v4778_v38, %v4777_v42  ;;  %v4780_v37 = vpop.f32.mrb[106].mxu1 }
 0x26e   : > { %v4781_v3 = vpop.f32.mrb[107].mxu1 }
 0x26f   : > { %v4782_v50 = vadd.f32 %v4781_v3, %v4780_v37 }
 0x273   : > { %v4783_v57 = vpop.f32.mrb[108].mxu1 }
 0x274   : > { %v4784_v55 = vpop.f32.mrb[109].mxu1 }
 0x275   : > { %v4785_v41 = vadd.f32 %v4784_v55, %v4783_v57  ;;  %v4786_v36 = vpop.f32.mrb[110].mxu1 }
 0x276   : > { %v4787_v14 = vpop.f32.mrb[111].mxu1 }
 0x277   : > { %v4788_v8 = vadd.f32 %v4787_v14, %v4786_v36 }
 0x27b   : > { %v4805_v9 = vpop.f32.mrb[104].mxu0  ;;  %v5163_v61 = vpop.f32.mrb[112].mxu1 }
 0x27c   : > { %v4806_v44 = vpop.f32.mrb[105].mxu0  ;;  %v2962_v34 = vpop.f32.mrb[113].mxu1 }
 0x27d   : > { %v4807_v7 = vadd.f32 %v4806_v44, %v4805_v9  ;;  %v4808_v48 = vpop.f32.mrb[106].mxu0  ;;  %v5164_v21 = vpop.f32.mrb[114].mxu1 }
 0x27e   : > { %v4809_v51 = vpop.f32.mrb[107].mxu0  ;;  %v2965_v16 = vpop.f32.mrb[115].mxu1 }
 0x27f   : > { %v4810_v27 = vadd.f32 %v4809_v51, %v4808_v48  ;;  %v2898_v13 = vadd.f32 %v4807_v7, %v4767_v0 }
 0x281   : > { %v7294_v19 = vadd.f32 %v2962_v34, %v2898_v13  ;;  %v2901_v29 = vadd.f32 %v4810_v27, %v4770_v2 }
 0x283   : > { %v2993_v63 = vmax.f32 %v7280_v59, %v7294_v19  ;;  %v7298_v24 = vadd.f32 %v2965_v16, %v2901_v29  ;;  %v4811_v32 = vpop.f32.mrb[108].mxu0  ;;  %v5167_v42 = vpop.f32.mrb[116].mxu1 }
 0x284   : > { %v4812_v38 = vpop.f32.mrb[109].mxu0  ;;  %v2978_v37 = vpop.f32.mrb[117].mxu1 }
 0x285   : > { %v4813_v57 = vadd.f32 %v4812_v38, %v4811_v32  ;;  %v4814_v55 = vpop.f32.mrb[110].mxu0  ;;  %v5168_v36 = vpop.f32.mrb[118].mxu1 }
 0x286   : > { %v4815_v14 = vpop.f32.mrb[111].mxu0  ;;  %v2981_v0 = vpop.f32.mrb[119].mxu1 }
 0x287   : > { %v2906_v9 = vadd.f32 %v4813_v57, %v4773_v17  ;;  %v4816_v44 = vadd.f32 %v4815_v14, %v4814_v55 }
 0x289   : > { %v7302_v2 = vadd.f32 %v5163_v61, %v2906_v9  ;;  %v2909_v34 = vadd.f32 %v4816_v44, %v4776_v54 }
 0x28b   : > { %v7304_v7 = vadd.f32 %v5164_v21, %v2909_v34  ;;  %v4817_v48 = vpop.f32.mrb[112].mxu0  ;;  %v2995_v51 = vmax.f32 %v7278_v11, %v7302_v2 }
 0x28c   : > { %v4818_v16 = vpop.f32.mrb[113].mxu0 }
 0x28d   : > { %v4819_v27 = vadd.f32 %v4818_v16, %v4817_v48  ;;  %v4820_v13 = vpop.f32.mrb[114].mxu0 }
 0x28e   : > { %v4821_v32 = vpop.f32.mrb[115].mxu0 }
 0x28f   : > { %v4822_v38 = vadd.f32 %v4821_v32, %v4820_v13  ;;  %v2914_v40 = vadd.f32 %v4819_v27, %v4779_v30 }
 0x291   : > { %v7310_v17 = vadd.f32 %v2978_v37, %v2914_v40  ;;  %v2917_v61 = vadd.f32 %v4822_v38, %v4782_v50 }
 0x293   : > { %v7314_v21 = vadd.f32 %v2981_v0, %v2917_v61  ;;  %v4823_v57 = vpop.f32.mrb[116].mxu0 }
 0x294   : > { %v4824_v55 = vpop.f32.mrb[117].mxu0 }
 0x295   : > { %v4825_v9 = vadd.f32 %v4824_v55, %v4823_v57  ;;  %v4826_v44 = vpop.f32.mrb[118].mxu0 }
 0x296   : > { %v4827_v34 = vpop.f32.mrb[119].mxu0 }
 0x297   : > { %v2922_v48 = vadd.f32 %v4825_v9, %v4785_v41  ;;  %v4828_v16 = vadd.f32 %v4827_v34, %v4826_v44 }
 0x299   : > { %v7318_v13 = vadd.f32 %v5167_v42, %v2922_v48  ;;  %v2925_v40 = vadd.f32 %v4828_v16, %v4788_v8 }
 0x29b   : > { %v7320_v30 = vadd.f32 %v5168_v36, %v2925_v40  ;;  %v4857_v50 = vpop.f32.mrb[120].mxu0  ;;  %v4897_v37 = vpop.f32.mrb[120].mxu1 }
 0x29c   : > { %v4858_v27 = vpop.f32.mrb[121].mxu0  ;;  %v4898_v32 = vpop.f32.mrb[121].mxu1 }
 0x29d   : > { %v4859_v38 = vadd.f32 %v4858_v27, %v4857_v50  ;;  %v4899_v61 = vadd.f32 %v4898_v32, %v4897_v37  ;;  %v4860_v6 = vpop.f32.mrb[122].mxu0  ;;  %v4900_v57 = vpop.f32.mrb[122].mxu1 }
 0x29e   : > { %v4861_v55 = vpop.f32.mrb[123].mxu0  ;;  %v4901_v42 = vpop.f32.mrb[123].mxu1 }
 0x29f   : > { %v4862_v9 = vadd.f32 %v4861_v55, %v4860_v6  ;;  %v4902_v8 = vadd.f32 %v4901_v42, %v4900_v57  ;;  %v3230_v36 = vadd.f32 %v4899_v61, %v4859_v38 }
 0x2a1   : > { %v3233_v44 = vadd.f32 %v4902_v8, %v4862_v9 }
 0x2a3   : > { %v4863_v34 = vpop.f32.mrb[124].mxu0  ;;  %v4903_v48 = vpop.f32.mrb[124].mxu1 }
 0x2a4   : > { %v4864_v16 = vpop.f32.mrb[125].mxu0  ;;  %v4904_v40 = vpop.f32.mrb[125].mxu1 }
 0x2a5   : > { %v4865_v43 = vadd.f32 %v4864_v16, %v4863_v34  ;;  %v4905_v12 = vadd.f32 %v4904_v40, %v4903_v48  ;;  %v4866_v56 = vpop.f32.mrb[126].mxu0  ;;  %v4906_v50 = vpop.f32.mrb[126].mxu1 }
 0x2a6   : > { %v4867_v37 = vpop.f32.mrb[127].mxu0  ;;  %v4907_v27 = vpop.f32.mrb[127].mxu1 }
 0x2a7   : > { %v4868_v32 = vadd.f32 %v4867_v37, %v4866_v56  ;;  %v4908_v4 = vadd.f32 %v4907_v27, %v4906_v50  ;;  %v3238_v46 = vadd.f32 %v4905_v12, %v4865_v43 }
 0x2a9   : > { %v3241_v47 = vadd.f32 %v4908_v4, %v4868_v32 }
 0x2ab   : > { %v4869_v14 = vpop.f32.mrb[128].mxu0  ;;  %v4909_v41 = vpop.f32.mrb[128].mxu1 }
 0x2ac   : > { %v4870_v6 = vpop.f32.mrb[129].mxu0  ;;  %v4910_v57 = vpop.f32.mrb[129].mxu1 }
 0x2ad   : > { %v4871_v38 = vadd.f32 %v4870_v6, %v4869_v14  ;;  %v4911_v61 = vadd.f32 %v4910_v57, %v4909_v41  ;;  %v4872_v55 = vpop.f32.mrb[130].mxu0  ;;  %v4912_v42 = vpop.f32.mrb[130].mxu1 }
 0x2ae   : > { %v4873_v9 = vpop.f32.mrb[131].mxu0  ;;  %v4913_v8 = vpop.f32.mrb[131].mxu1 }
 0x2af   : > { %v4874_v34 = vadd.f32 %v4873_v9, %v4872_v55  ;;  %v4914_v48 = vadd.f32 %v4913_v8, %v4912_v42  ;;  %v3246_v16 = vadd.f32 %v4911_v61, %v4871_v38 }
 0x2b1   : > { %v3249_v40 = vadd.f32 %v4914_v48, %v4874_v34 }
 0x2b3   : > { %v4875_v54 = vpop.f32.mrb[132].mxu0  ;;  %v4915_v0 = vpop.f32.mrb[132].mxu1 }
 0x2b4   : > { %v4876_v56 = vpop.f32.mrb[133].mxu0  ;;  %v4916_v50 = vpop.f32.mrb[133].mxu1 }
 0x2b5   : > { %v4877_v12 = vadd.f32 %v4876_v56, %v4875_v54  ;;  %v4917_v4 = vadd.f32 %v4916_v50, %v4915_v0  ;;  %v4878_v43 = vpop.f32.mrb[134].mxu0  ;;  %v4918_v37 = vpop.f32.mrb[134].mxu1 }
 0x2b6   : > { %v4879_v27 = vpop.f32.mrb[135].mxu0  ;;  %v4919_v32 = vpop.f32.mrb[135].mxu1 }
 0x2b7   : > { %v4880_v14 = vadd.f32 %v4879_v27, %v4878_v43  ;;  %v4920_v41 = vadd.f32 %v4919_v32, %v4918_v37  ;;  %v3254_v6 = vadd.f32 %v4917_v4, %v4877_v12 }
 0x2b9   : > { %v3257_v57 = vadd.f32 %v4920_v41, %v4880_v14 }
 0x2bb   : > { %v5187_v3 = vpop.f32.mrb[136].mxu0  ;;  %v4949_v29 = vpop.f32.mrb[136].mxu1 }
 0x2bc   : > { %v3303_v55 = vadd.f32 %v5187_v3, %v3238_v46  ;;  %v3294_v42 = vpop.f32.mrb[137].mxu0  ;;  %v4950_v38 = vpop.f32.mrb[137].mxu1  ;;  %v7460_v3 = vmax.f32 %v7282_v62, %v7304_v7 }
 0x2bd   : > { %v3295_v61 = vadd.f32 %v3294_v42, %v3230_v36  ;;  %v5188_v9 = vpop.f32.mrb[138].mxu0  ;;  %v4951_v8 = vadd.f32 %v4950_v38, %v4949_v29  ;;  %v4952_v34 = vpop.f32.mrb[138].mxu1  ;;  %v7461_v29 = vmax.f32 %v7284_v1, %v7298_v24  ;;  %v7463_v1 = vmax.f32 %v7288_v28, %v7310_v17 }
 0x2be   : > { %v7329_v54 = vmax.f32 %v2995_v51, %v3303_v55  ;;  %v3306_v0 = vadd.f32 %v5188_v9, %v3241_v47  ;;  %v3297_v48 = vpop.f32.mrb[139].mxu0  ;;  %v4953_v56 = vpop.f32.mrb[139].mxu1 }
 0x2bf   : > { %v3325_v50 = vmax.f32 %v2993_v63, %v3295_v61  ;;  %v3298_v12 = vadd.f32 %v3297_v48, %v3233_v44  ;;  %v4954_v46 = vadd.f32 %v4953_v56, %v4952_v34  ;;  %v7462_v44 = vmax.f32 %v7286_v49, %v7318_v13 }
 0x2c0   : > { %v7337_v36 = vmax.f32 %v7460_v3, %v3306_v0  ;;  %v7465_v49 = vmax.f32 %v7292_v58, %v7314_v21 }
 0x2c1   : > { %v7342_v11 = vmax.f32 %v7461_v29, %v3298_v12 }
 0x2c3   : > { %v5191_v2 = vpop.f32.mrb[140].mxu0  ;;  %v4955_v47 = vpop.f32.mrb[140].mxu1 }
 0x2c4   : > { %v3319_v51 = vadd.f32 %v5191_v2, %v3254_v6  ;;  %v3310_v4 = vpop.f32.mrb[141].mxu0  ;;  %v4956_v43 = vpop.f32.mrb[141].mxu1 }
 0x2c5   : > { %v3311_v37 = vadd.f32 %v3310_v4, %v3246_v16  ;;  %v5192_v59 = vpop.f32.mrb[142].mxu0  ;;  %v4957_v19 = vadd.f32 %v4956_v43, %v4955_v47  ;;  %v4958_v63 = vpop.f32.mrb[142].mxu1  ;;  %v7464_v16 = vmax.f32 %v7290_v52, %v7320_v30  ;;  %v7375_v47 = vld [vmem:[%s7457_s3] ss:$0 sm:$0xff] }
 0x2c6   : > { %v7347_v62 = vmax.f32 %v7462_v44, %v3319_v51  ;;  %v3322_v7 = vadd.f32 %v5192_v59, %v3257_v57  ;;  %v3313_v27 = vpop.f32.mrb[143].mxu0  ;;  %v4959_v32 = vpop.f32.mrb[143].mxu1  ;;  %v7466_v59 = vmax.f32 %v7181_v33, %v7244_v23 }
 0x2c7   : > { %v7352_v24 = vmax.f32 %v7463_v1, %v3311_v37  ;;  %v3314_v14 = vadd.f32 %v3313_v27, %v3249_v40  ;;  %v4960_v41 = vadd.f32 %v4959_v32, %v4958_v63  ;;  %v7467_v1 = vmax.f32 %v7195_v39, %v7249_v53 }
 0x2c8   : > { %v7357_v6 = vmax.f32 %v7464_v16, %v3322_v7  ;;  %v2330_v63 = vadd.f32 %v7375_v47, %v7466_v59 }
 0x2c9   : > { %v7362_v13 = vmax.f32 %v7465_v49, %v3314_v14  ;;  %v2331_v14 = vadd.f32 %v7375_v47, %v7467_v1 }
 0x2cb   : > { %v4961_v57 = vpop.f32.mrb[144].mxu1  ;;  %v2339_v53 = vmax.f32 %v2331_v14, 0.0 }
 0x2cc   : > { %v4962_v55 = vpop.f32.mrb[145].mxu1 }
 0x2cd   : > { %v7364_v42 = vadd.f32 %v4962_v55, %v4961_v57  ;;  %v4964_v38 = vpop.f32.mrb[146].mxu1 }
 0x2ce   : > { %v4965_v28 = vpop.f32.mrb[147].mxu1 }
 0x2cf   : > { %v7366_v17 = vadd.f32 %v4965_v28, %v4964_v38 }
 0x2d3   : > { %v4967_v40 = vpop.f32.mrb[148].mxu1 }
 0x2d4   : > { %v4968_v61 = vpop.f32.mrb[149].mxu1 }
 0x2d5   : > { %v7368_v9 = vadd.f32 %v4968_v61, %v4967_v40  ;;  %v4970_v52 = vpop.f32.mrb[150].mxu1 }
 0x2d6   : > { %v4971_v30 = vpop.f32.mrb[151].mxu1 }
 0x2d7   : > { %v7370_v34 = vadd.f32 %v4971_v30, %v4970_v52 }
 0x2db   : > { %v4989_v0 = vpop.f32.mrb[144].mxu0  ;;  %v5211_v58 = vpop.f32.mrb[152].mxu1 }
 0x2dc   : > { %v4990_v21 = vpop.f32.mrb[145].mxu0  ;;  %v3626_v48 = vpop.f32.mrb[153].mxu1 }
 0x2dd   : > { %v4991_v56 = vadd.f32 %v4990_v21, %v4989_v0  ;;  %v4992_v12 = vpop.f32.mrb[146].mxu0  ;;  %v5212_v3 = vpop.f32.mrb[154].mxu1 }
 0x2de   : > { %v4993_v29 = vpop.f32.mrb[147].mxu0  ;;  %v3629_v2 = vpop.f32.mrb[155].mxu1 }
 0x2df   : > { %v4994_v51 = vadd.f32 %v4993_v29, %v4992_v12  ;;  %v3562_v4 = vadd.f32 %v4991_v56, %v4951_v8 }
 0x2e1   : > { %v3627_v43 = vadd.f32 %v3626_v48, %v3562_v4  ;;  %v3565_v37 = vadd.f32 %v4994_v51, %v4954_v46  ;;  %v7469_v51 = vmax.f32 %v7190_v5, %v7258_v20 }
 0x2e3   : > { %v3657_v44 = vmax.f32 %v3325_v50, %v3627_v43  ;;  %v3630_v7 = vadd.f32 %v3629_v2, %v3565_v37  ;;  %v4995_v27 = vpop.f32.mrb[148].mxu0  ;;  %v7381_v32 = vpop.f32.mrb[156].mxu1  ;;  %v2338_v50 = vmax.f32 %v2330_v63, 0.0 }
 0x2e4   : > { %v4996_v16 = vpop.f32.mrb[149].mxu0  ;;  %v3642_v49 = vpop.f32.mrb[157].mxu1 }
 0x2e5   : > { %v3665_v8 = vadd.f32 %v7375_v47, %v3657_v44  ;;  %v3658_v46 = vmax.f32 %v7342_v11, %v3630_v7  ;;  %v4997_v57 = vadd.f32 %v4996_v16, %v4995_v27  ;;  %v4998_v33 = vpop.f32.mrb[150].mxu0  ;;  %v7389_v23 = vpop.f32.mrb[158].mxu1  ;;  %v7468_v11 = vmax.f32 %v7171_v25, %v7254_v15 }
 0x2e6   : > { %v4999_v55 = vpop.f32.mrb[151].mxu0  ;;  %v3645_v38 = vpop.f32.mrb[159].mxu1 }
 0x2e7   : > { %v3673_v28 = vmax.f32 %v3665_v8, 0.0  ;;  %v3666_v40 = vadd.f32 %v7375_v47, %v3658_v46  ;;  %v3570_v61 = vadd.f32 %v4997_v57, %v4957_v19  ;;  %v5000_v39 = vadd.f32 %v4999_v55, %v4998_v33 }
 0x2e8   : > { %v2332_v48 = vadd.f32 %v7375_v47, %v7468_v11  ;;  %v2333_v19 = vadd.f32 %v7375_v47, %v7469_v51  ;;  %v7470_v33 = vmax.f32 %v7224_v22, %v7262_v31  ;;  %v7471_v55 = vmax.f32 %v7235_v35, %v7266_v26 }
 0x2e9   : > { %v3681_v52 = vsub.f32 %v2338_v50, %v3673_v28  ;;  %v3674_v30 = vmax.f32 %v3666_v40, 0.0  ;;  %v3635_v0 = vadd.f32 %v5211_v58, %v3570_v61  ;;  %v3573_v21 = vadd.f32 %v5000_v39, %v4960_v41 }
 0x2ea   : > { %v2340_v59 = vmax.f32 %v2332_v48, 0.0  ;;  %v2341_v20 = vmax.f32 %v2333_v19, 0.0  ;;  %v2334_v50 = vadd.f32 %v7375_v47, %v7470_v33  ;;  %v7473_v19 = vmax.f32 %v7230_v60, %v7274_v45 }
 0x2eb   : > { %v3682_v56 = vsub.f32 %v2339_v53, %v3674_v30  ;;  %v3659_v12 = vmax.f32 %v7329_v54, %v3635_v0  ;;  %v3638_v29 = vadd.f32 %v5212_v3, %v3573_v21  ;;  %v5001_v2 = vpop.f32.mrb[152].mxu0  ;;  %v3689_v4 = vmul.f32 %v3681_v52, %v3681_v52 }
 0x2ec   : > { %v5002_v43 = vpop.f32.mrb[153].mxu0  ;;  %v2342_v26 = vmax.f32 %v2334_v50, 0.0 }
 0x2ed   : > { %v3690_v37 = vmul.f32 %v3682_v56, %v3682_v56  ;;  %v3667_v41 = vadd.f32 %v7375_v47, %v3659_v12  ;;  %v3660_v58 = vmax.f32 %v7337_v36, %v3638_v29  ;;  %v5003_v25 = vadd.f32 %v5002_v43, %v5001_v2  ;;  %v5004_v15 = vpop.f32.mrb[154].mxu0 }
 0x2ee   : > { %v5005_v63 = vpop.f32.mrb[155].mxu0  ;;  %v7472_v56 = vmax.f32 %v7219_v18, %v7270_v10 }
 0x2ef   : > { %v3697_v44 = vadd.f32 %v3690_v37, %v3689_v4  ;;  %v3675_v54 = vmax.f32 %v3667_v41, 0.0  ;;  %v3668_v3 = vadd.f32 %v7375_v47, %v3660_v58  ;;  %v5006_v7 = vadd.f32 %v5005_v63, %v5004_v15 }
 0x2f0   : > { %v3578_v5 = vadd.f32 %v5003_v25, %v7364_v42  ;;  %v2335_v42 = vadd.f32 %v7375_v47, %v7471_v55  ;;  %v2336_v12 = vadd.f32 %v7375_v47, %v7472_v56 }
 0x2f1   : > { %v3683_v27 = vsub.f32 %v2340_v59, %v3675_v54  ;;  %v3676_v1 = vmax.f32 %v3668_v3, 0.0  ;;  %v3581_v14 = vadd.f32 %v5006_v7, %v7366_v17 }
 0x2f2   : > { %v3643_v16 = vadd.f32 %v3642_v49, %v3578_v5  ;;  %v2344_v43 = vmax.f32 %v2336_v12, 0.0 }
 0x2f3   : > { %v3691_v8 = vmul.f32 %v3683_v27, %v3683_v27  ;;  %v3684_v46 = vsub.f32 %v2341_v20, %v3676_v1  ;;  %v3646_v36 = vadd.f32 %v3645_v38, %v3581_v14  ;;  %v5007_v57 = vpop.f32.mrb[156].mxu0 }
 0x2f4   : > { %v3661_v28 = vmax.f32 %v7352_v24, %v3643_v16  ;;  %v5008_v40 = vpop.f32.mrb[157].mxu0  ;;  %v2343_v24 = vmax.f32 %v2335_v42, 0.0 }
 0x2f5   : > { %v3692_v61 = vmul.f32 %v3684_v46, %v3684_v46  ;;  %v3698_v17 = vadd.f32 %v3697_v44, %v3691_v8  ;;  %v3662_v49 = vmax.f32 %v7362_v13, %v3646_v36  ;;  %v5009_v39 = vadd.f32 %v5008_v40, %v5007_v57  ;;  %v5010_v38 = vpop.f32.mrb[158].mxu0 }
 0x2f6   : > { %v3669_v53 = vadd.f32 %v7375_v47, %v3661_v28  ;;  %v5011_v52 = vpop.f32.mrb[159].mxu0 }
 0x2f7   : > { %v3699_v22 = vadd.f32 %v3698_v17, %v3692_v61  ;;  %v3670_v31 = vadd.f32 %v7375_v47, %v3662_v49  ;;  %v3586_v30 = vadd.f32 %v5009_v39, %v7368_v9  ;;  %v5012_v35 = vadd.f32 %v5011_v52, %v5010_v38 }
 0x2f8   : > { %v3677_v0 = vmax.f32 %v3669_v53, 0.0 }
 0x2f9   : > { %v3678_v21 = vmax.f32 %v3670_v31, 0.0  ;;  %v3651_v11 = vadd.f32 %v7381_v32, %v3586_v30  ;;  %v3589_v13 = vadd.f32 %v5012_v35, %v7370_v34  ;;  %v2337_v32 = vadd.f32 %v7375_v47, %v7473_v19 }
 0x2fa   : > { %v3685_v48 = vsub.f32 %v2342_v26, %v3677_v0 }
 0x2fb   : > { %v3686_v29 = vsub.f32 %v2343_v24, %v3678_v21  ;;  %v3663_v9 = vmax.f32 %v7347_v62, %v3651_v11  ;;  %v3654_v2 = vadd.f32 %v7389_v23, %v3589_v13  ;;  %v2345_v58 = vmax.f32 %v2337_v32, 0.0 }
 0x2fc   : > { %v3693_v51 = vmul.f32 %v3685_v48, %v3685_v48 }
 0x2fd   : > { %v3694_v4 = vmul.f32 %v3686_v29, %v3686_v29  ;;  %v3671_v34 = vadd.f32 %v7375_v47, %v3663_v9  ;;  %v3664_v18 = vmax.f32 %v7357_v6, %v3654_v2 }
 0x2fe   : > { %v3700_v10 = vadd.f32 %v3699_v22, %v3693_v51 }
 0x2ff   : > { %v3679_v37 = vmax.f32 %v3671_v34, 0.0  ;;  %v3672_v41 = vadd.f32 %v7375_v47, %v3664_v18 }
 0x300   : > { %v3701_v62 = vadd.f32 %v3700_v10, %v3694_v4 }
 0x301   : > { %v3687_v23 = vsub.f32 %v2344_v43, %v3679_v37  ;;  %v3680_v25 = vmax.f32 %v3672_v41, 0.0 }
 0x303   : > { %v3695_v15 = vmul.f32 %v3687_v23, %v3687_v23  ;;  %v3688_v60 = vsub.f32 %v2345_v58, %v3680_v25 }
 0x305   : > { %v3702_v45 = vadd.f32 %v3701_v62, %v3695_v15  ;;  %v3696_v59 = vmul.f32 %v3688_v60, %v3688_v60 }
 0x307   : > { %v3703_v63 = vadd.f32 %v3702_v45, %v3696_v59 }
 0x309   : > { %3706 = vst [vmem:[%s677_s5] sm:$0xff] %v3703_v63 }
 0x30a PF: > { %s14_s19 = sadd.s32 1, %s5621_s19   ;;  %s7474_s15 = smov %s5609_s16 }
 0x30b   : > { %p11_p10 = scmp.ge.s32.totalorder %s14_s19, 4   ;;  %s7475_s16 = smov %s5687_s24 }
 0x30c   : > { %s7476_s17 = smov %s5617_s18  ;;  %s7477_s18 = smov %s7479_s20 }
 0x30d   :  { %13 = sbr.rel (!%p11_p10) target bundleno = 3 (0x3), region = 153 }

</bundles_post_ra>
